<compile_context>
chip_gen: v7x
topology: tpu7x:2x2x1
jax: 0.10.0
libtpu: 0.0.40
codegen_flags: <defaults>
</compile_context>

<pallas_src>
import functools

import jax
import jax.numpy as jnp
from jax import lax
from jax.experimental import pallas as pl
from jax.experimental.pallas import tpu as pltpu


# --------------------------------------------------------------------------
# Fused Pallas kernel
# --------------------------------------------------------------------------

def _fused_decoder_kernel(x_ref, gamma_ref, beta_ref, img_ref,
                          w1_ref, s1_ref, t1_ref,
                          w2_ref, s2_ref, t2_ref,
                          w3_ref, b3_ref,
                          o_ref, comb_scr, h1_scr, *, th):
    # grid = (batch, n_row_tiles + 1); row axis is sequential ("arbitrary").
    #   step r <  n_rt : conv1 (FiLM/concat input) for row tile r   -> h1_scr
    #   step r >  0    : conv2 + conv3 for row tile r-1 (its halo row was just
    #                    produced by this step's conv1 -- one-tile stagger).
    r = pl.program_id(1)
    n_rt = pl.num_programs(1) - 1

    h = x_ref.shape[1]
    w = x_ref.shape[2]
    dimg = img_ref.shape[-1]
    cc = comb_scr.shape[-1]          # Cin + Dimg
    c1 = h1_scr.shape[-1]            # 128
    cmid = w2_ref.shape[-1]          # 64

    # ---- once per batch element: border rows + FiLM/concat interior fill ----
    @pl.when(r == 0)
    def _():
        # Only the top/bottom border rows need zeroing; left/right border
        # columns are rewritten by the column-aligned full-width row stores.
        zrow_c = jnp.zeros((1, w + 2, cc), comb_scr.dtype)
        comb_scr[0:1] = zrow_c
        comb_scr[h + 1:h + 2] = zrow_c
        zrow_1 = jnp.zeros((1, w + 2, c1), h1_scr.dtype)
        h1_scr[0:1] = zrow_1
        h1_scr[h + 1:h + 2] = zrow_1

        x = x_ref[0]                                          # (H, W, Cin) f32
        mod = gamma_ref[...] * x + beta_ref[...]              # FiLM
        img = jnp.broadcast_to(img_ref[...], (h, w, dimg))
        comb = jnp.concatenate([mod, img], axis=-1).astype(comb_scr.dtype)
        zcol = jnp.zeros((h, 1, cc), comb_scr.dtype)
        comb_scr[1:h + 1, :, :] = jnp.concatenate([zcol, comb, zcol], axis=1)

    # ---- conv1 (3x3, Cc -> 128) + folded BN + ReLU for row tile r ----------
    @pl.when(r < n_rt)
    def _():
        r0 = pl.multiple_of(r * th, th)
        win = comb_scr[pl.ds(r0, th + 2), :, :]               # (th+2, W+2, Cc)
        acc = jnp.zeros((th * w, c1), jnp.float32)
        for t in range(9):                                    # 9 accumulated MXU matmuls
            dy, dx = divmod(t, 3)
            slab = win[dy:dy + th, dx:dx + w, :].reshape(th * w, cc)
            acc = acc + jnp.dot(slab, w1_ref[t],
                                preferred_element_type=jnp.float32)
        y = jnp.maximum(acc * s1_ref[...] + t1_ref[...], 0.0)
        y = y.reshape(th, w, c1).astype(h1_scr.dtype)
        zcol = jnp.zeros((th, 1, c1), h1_scr.dtype)
        h1_scr[pl.ds(r0 + 1, th), :, :] = jnp.concatenate([zcol, y, zcol],
                                                          axis=1)

    # ---- conv2 (3x3, 128 -> 64) + BN + ReLU + conv3 (1x1) for tile r-1 -----
    @pl.when(r > 0)
    def _():
        q0 = pl.multiple_of((r - 1) * th, th)
        win = h1_scr[pl.ds(q0, th + 2), :, :]                 # (th+2, W+2, 128)
        acc = jnp.zeros((th * w, cmid), jnp.float32)
        for t in range(9):                                    # K=128 per tap
            dy, dx = divmod(t, 3)
            slab = win[dy:dy + th, dx:dx + w, :].reshape(th * w, c1)
            acc = acc + jnp.dot(slab, w2_ref[t],
                                preferred_element_type=jnp.float32)
        y = jnp.maximum(acc * s2_ref[...] + t2_ref[...], 0.0)
        # Fused 1x1 conv3 into a lane-dense (zero-padded to 128) output slab.
        logits = jnp.dot(y, w3_ref[...],
                         preferred_element_type=jnp.float32) + b3_ref[...]
        o_ref[...] = logits[None].astype(o_ref.dtype)


# --------------------------------------------------------------------------
# Kernel wrapper
# --------------------------------------------------------------------------

def _pick_tile_h(h, w):
    # Largest divisor of H with tile_h*W <= 2048 (amortize ~0.35us/step and
    # fill the MXU), keeping tile_h*W a multiple of 8 unless it is the full H.
    divisors = [d for d in range(1, h + 1) if h % d == 0]
    valid = [d for d in divisors if (d * w) % 8 == 0 or d == h]
    if not valid:
        return h
    under = [d for d in valid if d * w <= 2048]
    return max(under) if under else min(valid)


def _vmem_limit_bytes(h, w, cc, c1, cmid, ncp, cin, tile_h):
    lane = lambda c: -(-c // 128) * 128          # lane padding of last dim
    scratch = (h + 2) * (w + 2) * (lane(cc) + lane(c1)) * 2       # bf16
    io = 2 * h * w * lane(cin) * 4 + 2 * tile_h * w * ncp * 4     # in + out bufs
    wts = 9 * cc * c1 * 2 + 9 * c1 * cmid * 2 + cmid * ncp * 4
    est = int(1.4 * (scratch + io + wts)) + (2 << 20)
    # clamp: >= 32 MiB (above v5e's 16 MiB default), <= 56 MiB (under v7x 64).
    return int(max(32 << 20, min(56 << 20, est)))


def fused_film_decoder(x, gamma, beta, image_embed, w1, s1, t1,
                       w2, s2, t2, w3p, b3p, *, tile_h):
    # x: (B, H, W, Cin) f32; gamma/beta: (B, Cin); image_embed: (B, Dimg)
    # w1: (3,3,Cin+Dimg,128); w2: (3,3,128,64); w3p: (64, NCpad); b3p: (1, NCpad)
    b, h, w, cin = x.shape
    dimg = image_embed.shape[-1]
    cc = cin + dimg
    c1 = w1.shape[-1]
    cmid = w2.shape[-1]
    ncp = w3p.shape[-1]
    assert h % tile_h == 0
    n_rt = h // tile_h

    w1_t = w1.reshape(9, cc, c1).astype(jnp.bfloat16)
    w2_t = w2.reshape(9, c1, cmid).astype(jnp.bfloat16)

    kernel = functools.partial(_fused_decoder_kernel, th=tile_h)
    out = pl.pallas_call(
        kernel,
        out_shape=jax.ShapeDtypeStruct((b, h * w, ncp), jnp.float32),
        grid=(b, n_rt + 1),
        in_specs=[
            pl.BlockSpec((1, h, w, cin), lambda i, r: (i, 0, 0, 0)),
            pl.BlockSpec((1, 1, cin), lambda i, r: (i, 0, 0)),
            pl.BlockSpec((1, 1, cin), lambda i, r: (i, 0, 0)),
            pl.BlockSpec((1, 1, dimg), lambda i, r: (i, 0, 0)),
            pl.BlockSpec((9, cc, c1), lambda i, r: (0, 0, 0)),
            pl.BlockSpec((1, c1), lambda i, r: (0, 0)),
            pl.BlockSpec((1, c1), lambda i, r: (0, 0)),
            pl.BlockSpec((9, c1, cmid), lambda i, r: (0, 0, 0)),
            pl.BlockSpec((1, cmid), lambda i, r: (0, 0)),
            pl.BlockSpec((1, cmid), lambda i, r: (0, 0)),
            pl.BlockSpec((cmid, ncp), lambda i, r: (0, 0)),
            pl.BlockSpec((1, ncp), lambda i, r: (0, 0)),
        ],
        # One-tile stagger: output tile r-1 is written at step r (step 0 writes
        # nothing; block index stays 0 so no garbage is flushed).
        out_specs=pl.BlockSpec((1, tile_h * w, ncp),
                               lambda i, r: (i, jnp.maximum(r - 1, 0), 0)),
        scratch_shapes=[
            pltpu.VMEM((h + 2, w + 2, cc), jnp.bfloat16),   # padded FiLM+embed
            pltpu.VMEM((h + 2, w + 2, c1), jnp.bfloat16),   # padded conv1 out
        ],
        compiler_params=pltpu.CompilerParams(
            dimension_semantics=("parallel", "arbitrary"),
            vmem_limit_bytes=_vmem_limit_bytes(h, w, cc, c1, cmid, ncp, cin,
                                               tile_h)),
    )(x, gamma[:, None, :], beta[:, None, :], image_embed[:, None, :],
      w1_t, s1, t1, w2_t, s2, t2, w3p, b3p)
    return out.reshape(b, h, w, ncp)


# --------------------------------------------------------------------------
# Parameters & forward (plain-XLA glue around the fused kernel)
# --------------------------------------------------------------------------

def fold_bn(conv_b, bn_w, bn_b, bn_mean, bn_var, eps=1e-5):
    # Eval-mode BatchNorm folded into per-channel scale/shift (bias folded in).
    s = bn_w / jnp.sqrt(bn_var + eps)
    t = (conv_b - bn_mean) * s + bn_b
    return s[None, :], t[None, :]


def init_params(key, input_channels, num_classes, text_dim, image_feature_dim):
    keys = iter(jax.random.split(key, 32))

    def nrm(shape, scale=0.1):
        return jax.random.normal(next(keys), shape, jnp.float32) * scale

    def uni(shape, lo, hi):
        return jax.random.uniform(next(keys), shape, jnp.float32, lo, hi)

    c_comb = input_channels + image_feature_dim   # use_text=True
    return {
        # visual_proj: Conv2d(input_channels, 3, k=1)
        "visual_proj_w": nrm((input_channels, 3)),
        "visual_proj_b": nrm((1, 3)),
        # surrogate image-feature projection (stands in for frozen CLIP head)
        "img_stub_w": nrm((3, image_feature_dim)),
        "img_stub_b": nrm((image_feature_dim,)),
        # FiLM linears
        "gamma_w": nrm((text_dim, input_channels)),
        "gamma_b": 1.0 + nrm((1, input_channels)),
        "beta_w": nrm((text_dim, input_channels)),
        "beta_b": nrm((1, input_channels)),
        # decoder
        "conv1_w": nrm((3, 3, c_comb, 128), 0.05),
        "conv1_b": nrm((128,)),
        "bn1_w": uni((128,), 0.8, 1.2),
        "bn1_b": nrm((128,)),
        "bn1_mean": nrm((128,)),
        "bn1_var": uni((128,), 0.5, 1.5),
        "conv2_w": nrm((3, 3, 128, 64), 0.05),
        "conv2_b": nrm((64,)),
        "bn2_w": uni((64,), 0.8, 1.2),
        "bn2_b": nrm((64,)),
        "bn2_mean": nrm((64,)),
        "bn2_var": uni((64,), 0.5, 1.5),
        "conv3_w": nrm((64, num_classes)),
        "conv3_b": nrm((1, num_classes)),
    }


def _preprocess(params, visual_nchw, text_embed):
    b = visual_nchw.shape[0]
    x = jnp.transpose(visual_nchw, (0, 2, 3, 1)).astype(jnp.float32)  # NHWC
    # visual_proj (1x1 conv, 4->3): plain XLA (far too small for the MXU).
    rgb = (jnp.einsum("bhwc,cd->bhwd", x, params["visual_proj_w"])
           + params["visual_proj_b"])
    rgb224 = jax.image.resize(rgb, (b, 224, 224, 3), method="bilinear")
    # TODO(synk): frozen pretrained CLIP/BLIP2/GIT image encoder has no Pallas
    # equivalent; replaced by a deterministic surrogate projection with the
    # correct (B, image_feature_dim) shape.
    image_embed = (jnp.mean(rgb224, axis=(1, 2)) @ params["img_stub_w"]
                   + params["img_stub_b"])
    # FiLM gamma/beta: tiny (B, text_dim) x (text_dim, Cin) matmuls -> XLA.
    gamma = text_embed @ params["gamma_w"] + params["gamma_b"]
    beta = text_embed @ params["beta_w"] + params["beta_b"]
    return x, gamma, beta, image_embed


@functools.partial(jax.jit, static_argnames=("tile_h",))
def _forward_impl(params, visual_nchw, text_embed, *, tile_h):
    x, gamma, beta, image_embed = _preprocess(params, visual_nchw, text_embed)

    s1, t1 = fold_bn(params["conv1_b"], params["bn1_w"], params["bn1_b"],
                     params["bn1_mean"], params["bn1_var"])
    s2, t2 = fold_bn(params["conv2_b"], params["bn2_w"], params["bn2_b"],
                     params["bn2_mean"], params["bn2_var"])

    # Lane-dense conv3: zero-pad weights/bias to 128 output columns.
    nc = params["conv3_w"].shape[-1]
    ncp = -(-nc // 128) * 128
    w3p = (jnp.zeros((params["conv3_w"].shape[0], ncp), jnp.float32)
           .at[:, :nc].set(params["conv3_w"]))
    b3p = jnp.zeros((1, ncp), jnp.float32).at[:, :nc].set(params["conv3_b"])

    out = fused_film_decoder(x, gamma, beta, image_embed,
                             params["conv1_w"], s1, t1,
                             params["conv2_w"], s2, t2,
                             w3p, b3p, tile_h=tile_h)
    logits = out[..., :nc]                        # slice padded lanes in XLA
    return jnp.transpose(logits, (0, 3, 1, 2))    # back to NCHW like torch


def vlm_res_unet_forward(params, visual_nchw, text_prompts, text_dim=32):
    # TODO(synk): frozen CLIP/BLIP2/GIT text encoder + HF tokenizer have no
    # Pallas equivalent; replaced by a deterministic surrogate text embedding.
    text_embed = jax.random.normal(jax.random.PRNGKey(42),
                                   (len(text_prompts), text_dim), jnp.float32)
    h, w = visual_nchw.shape[2], visual_nchw.shape[3]
    tile_h = _pick_tile_h(h, w)
    logits = _forward_impl(params, visual_nchw, text_embed, tile_h=tile_h)
    return {"logits": logits}


# --------------------------------------------------------------------------
# Plain-XLA reference of the decoder path (for a tolerance check)
# --------------------------------------------------------------------------

def _reference_forward(params, visual_nchw, text_embed):
    x, gamma, beta, image_embed = _preprocess(params, visual_nchw, text_embed)
    b, h, w, _ = x.shape
    mod = gamma[:, None, None, :] * x + beta[:, None, None, :]
    img = jnp.broadcast_to(image_embed[:, None, None, :],
                           (b, h, w, image_embed.shape[-1]))
    comb = jnp.concatenate([mod, img], axis=-1)

    def conv3x3(inp, wgt):
        dn = lax.conv_dimension_numbers(inp.shape, wgt.shape,
                                        ("NHWC", "HWIO", "NHWC"))
        return lax.conv_general_dilated(inp, wgt, (1, 1), "SAME",
                                        dimension_numbers=dn)

    def bn(z, wt, bs, mean, var, eps=1e-5):
        return (z - mean) / jnp.sqrt(var + eps) * wt + bs

    y = conv3x3(comb, params["conv1_w"]) + params["conv1_b"]
    y = jnp.maximum(bn(y, params["bn1_w"], params["bn1_b"],
                       params["bn1_mean"], params["bn1_var"]), 0.0)
    z = conv3x3(y, params["conv2_w"]) + params["conv2_b"]
    z = jnp.maximum(bn(z, params["bn2_w"], params["bn2_b"],
                       params["bn2_mean"], params["bn2_var"]), 0.0)
    logits = (jnp.einsum("bhwc,cd->bhwd", z, params["conv3_w"])
              + params["conv3_b"])
    return jnp.transpose(logits, (0, 3, 1, 2))


# --------------------------------------------------------------------------

if __name__ == "__main__":
    B, C_IN, H, W = 2, 4, 16, 16
    NUM_CLASSES = 3
    TEXT_DIM = 32        # small stand-in for CLIP's 512-d text embedding
    IMG_FEAT_DIM = 32    # small stand-in for CLIP's 512-d image embedding

    key = jax.random.PRNGKey(0)
    k_x, k_p = jax.random.split(key)
    visual = jax.random.normal(k_x, (B, C_IN, H, W), jnp.float32)
    prompts = ["segment the buildings", "segment the roads"]

    params = init_params(k_p, C_IN, NUM_CLASSES, TEXT_DIM, IMG_FEAT_DIM)
    out = vlm_res_unet_forward(params, visual, prompts, text_dim=TEXT_DIM)
    logits = jax.block_until_ready(out["logits"])
    assert logits.shape == (B, NUM_CLASSES, H, W)

    # Tolerance check vs the plain-XLA f32 reference (bf16 MXU operands and
    # bf16 intermediate scratch => small drift; structural bugs would be O(1)).
    text_embed = jax.random.normal(jax.random.PRNGKey(42), (B, TEXT_DIM),
                                   jnp.float32)
    ref = jax.block_until_ready(_reference_forward(params, visual, text_embed))
    max_err = float(jnp.max(jnp.abs(logits - ref)))
    assert max_err < 1e-1, f"max |pallas - ref| = {max_err}"

    print("KERNEL_OK")
</pallas_src>

<mosaic_0001>
module attributes {stable_mosaic.version = 11 : i64} {
  func.func @_fused_decoder_kernel(%arg0: i32, %arg1: i32, %arg2: memref<1x16x16x4xf32, #tpu.memory_space<vmem>>, %arg3: memref<1x1x4xf32, #tpu.memory_space<vmem>>, %arg4: memref<1x1x4xf32, #tpu.memory_space<vmem>>, %arg5: memref<1x1x32xf32, #tpu.memory_space<vmem>>, %arg6: memref<9x36x128xbf16, #tpu.memory_space<vmem>>, %arg7: memref<1x128xf32, #tpu.memory_space<vmem>>, %arg8: memref<1x128xf32, #tpu.memory_space<vmem>>, %arg9: memref<9x128x64xbf16, #tpu.memory_space<vmem>>, %arg10: memref<1x64xf32, #tpu.memory_space<vmem>>, %arg11: memref<1x64xf32, #tpu.memory_space<vmem>>, %arg12: memref<64x128xf32, #tpu.memory_space<vmem>>, %arg13: memref<1x128xf32, #tpu.memory_space<vmem>>, %arg14: memref<1x256x128xf32, #tpu.memory_space<vmem>>, %arg15: memref<18x18x36xbf16, #tpu.memory_space<vmem>>, %arg16: memref<18x18x128xbf16, #tpu.memory_space<vmem>>) attributes {dimension_semantics = [#tpu.dimension_semantics<parallel>, #tpu.dimension_semantics<arbitrary>], iteration_bounds = array<i64: 2, 2>, scalar_prefetch = 0 : i64, scratch_operands = 2 : i64, tpu.core_type = #tpu.core_type<tc>, window_params = [{transform_indices = @transform_0, window_bounds = array<i64: 1, 16, 16, 4>}, {transform_indices = @transform_1, window_bounds = array<i64: 1, 1, 4>}, {transform_indices = @transform_2, window_bounds = array<i64: 1, 1, 4>}, {transform_indices = @transform_3, window_bounds = array<i64: 1, 1, 32>}, {pipeline_mode = #tpu.pipeline_mode<synchronous>, transform_indices = @transform_4, window_bounds = array<i64: 9, 36, 128>}, {pipeline_mode = #tpu.pipeline_mode<synchronous>, transform_indices = @transform_5, window_bounds = array<i64: 1, 128>}, {pipeline_mode = #tpu.pipeline_mode<synchronous>, transform_indices = @transform_6, window_bounds = array<i64: 1, 128>}, {pipeline_mode = #tpu.pipeline_mode<synchronous>, transform_indices = @transform_7, window_bounds = array<i64: 9, 128, 64>}, {pipeline_mode = #tpu.pipeline_mode<synchronous>, transform_indices = @transform_8, window_bounds = array<i64: 1, 64>}, {pipeline_mode = #tpu.pipeline_mode<synchronous>, transform_indices = @transform_9, window_bounds = array<i64: 1, 64>}, {pipeline_mode = #tpu.pipeline_mode<synchronous>, transform_indices = @transform_10, window_bounds = array<i64: 64, 128>}, {pipeline_mode = #tpu.pipeline_mode<synchronous>, transform_indices = @transform_11, window_bounds = array<i64: 1, 128>}, {transform_indices = @transform_12, window_bounds = array<i64: 1, 256, 128>}]} {
    %c0_i32 = arith.constant 0 : i32
    %0 = arith.cmpi eq, %arg1, %c0_i32 : i32
    %1 = arith.extui %0 : i1 to i32
    %c0_i32_0 = arith.constant 0 : i32
    %2 = arith.cmpi ne, %1, %c0_i32_0 : i32
    scf.if %2 {
      %cst = arith.constant 0.000000e+00 : bf16
      %9 = vector.broadcast %cst : bf16 to vector<1x18x36xbf16>
      %c0 = arith.constant 0 : index
      %c0_4 = arith.constant 0 : index
      %c0_5 = arith.constant 0 : index
      %10 = vector.load %arg15[%c0, %c0_4, %c0_5] : memref<18x18x36xbf16, #tpu.memory_space<vmem>>, vector<1x18x36xbf16>
      tpu.vector_store %arg15[%c0, %c0_4, %c0_5], %9 {strides = array<i32>} : memref<18x18x36xbf16, #tpu.memory_space<vmem>>, vector<1x18x36xbf16>,
      %c17 = arith.constant 17 : index
      %c0_6 = arith.constant 0 : index
      %c0_7 = arith.constant 0 : index
      %11 = vector.load %arg15[%c17, %c0_6, %c0_7] : memref<18x18x36xbf16, #tpu.memory_space<vmem>>, vector<1x18x36xbf16>
      tpu.vector_store %arg15[%c17, %c0_6, %c0_7], %9 {strides = array<i32>} : memref<18x18x36xbf16, #tpu.memory_space<vmem>>, vector<1x18x36xbf16>,
      %cst_8 = arith.constant 0.000000e+00 : bf16
      %12 = vector.broadcast %cst_8 : bf16 to vector<1x18x128xbf16>
      %c0_9 = arith.constant 0 : index
      %c0_10 = arith.constant 0 : index
      %c0_11 = arith.constant 0 : index
      %13 = vector.load %arg16[%c0_9, %c0_10, %c0_11] : memref<18x18x128xbf16, #tpu.memory_space<vmem>>, vector<1x18x128xbf16>
      tpu.vector_store %arg16[%c0_9, %c0_10, %c0_11], %12 {strides = array<i32>} : memref<18x18x128xbf16, #tpu.memory_space<vmem>>, vector<1x18x128xbf16>,
      %c17_12 = arith.constant 17 : index
      %c0_13 = arith.constant 0 : index
      %c0_14 = arith.constant 0 : index
      %14 = vector.load %arg16[%c17_12, %c0_13, %c0_14] : memref<18x18x128xbf16, #tpu.memory_space<vmem>>, vector<1x18x128xbf16>
      tpu.vector_store %arg16[%c17_12, %c0_13, %c0_14], %12 {strides = array<i32>} : memref<18x18x128xbf16, #tpu.memory_space<vmem>>, vector<1x18x128xbf16>,
      %c0_15 = arith.constant 0 : index
      %c0_16 = arith.constant 0 : index
      %c0_17 = arith.constant 0 : index
      %c0_18 = arith.constant 0 : index
      %15 = vector.load %arg2[%c0_15, %c0_16, %c0_17, %c0_18] : memref<1x16x16x4xf32, #tpu.memory_space<vmem>>, vector<1x16x16x4xf32>
      %16 = vector.shape_cast %15 : vector<1x16x16x4xf32> to vector<16x16x4xf32>
      %c0_19 = arith.constant 0 : index
      %c0_20 = arith.constant 0 : index
      %c0_21 = arith.constant 0 : index
      %17 = vector.load %arg3[%c0_19, %c0_20, %c0_21] : memref<1x1x4xf32, #tpu.memory_space<vmem>>, vector<1x1x4xf32>
      %18 = vector.broadcast %17 : vector<1x1x4xf32> to vector<16x16x4xf32>
      %19 = arith.mulf %18, %16 : vector<16x16x4xf32>
      %c0_22 = arith.constant 0 : index
      %c0_23 = arith.constant 0 : index
      %c0_24 = arith.constant 0 : index
      %20 = vector.load %arg4[%c0_22, %c0_23, %c0_24] : memref<1x1x4xf32, #tpu.memory_space<vmem>>, vector<1x1x4xf32>
      %21 = vector.broadcast %20 : vector<1x1x4xf32> to vector<16x16x4xf32>
      %22 = arith.addf %19, %21 : vector<16x16x4xf32>
      %c0_25 = arith.constant 0 : index
      %c0_26 = arith.constant 0 : index
      %c0_27 = arith.constant 0 : index
      %23 = vector.load %arg5[%c0_25, %c0_26, %c0_27] : memref<1x1x32xf32, #tpu.memory_space<vmem>>, vector<1x1x32xf32>
      %24 = vector.shape_cast %23 : vector<1x1x32xf32> to vector<1x1x32xf32>
      %25 = vector.broadcast %24 : vector<1x1x32xf32> to vector<16x16x32xf32>
      %26 = tpu.concatenate %22, %25 in 2 : vector<16x16x4xf32>, vector<16x16x32xf32> -> vector<16x16x36xf32>
      %27 = arith.truncf %26 : vector<16x16x36xf32> to vector<16x16x36xbf16>
      %cst_28 = arith.constant 0.000000e+00 : bf16
      %28 = vector.broadcast %cst_28 : bf16 to vector<16x1x36xbf16>
      %29 = tpu.concatenate %28, %27, %28 in 1 : vector<16x1x36xbf16>, vector<16x16x36xbf16>, vector<16x1x36xbf16> -> vector<16x18x36xbf16>
      %c1 = arith.constant 1 : index
      %c0_29 = arith.constant 0 : index
      %c0_30 = arith.constant 0 : index
      %30 = vector.load %arg15[%c1, %c0_29, %c0_30] : memref<18x18x36xbf16, #tpu.memory_space<vmem>>, vector<16x18x36xbf16>
      tpu.vector_store %arg15[%c1, %c0_29, %c0_30], %29 {strides = array<i32>} : memref<18x18x36xbf16, #tpu.memory_space<vmem>>, vector<16x18x36xbf16>,
    } else {
    }
    %c1_i32 = arith.constant 1 : i32
    %3 = arith.cmpi slt, %arg1, %c1_i32 : i32
    %4 = arith.extui %3 : i1 to i32
    %c0_i32_1 = arith.constant 0 : i32
    %5 = arith.cmpi ne, %4, %c0_i32_1 : i32
    scf.if %5 {
      %c16_i32 = arith.constant 16 : i32
      %9 = arith.muli %arg1, %c16_i32 : i32
      %10 = tpu.assume_multiple %9, 16 : i32
      %11 = arith.index_cast %10 : i32 to index
      %c0 = arith.constant 0 : index
      %c0_4 = arith.constant 0 : index
      %12 = vector.load %arg15[%11, %c0, %c0_4] : memref<18x18x36xbf16, #tpu.memory_space<vmem>>, vector<18x18x36xbf16>
      %cst = arith.constant 0.000000e+00 : f32
      %13 = vector.broadcast %cst : f32 to vector<256x128xf32>
      %14 = vector.extract_strided_slice %12 {offsets = [0, 0, 0], sizes = [16, 16, 36], strides = [1, 1, 1]} : vector<18x18x36xbf16> to vector<16x16x36xbf16>
      %15 = vector.shape_cast %14 : vector<16x16x36xbf16> to vector<256x36xbf16>
      %c0_5 = arith.constant 0 : index
      %c0_6 = arith.constant 0 : index
      %c0_7 = arith.constant 0 : index
      %16 = vector.load %arg6[%c0_5, %c0_6, %c0_7] : memref<9x36x128xbf16, #tpu.memory_space<vmem>>, vector<1x36x128xbf16>
      %17 = vector.shape_cast %16 : vector<1x36x128xbf16> to vector<36x128xbf16>
      %cst_8 = arith.constant dense<0.000000e+00> : vector<256x128xf32>
      %18 = tpu.matmul %15, %17, %cst_8 {dimension_numbers = #tpu.dot_dimension_numbers<[1], [0], [0], [1], [0, 0, 1, 1], [], []>} : vector<256x36xbf16>, vector<36x128xbf16>, vector<256x128xf32> -> vector<256x128xf32>
      %19 = arith.addf %13, %18 : vector<256x128xf32>
      %20 = vector.extract_strided_slice %12 {offsets = [0, 1, 0], sizes = [16, 16, 36], strides = [1, 1, 1]} : vector<18x18x36xbf16> to vector<16x16x36xbf16>
      %21 = vector.shape_cast %20 : vector<16x16x36xbf16> to vector<256x36xbf16>
      %c1 = arith.constant 1 : index
      %c0_9 = arith.constant 0 : index
      %c0_10 = arith.constant 0 : index
      %22 = vector.load %arg6[%c1, %c0_9, %c0_10] : memref<9x36x128xbf16, #tpu.memory_space<vmem>>, vector<1x36x128xbf16>
      %23 = vector.shape_cast %22 : vector<1x36x128xbf16> to vector<36x128xbf16>
      %cst_11 = arith.constant dense<0.000000e+00> : vector<256x128xf32>
      %24 = tpu.matmul %21, %23, %cst_11 {dimension_numbers = #tpu.dot_dimension_numbers<[1], [0], [0], [1], [0, 0, 1, 1], [], []>} : vector<256x36xbf16>, vector<36x128xbf16>, vector<256x128xf32> -> vector<256x128xf32>
      %25 = arith.addf %19, %24 : vector<256x128xf32>
      %26 = vector.extract_strided_slice %12 {offsets = [0, 2, 0], sizes = [16, 16, 36], strides = [1, 1, 1]} : vector<18x18x36xbf16> to vector<16x16x36xbf16>
      %27 = vector.shape_cast %26 : vector<16x16x36xbf16> to vector<256x36xbf16>
      %c2 = arith.constant 2 : index
      %c0_12 = arith.constant 0 : index
      %c0_13 = arith.constant 0 : index
      %28 = vector.load %arg6[%c2, %c0_12, %c0_13] : memref<9x36x128xbf16, #tpu.memory_space<vmem>>, vector<1x36x128xbf16>
      %29 = vector.shape_cast %28 : vector<1x36x128xbf16> to vector<36x128xbf16>
      %cst_14 = arith.constant dense<0.000000e+00> : vector<256x128xf32>
      %30 = tpu.matmul %27, %29, %cst_14 {dimension_numbers = #tpu.dot_dimension_numbers<[1], [0], [0], [1], [0, 0, 1, 1], [], []>} : vector<256x36xbf16>, vector<36x128xbf16>, vector<256x128xf32> -> vector<256x128xf32>
      %31 = arith.addf %25, %30 : vector<256x128xf32>
      %32 = vector.extract_strided_slice %12 {offsets = [1, 0, 0], sizes = [16, 16, 36], strides = [1, 1, 1]} : vector<18x18x36xbf16> to vector<16x16x36xbf16>
      %33 = vector.shape_cast %32 : vector<16x16x36xbf16> to vector<256x36xbf16>
      %c3 = arith.constant 3 : index
      %c0_15 = arith.constant 0 : index
      %c0_16 = arith.constant 0 : index
      %34 = vector.load %arg6[%c3, %c0_15, %c0_16] : memref<9x36x128xbf16, #tpu.memory_space<vmem>>, vector<1x36x128xbf16>
      %35 = vector.shape_cast %34 : vector<1x36x128xbf16> to vector<36x128xbf16>
      %cst_17 = arith.constant dense<0.000000e+00> : vector<256x128xf32>
      %36 = tpu.matmul %33, %35, %cst_17 {dimension_numbers = #tpu.dot_dimension_numbers<[1], [0], [0], [1], [0, 0, 1, 1], [], []>} : vector<256x36xbf16>, vector<36x128xbf16>, vector<256x128xf32> -> vector<256x128xf32>
      %37 = arith.addf %31, %36 : vector<256x128xf32>
      %38 = vector.extract_strided_slice %12 {offsets = [1, 1, 0], sizes = [16, 16, 36], strides = [1, 1, 1]} : vector<18x18x36xbf16> to vector<16x16x36xbf16>
      %39 = vector.shape_cast %38 : vector<16x16x36xbf16> to vector<256x36xbf16>
      %c4 = arith.constant 4 : index
      %c0_18 = arith.constant 0 : index
      %c0_19 = arith.constant 0 : index
      %40 = vector.load %arg6[%c4, %c0_18, %c0_19] : memref<9x36x128xbf16, #tpu.memory_space<vmem>>, vector<1x36x128xbf16>
      %41 = vector.shape_cast %40 : vector<1x36x128xbf16> to vector<36x128xbf16>
      %cst_20 = arith.constant dense<0.000000e+00> : vector<256x128xf32>
      %42 = tpu.matmul %39, %41, %cst_20 {dimension_numbers = #tpu.dot_dimension_numbers<[1], [0], [0], [1], [0, 0, 1, 1], [], []>} : vector<256x36xbf16>, vector<36x128xbf16>, vector<256x128xf32> -> vector<256x128xf32>
      %43 = arith.addf %37, %42 : vector<256x128xf32>
      %44 = vector.extract_strided_slice %12 {offsets = [1, 2, 0], sizes = [16, 16, 36], strides = [1, 1, 1]} : vector<18x18x36xbf16> to vector<16x16x36xbf16>
      %45 = vector.shape_cast %44 : vector<16x16x36xbf16> to vector<256x36xbf16>
      %c5 = arith.constant 5 : index
      %c0_21 = arith.constant 0 : index
      %c0_22 = arith.constant 0 : index
      %46 = vector.load %arg6[%c5, %c0_21, %c0_22] : memref<9x36x128xbf16, #tpu.memory_space<vmem>>, vector<1x36x128xbf16>
      %47 = vector.shape_cast %46 : vector<1x36x128xbf16> to vector<36x128xbf16>
      %cst_23 = arith.constant dense<0.000000e+00> : vector<256x128xf32>
      %48 = tpu.matmul %45, %47, %cst_23 {dimension_numbers = #tpu.dot_dimension_numbers<[1], [0], [0], [1], [0, 0, 1, 1], [], []>} : vector<256x36xbf16>, vector<36x128xbf16>, vector<256x128xf32> -> vector<256x128xf32>
      %49 = arith.addf %43, %48 : vector<256x128xf32>
      %50 = vector.extract_strided_slice %12 {offsets = [2, 0, 0], sizes = [16, 16, 36], strides = [1, 1, 1]} : vector<18x18x36xbf16> to vector<16x16x36xbf16>
      %51 = vector.shape_cast %50 : vector<16x16x36xbf16> to vector<256x36xbf16>
      %c6 = arith.constant 6 : index
      %c0_24 = arith.constant 0 : index
      %c0_25 = arith.constant 0 : index
      %52 = vector.load %arg6[%c6, %c0_24, %c0_25] : memref<9x36x128xbf16, #tpu.memory_space<vmem>>, vector<1x36x128xbf16>
      %53 = vector.shape_cast %52 : vector<1x36x128xbf16> to vector<36x128xbf16>
      %cst_26 = arith.constant dense<0.000000e+00> : vector<256x128xf32>
      %54 = tpu.matmul %51, %53, %cst_26 {dimension_numbers = #tpu.dot_dimension_numbers<[1], [0], [0], [1], [0, 0, 1, 1], [], []>} : vector<256x36xbf16>, vector<36x128xbf16>, vector<256x128xf32> -> vector<256x128xf32>
      %55 = arith.addf %49, %54 : vector<256x128xf32>
      %56 = vector.extract_strided_slice %12 {offsets = [2, 1, 0], sizes = [16, 16, 36], strides = [1, 1, 1]} : vector<18x18x36xbf16> to vector<16x16x36xbf16>
      %57 = vector.shape_cast %56 : vector<16x16x36xbf16> to vector<256x36xbf16>
      %c7 = arith.constant 7 : index
      %c0_27 = arith.constant 0 : index
      %c0_28 = arith.constant 0 : index
      %58 = vector.load %arg6[%c7, %c0_27, %c0_28] : memref<9x36x128xbf16, #tpu.memory_space<vmem>>, vector<1x36x128xbf16>
      %59 = vector.shape_cast %58 : vector<1x36x128xbf16> to vector<36x128xbf16>
      %cst_29 = arith.constant dense<0.000000e+00> : vector<256x128xf32>
      %60 = tpu.matmul %57, %59, %cst_29 {dimension_numbers = #tpu.dot_dimension_numbers<[1], [0], [0], [1], [0, 0, 1, 1], [], []>} : vector<256x36xbf16>, vector<36x128xbf16>, vector<256x128xf32> -> vector<256x128xf32>
      %61 = arith.addf %55, %60 : vector<256x128xf32>
      %62 = vector.extract_strided_slice %12 {offsets = [2, 2, 0], sizes = [16, 16, 36], strides = [1, 1, 1]} : vector<18x18x36xbf16> to vector<16x16x36xbf16>
      %63 = vector.shape_cast %62 : vector<16x16x36xbf16> to vector<256x36xbf16>
      %c8 = arith.constant 8 : index
      %c0_30 = arith.constant 0 : index
      %c0_31 = arith.constant 0 : index
      %64 = vector.load %arg6[%c8, %c0_30, %c0_31] : memref<9x36x128xbf16, #tpu.memory_space<vmem>>, vector<1x36x128xbf16>
      %65 = vector.shape_cast %64 : vector<1x36x128xbf16> to vector<36x128xbf16>
      %cst_32 = arith.constant dense<0.000000e+00> : vector<256x128xf32>
      %66 = tpu.matmul %63, %65, %cst_32 {dimension_numbers = #tpu.dot_dimension_numbers<[1], [0], [0], [1], [0, 0, 1, 1], [], []>} : vector<256x36xbf16>, vector<36x128xbf16>, vector<256x128xf32> -> vector<256x128xf32>
      %67 = arith.addf %61, %66 : vector<256x128xf32>
      %c0_33 = arith.constant 0 : index
      %c0_34 = arith.constant 0 : index
      %68 = vector.load %arg7[%c0_33, %c0_34] : memref<1x128xf32, #tpu.memory_space<vmem>>, vector<1x128xf32>
      %69 = vector.broadcast %68 : vector<1x128xf32> to vector<256x128xf32>
      %70 = arith.mulf %67, %69 : vector<256x128xf32>
      %c0_35 = arith.constant 0 : index
      %c0_36 = arith.constant 0 : index
      %71 = vector.load %arg8[%c0_35, %c0_36] : memref<1x128xf32, #tpu.memory_space<vmem>>, vector<1x128xf32>
      %72 = vector.broadcast %71 : vector<1x128xf32> to vector<256x128xf32>
      %73 = arith.addf %70, %72 : vector<256x128xf32>
      %cst_37 = arith.constant 0.000000e+00 : f32
      %74 = vector.broadcast %cst_37 : f32 to vector<256x128xf32>
      %75 = arith.maximumf %73, %74 : vector<256x128xf32>
      %76 = vector.shape_cast %75 : vector<256x128xf32> to vector<16x16x128xf32>
      %77 = arith.truncf %76 : vector<16x16x128xf32> to vector<16x16x128xbf16>
      %cst_38 = arith.constant 0.000000e+00 : bf16
      %78 = vector.broadcast %cst_38 : bf16 to vector<16x1x128xbf16>
      %79 = tpu.concatenate %78, %77, %78 in 1 : vector<16x1x128xbf16>, vector<16x16x128xbf16>, vector<16x1x128xbf16> -> vector<16x18x128xbf16>
      %c1_i32_39 = arith.constant 1 : i32
      %80 = arith.addi %10, %c1_i32_39 : i32
      %81 = arith.index_cast %80 : i32 to index
      %c0_40 = arith.constant 0 : index
      %c0_41 = arith.constant 0 : index
      %82 = vector.load %arg16[%81, %c0_40, %c0_41] : memref<18x18x128xbf16, #tpu.memory_space<vmem>>, vector<16x18x128xbf16>
      tpu.vector_store %arg16[%81, %c0_40, %c0_41], %79 {strides = array<i32>} : memref<18x18x128xbf16, #tpu.memory_space<vmem>>, vector<16x18x128xbf16>,
    } else {
    }
    %c0_i32_2 = arith.constant 0 : i32
    %6 = arith.cmpi sgt, %arg1, %c0_i32_2 : i32
    %7 = arith.extui %6 : i1 to i32
    %c0_i32_3 = arith.constant 0 : i32
    %8 = arith.cmpi ne, %7, %c0_i32_3 : i32
    scf.if %8 {
      %c1_i32_4 = arith.constant 1 : i32
      %9 = arith.subi %arg1, %c1_i32_4 : i32
      %c16_i32 = arith.constant 16 : i32
      %10 = arith.muli %9, %c16_i32 : i32
      %11 = tpu.assume_multiple %10, 16 : i32
      %12 = arith.index_cast %11 : i32 to index
      %c0 = arith.constant 0 : index
      %c0_5 = arith.constant 0 : index
      %13 = vector.load %arg16[%12, %c0, %c0_5] : memref<18x18x128xbf16, #tpu.memory_space<vmem>>, vector<18x18x128xbf16>
      %cst = arith.constant 0.000000e+00 : f32
      %14 = vector.broadcast %cst : f32 to vector<256x64xf32>
      %15 = vector.extract_strided_slice %13 {offsets = [0, 0, 0], sizes = [16, 16, 128], strides = [1, 1, 1]} : vector<18x18x128xbf16> to vector<16x16x128xbf16>
      %16 = vector.shape_cast %15 : vector<16x16x128xbf16> to vector<256x128xbf16>
      %c0_6 = arith.constant 0 : index
      %c0_7 = arith.constant 0 : index
      %c0_8 = arith.constant 0 : index
      %17 = vector.load %arg9[%c0_6, %c0_7, %c0_8] : memref<9x128x64xbf16, #tpu.memory_space<vmem>>, vector<1x128x64xbf16>
      %18 = vector.shape_cast %17 : vector<1x128x64xbf16> to vector<128x64xbf16>
      %cst_9 = arith.constant dense<0.000000e+00> : vector<256x64xf32>
      %19 = tpu.matmul %16, %18, %cst_9 {dimension_numbers = #tpu.dot_dimension_numbers<[1], [0], [0], [1], [0, 0, 1, 1], [], []>} : vector<256x128xbf16>, vector<128x64xbf16>, vector<256x64xf32> -> vector<256x64xf32>
      %20 = arith.addf %14, %19 : vector<256x64xf32>
      %21 = vector.extract_strided_slice %13 {offsets = [0, 1, 0], sizes = [16, 16, 128], strides = [1, 1, 1]} : vector<18x18x128xbf16> to vector<16x16x128xbf16>
      %22 = vector.shape_cast %21 : vector<16x16x128xbf16> to vector<256x128xbf16>
      %c1 = arith.constant 1 : index
      %c0_10 = arith.constant 0 : index
      %c0_11 = arith.constant 0 : index
      %23 = vector.load %arg9[%c1, %c0_10, %c0_11] : memref<9x128x64xbf16, #tpu.memory_space<vmem>>, vector<1x128x64xbf16>
      %24 = vector.shape_cast %23 : vector<1x128x64xbf16> to vector<128x64xbf16>
      %cst_12 = arith.constant dense<0.000000e+00> : vector<256x64xf32>
      %25 = tpu.matmul %22, %24, %cst_12 {dimension_numbers = #tpu.dot_dimension_numbers<[1], [0], [0], [1], [0, 0, 1, 1], [], []>} : vector<256x128xbf16>, vector<128x64xbf16>, vector<256x64xf32> -> vector<256x64xf32>
      %26 = arith.addf %20, %25 : vector<256x64xf32>
      %27 = vector.extract_strided_slice %13 {offsets = [0, 2, 0], sizes = [16, 16, 128], strides = [1, 1, 1]} : vector<18x18x128xbf16> to vector<16x16x128xbf16>
      %28 = vector.shape_cast %27 : vector<16x16x128xbf16> to vector<256x128xbf16>
      %c2 = arith.constant 2 : index
      %c0_13 = arith.constant 0 : index
      %c0_14 = arith.constant 0 : index
      %29 = vector.load %arg9[%c2, %c0_13, %c0_14] : memref<9x128x64xbf16, #tpu.memory_space<vmem>>, vector<1x128x64xbf16>
      %30 = vector.shape_cast %29 : vector<1x128x64xbf16> to vector<128x64xbf16>
      %cst_15 = arith.constant dense<0.000000e+00> : vector<256x64xf32>
      %31 = tpu.matmul %28, %30, %cst_15 {dimension_numbers = #tpu.dot_dimension_numbers<[1], [0], [0], [1], [0, 0, 1, 1], [], []>} : vector<256x128xbf16>, vector<128x64xbf16>, vector<256x64xf32> -> vector<256x64xf32>
      %32 = arith.addf %26, %31 : vector<256x64xf32>
      %33 = vector.extract_strided_slice %13 {offsets = [1, 0, 0], sizes = [16, 16, 128], strides = [1, 1, 1]} : vector<18x18x128xbf16> to vector<16x16x128xbf16>
      %34 = vector.shape_cast %33 : vector<16x16x128xbf16> to vector<256x128xbf16>
      %c3 = arith.constant 3 : index
      %c0_16 = arith.constant 0 : index
      %c0_17 = arith.constant 0 : index
      %35 = vector.load %arg9[%c3, %c0_16, %c0_17] : memref<9x128x64xbf16, #tpu.memory_space<vmem>>, vector<1x128x64xbf16>
      %36 = vector.shape_cast %35 : vector<1x128x64xbf16> to vector<128x64xbf16>
      %cst_18 = arith.constant dense<0.000000e+00> : vector<256x64xf32>
      %37 = tpu.matmul %34, %36, %cst_18 {dimension_numbers = #tpu.dot_dimension_numbers<[1], [0], [0], [1], [0, 0, 1, 1], [], []>} : vector<256x128xbf16>, vector<128x64xbf16>, vector<256x64xf32> -> vector<256x64xf32>
      %38 = arith.addf %32, %37 : vector<256x64xf32>
      %39 = vector.extract_strided_slice %13 {offsets = [1, 1, 0], sizes = [16, 16, 128], strides = [1, 1, 1]} : vector<18x18x128xbf16> to vector<16x16x128xbf16>
      %40 = vector.shape_cast %39 : vector<16x16x128xbf16> to vector<256x128xbf16>
      %c4 = arith.constant 4 : index
      %c0_19 = arith.constant 0 : index
      %c0_20 = arith.constant 0 : index
      %41 = vector.load %arg9[%c4, %c0_19, %c0_20] : memref<9x128x64xbf16, #tpu.memory_space<vmem>>, vector<1x128x64xbf16>
      %42 = vector.shape_cast %41 : vector<1x128x64xbf16> to vector<128x64xbf16>
      %cst_21 = arith.constant dense<0.000000e+00> : vector<256x64xf32>
      %43 = tpu.matmul %40, %42, %cst_21 {dimension_numbers = #tpu.dot_dimension_numbers<[1], [0], [0], [1], [0, 0, 1, 1], [], []>} : vector<256x128xbf16>, vector<128x64xbf16>, vector<256x64xf32> -> vector<256x64xf32>
      %44 = arith.addf %38, %43 : vector<256x64xf32>
      %45 = vector.extract_strided_slice %13 {offsets = [1, 2, 0], sizes = [16, 16, 128], strides = [1, 1, 1]} : vector<18x18x128xbf16> to vector<16x16x128xbf16>
      %46 = vector.shape_cast %45 : vector<16x16x128xbf16> to vector<256x128xbf16>
      %c5 = arith.constant 5 : index
      %c0_22 = arith.constant 0 : index
      %c0_23 = arith.constant 0 : index
      %47 = vector.load %arg9[%c5, %c0_22, %c0_23] : memref<9x128x64xbf16, #tpu.memory_space<vmem>>, vector<1x128x64xbf16>
      %48 = vector.shape_cast %47 : vector<1x128x64xbf16> to vector<128x64xbf16>
      %cst_24 = arith.constant dense<0.000000e+00> : vector<256x64xf32>
      %49 = tpu.matmul %46, %48, %cst_24 {dimension_numbers = #tpu.dot_dimension_numbers<[1], [0], [0], [1], [0, 0, 1, 1], [], []>} : vector<256x128xbf16>, vector<128x64xbf16>, vector<256x64xf32> -> vector<256x64xf32>
      %50 = arith.addf %44, %49 : vector<256x64xf32>
      %51 = vector.extract_strided_slice %13 {offsets = [2, 0, 0], sizes = [16, 16, 128], strides = [1, 1, 1]} : vector<18x18x128xbf16> to vector<16x16x128xbf16>
      %52 = vector.shape_cast %51 : vector<16x16x128xbf16> to vector<256x128xbf16>
      %c6 = arith.constant 6 : index
      %c0_25 = arith.constant 0 : index
      %c0_26 = arith.constant 0 : index
      %53 = vector.load %arg9[%c6, %c0_25, %c0_26] : memref<9x128x64xbf16, #tpu.memory_space<vmem>>, vector<1x128x64xbf16>
      %54 = vector.shape_cast %53 : vector<1x128x64xbf16> to vector<128x64xbf16>
      %cst_27 = arith.constant dense<0.000000e+00> : vector<256x64xf32>
      %55 = tpu.matmul %52, %54, %cst_27 {dimension_numbers = #tpu.dot_dimension_numbers<[1], [0], [0], [1], [0, 0, 1, 1], [], []>} : vector<256x128xbf16>, vector<128x64xbf16>, vector<256x64xf32> -> vector<256x64xf32>
      %56 = arith.addf %50, %55 : vector<256x64xf32>
      %57 = vector.extract_strided_slice %13 {offsets = [2, 1, 0], sizes = [16, 16, 128], strides = [1, 1, 1]} : vector<18x18x128xbf16> to vector<16x16x128xbf16>
      %58 = vector.shape_cast %57 : vector<16x16x128xbf16> to vector<256x128xbf16>
      %c7 = arith.constant 7 : index
      %c0_28 = arith.constant 0 : index
      %c0_29 = arith.constant 0 : index
      %59 = vector.load %arg9[%c7, %c0_28, %c0_29] : memref<9x128x64xbf16, #tpu.memory_space<vmem>>, vector<1x128x64xbf16>
      %60 = vector.shape_cast %59 : vector<1x128x64xbf16> to vector<128x64xbf16>
      %cst_30 = arith.constant dense<0.000000e+00> : vector<256x64xf32>
      %61 = tpu.matmul %58, %60, %cst_30 {dimension_numbers = #tpu.dot_dimension_numbers<[1], [0], [0], [1], [0, 0, 1, 1], [], []>} : vector<256x128xbf16>, vector<128x64xbf16>, vector<256x64xf32> -> vector<256x64xf32>
      %62 = arith.addf %56, %61 : vector<256x64xf32>
      %63 = vector.extract_strided_slice %13 {offsets = [2, 2, 0], sizes = [16, 16, 128], strides = [1, 1, 1]} : vector<18x18x128xbf16> to vector<16x16x128xbf16>
      %64 = vector.shape_cast %63 : vector<16x16x128xbf16> to vector<256x128xbf16>
      %c8 = arith.constant 8 : index
      %c0_31 = arith.constant 0 : index
      %c0_32 = arith.constant 0 : index
      %65 = vector.load %arg9[%c8, %c0_31, %c0_32] : memref<9x128x64xbf16, #tpu.memory_space<vmem>>, vector<1x128x64xbf16>
      %66 = vector.shape_cast %65 : vector<1x128x64xbf16> to vector<128x64xbf16>
      %cst_33 = arith.constant dense<0.000000e+00> : vector<256x64xf32>
      %67 = tpu.matmul %64, %66, %cst_33 {dimension_numbers = #tpu.dot_dimension_numbers<[1], [0], [0], [1], [0, 0, 1, 1], [], []>} : vector<256x128xbf16>, vector<128x64xbf16>, vector<256x64xf32> -> vector<256x64xf32>
      %68 = arith.addf %62, %67 : vector<256x64xf32>
      %c0_34 = arith.constant 0 : index
      %c0_35 = arith.constant 0 : index
      %69 = vector.load %arg10[%c0_34, %c0_35] : memref<1x64xf32, #tpu.memory_space<vmem>>, vector<1x64xf32>
      %70 = vector.broadcast %69 : vector<1x64xf32> to vector<256x64xf32>
      %71 = arith.mulf %68, %70 : vector<256x64xf32>
      %c0_36 = arith.constant 0 : index
      %c0_37 = arith.constant 0 : index
      %72 = vector.load %arg11[%c0_36, %c0_37] : memref<1x64xf32, #tpu.memory_space<vmem>>, vector<1x64xf32>
      %73 = vector.broadcast %72 : vector<1x64xf32> to vector<256x64xf32>
      %74 = arith.addf %71, %73 : vector<256x64xf32>
      %cst_38 = arith.constant 0.000000e+00 : f32
      %75 = vector.broadcast %cst_38 : f32 to vector<256x64xf32>
      %76 = arith.maximumf %74, %75 : vector<256x64xf32>
      %c0_39 = arith.constant 0 : index
      %c0_40 = arith.constant 0 : index
      %77 = vector.load %arg12[%c0_39, %c0_40] : memref<64x128xf32, #tpu.memory_space<vmem>>, vector<64x128xf32>
      %cst_41 = arith.constant dense<0.000000e+00> : vector<256x128xf32>
      %78 = tpu.matmul %76, %77, %cst_41 {dimension_numbers = #tpu.dot_dimension_numbers<[1], [0], [0], [1], [0, 0, 1, 1], [], []>} : vector<256x64xf32>, vector<64x128xf32>, vector<256x128xf32> -> vector<256x128xf32>
      %c0_42 = arith.constant 0 : index
      %c0_43 = arith.constant 0 : index
      %79 = vector.load %arg13[%c0_42, %c0_43] : memref<1x128xf32, #tpu.memory_space<vmem>>, vector<1x128xf32>
      %80 = vector.broadcast %79 : vector<1x128xf32> to vector<256x128xf32>
      %81 = arith.addf %78, %80 : vector<256x128xf32>
      %82 = vector.shape_cast %81 : vector<256x128xf32> to vector<1x256x128xf32>
      %c0_44 = arith.constant 0 : index
      %c0_45 = arith.constant 0 : index
      %c0_46 = arith.constant 0 : index
      %83 = vector.load %arg14[%c0_44, %c0_45, %c0_46] : memref<1x256x128xf32, #tpu.memory_space<vmem>>, vector<1x256x128xf32>
      tpu.vector_store %arg14[%c0_44, %c0_45, %c0_46], %82 {strides = array<i32>} : memref<1x256x128xf32, #tpu.memory_space<vmem>>, vector<1x256x128xf32>,
    } else {
    }
    return
  }
  func.func @transform_0(%arg0: i32, %arg1: i32) -> (i32, i32, i32, i32) {
    %c0_i32 = arith.constant 0 : i32
    %c0_i32_0 = arith.constant 0 : i32
    %c0_i32_1 = arith.constant 0 : i32
    %c0_i32_2 = arith.constant 0 : i32
    return %arg0, %c0_i32, %c0_i32_0, %c0_i32_1 : i32, i32, i32, i32
  }
  func.func @transform_1(%arg0: i32, %arg1: i32) -> (i32, i32, i32) {
    %c0_i32 = arith.constant 0 : i32
    %c0_i32_0 = arith.constant 0 : i32
    %c0_i32_1 = arith.constant 0 : i32
    return %arg0, %c0_i32, %c0_i32_0 : i32, i32, i32
  }
  func.func @transform_2(%arg0: i32, %arg1: i32) -> (i32, i32, i32) {
    %c0_i32 = arith.constant 0 : i32
    %c0_i32_0 = arith.constant 0 : i32
    %c0_i32_1 = arith.constant 0 : i32
    return %arg0, %c0_i32, %c0_i32_0 : i32, i32, i32
  }
  func.func @transform_3(%arg0: i32, %arg1: i32) -> (i32, i32, i32) {
    %c0_i32 = arith.constant 0 : i32
    %c0_i32_0 = arith.constant 0 : i32
    %c0_i32_1 = arith.constant 0 : i32
    return %arg0, %c0_i32, %c0_i32_0 : i32, i32, i32
  }
  func.func @transform_4(%arg0: i32, %arg1: i32) -> (i32, i32, i32) {
    %c0_i32 = arith.constant 0 : i32
    %c0_i32_0 = arith.constant 0 : i32
    %c0_i32_1 = arith.constant 0 : i32
    %c0_i32_2 = arith.constant 0 : i32
    return %c0_i32, %c0_i32_0, %c0_i32_1 : i32, i32, i32
  }
  func.func @transform_5(%arg0: i32, %arg1: i32) -> (i32, i32) {
    %c0_i32 = arith.constant 0 : i32
    %c0_i32_0 = arith.constant 0 : i32
    %c0_i32_1 = arith.constant 0 : i32
    return %c0_i32, %c0_i32_0 : i32, i32
  }
  func.func @transform_6(%arg0: i32, %arg1: i32) -> (i32, i32) {
    %c0_i32 = arith.constant 0 : i32
    %c0_i32_0 = arith.constant 0 : i32
    %c0_i32_1 = arith.constant 0 : i32
    return %c0_i32, %c0_i32_0 : i32, i32
  }
  func.func @transform_7(%arg0: i32, %arg1: i32) -> (i32, i32, i32) {
    %c0_i32 = arith.constant 0 : i32
    %c0_i32_0 = arith.constant 0 : i32
    %c0_i32_1 = arith.constant 0 : i32
    %c0_i32_2 = arith.constant 0 : i32
    return %c0_i32, %c0_i32_0, %c0_i32_1 : i32, i32, i32
  }
  func.func @transform_8(%arg0: i32, %arg1: i32) -> (i32, i32) {
    %c0_i32 = arith.constant 0 : i32
    %c0_i32_0 = arith.constant 0 : i32
    %c0_i32_1 = arith.constant 0 : i32
    return %c0_i32, %c0_i32_0 : i32, i32
  }
  func.func @transform_9(%arg0: i32, %arg1: i32) -> (i32, i32) {
    %c0_i32 = arith.constant 0 : i32
    %c0_i32_0 = arith.constant 0 : i32
    %c0_i32_1 = arith.constant 0 : i32
    return %c0_i32, %c0_i32_0 : i32, i32
  }
  func.func @transform_10(%arg0: i32, %arg1: i32) -> (i32, i32) {
    %c0_i32 = arith.constant 0 : i32
    %c0_i32_0 = arith.constant 0 : i32
    %c0_i32_1 = arith.constant 0 : i32
    return %c0_i32, %c0_i32_0 : i32, i32
  }
  func.func @transform_11(%arg0: i32, %arg1: i32) -> (i32, i32) {
    %c0_i32 = arith.constant 0 : i32
    %c0_i32_0 = arith.constant 0 : i32
    %c0_i32_1 = arith.constant 0 : i32
    return %c0_i32, %c0_i32_0 : i32, i32
  }
  func.func @transform_12(%arg0: i32, %arg1: i32) -> (i32, i32, i32) {
    %c1_i32 = arith.constant 1 : i32
    %0 = arith.subi %arg1, %c1_i32 : i32
    %c0_i32 = arith.constant 0 : i32
    %1 = arith.maxsi %0, %c0_i32 : i32
    %c0_i32_0 = arith.constant 0 : i32
    %c0_i32_1 = arith.constant 0 : i32
    return %arg0, %1, %c0_i32_0 : i32, i32, i32
  }
}

</mosaic_0001>

<bundles_post_ra>
// kernel: _forward_impl.1
= control target key start
LH: loop header
LB: loop body
LE: loop exit
PB: predicated region body
PF: predicated region fallthrough
CT: control target
= control target key end

     0   :  { %s11146_s21 = smov 0   ;;  %s11148_s22 = smov 0   ;;  %s14045_s0 = inlined_call_operand.vmem [shape: f32[2,16,16,4], index: 0, kind: input, shape index: {}]   ;;  %s14046_s1 = inlined_call_operand.vmem [shape: f32[2,1,4], index: 1, kind: input, shape index: {}]   ;;  %s14047_s2 = inlined_call_operand.vmem [shape: f32[2,1,4], index: 2, kind: input, shape index: {}]   ;;  %s14048_s3 = inlined_call_operand.vmem [shape: f32[2,1,32], index: 3, kind: input, shape index: {}]   ;;  %s14049_s4 = inlined_call_operand.vmem [shape: bf16[9,36,128], index: 4, kind: input, shape index: {}]   ;;  %s14050_s5 = inlined_call_operand.vmem [shape: f32[1,128], index: 5, kind: input, shape index: {}]   ;;  %s14051_s6 = inlined_call_operand.vmem [shape: f32[1,128], index: 6, kind: input, shape index: {}]   ;;  %s14052_s7 = inlined_call_operand.vmem [shape: bf16[9,128,64], index: 7, kind: input, shape index: {}]   ;;  %s14053_s8 = inlined_call_operand.vmem [shape: f32[1,64], index: 8, kind: input, shape index: {}]   ;;  %s14054_s9 = inlined_call_operand.vmem [shape: f32[1,64], index: 9, kind: input, shape index: {}]   ;;  %s14055_s10 = inlined_call_operand.vmem [shape: f32[64,128], index: 10, kind: input, shape index: {}]   ;;  %s14056_s11 = inlined_call_operand.vmem [shape: f32[1,128], index: 11, kind: input, shape index: {}]   ;;  %s14057_s12 = inlined_call_operand.vmem [shape: f32[2,256,128], index: 12, kind: output, shape index: {}]  }
   0x1   :  { %14123 = sst [smem:[#allocation53_spill]] %s14054_s9  ;;  %s11150_s23 = smov 0  }
   0x2   :  { %14124 = sst [smem:[#allocation54_spill]] %s14056_s11  ;;  %s11152_s24 = smov 0  }
   0x3   :  { %s11154_s25 = smov 0  }
   0x4 LB: > { %14125 = sst [smem:[#allocation4_spill]] %s11069_s23  ;;  %s31_s26 = sadd.s32 1, %s11069_s23  ;;  %s11077_s25 = sphi %s11154_s25, %s22_s25   ;;  %s11073_s24 = sphi %s11152_s24, %s14239_s24   ;;  %s11069_s23 = sphi %s11150_s23, %s14238_s23   ;;  %s11065_s22 = sphi %s11148_s22, %s14237_s22   ;;  %s11061_s21 = sphi %s11146_s21, %s14236_s21  }
   0x5   : > { %14126 = sst [smem:[#allocation5_spill]] %s11073_s24  ;;  %s34_s27 = sadd.s32 1, %s11073_s24 }
   0x6   : > { %14127 = sst [smem:[#allocation6_spill]] %s11077_s25  ;;  %p32_p0 = scmp.ge.s32.totalorder %s31_s26, 2 }
   0x7   : > { %p8281_p1 = scmp.ge.s32.totalorder %s11077_s25, 1  ;;  %p406_p2 = scmp.lt.s32.totalorder %s11077_s25, 5 }
   0x8   : > { %s14241_s26 = smov (%p32_p0, %s31_s26), 0  ;;  %s14243_s27 = smov (!%p32_p0, %s34_s27), %s11073_s24 }
   0x9   : > { %14128 = sst [smem:[#allocation7_spill]] %s14241_s26  ;;  %p407_p3 = pnand %p8281_p1, %p406_p2 }
   0xa   : > { %p36_p4 = scmp.ge.s32.totalorder %s14243_s27, 2  ;;  %p464_p5 = scmp.lt.s32.totalorder (!%p407_p3), %s11065_s22, 1 }
   0xb   : > { %410 = sbr.rel (%p407_p3) target bundleno = 1575 (0x627), region = 68  ;;  %s11179_s28 = sadd.s32 (!%p407_p3), 4294967295, %s11061_s21 }
   0xc   : > { %s14245_s27 = smov (%p36_p4, %s14243_s27), 0  ;;  %p479_p6 = scmp.gt.s32.totalorder (!%p407_p3), %s11179_s28, 0 }
   0xd   : > { %14129 = sst [smem:[#allocation8_spill]] %s14245_s27  ;;  %p8288_p8 = scmp.ne.s32.totalorder (!%p407_p3), %s11061_s21, 0 }
  0x12   : > { %s14247_s22 = smov (!%p464_p5, %s11065_s22), 1  ;;  %vm499_vm0 = vcmask (!%p8288_p8), 289792   ;;  %vm502_vm1 = vcmask (!%p8288_p8), 286720   ;;  %v11079_v0 = vmov (!%p8288_p8), 0   ;;  %vm634_vm2 = vcmask (!%p8288_p8), 31744  }
  0x13   : > { %s480_s29 = scalar_select %p479_p6, %s11179_s28, 0 }
  0x14   : > { %s9041_s30 = sshll.u32 %s14247_s22, 8  ;;  %s474_s27 = scalar_lea.vmem %s14047_s2, %s14247_s22  ;;  %500 = vst.msk [vmem:[#allocation2] sm:$0xf] (!%p8288_p8), %vm499_vm0, %v11079_v0  ;;  %501 = vst.msk [vmem:[#allocation2 + $0x4] sm:$0xf] (!%p8288_p8), %vm499_vm0, %v11079_v0  ;;  %vm827_vm3 = vcmask (!%p8288_p8), 1040384  }
  0x15   : > { %s11193_s18 = scalar_lea.vmem %s14045_s0, %s9041_s30  ;;  %s477_s23 = scalar_lea.vmem %s14048_s3, %s14247_s22  ;;  %503 = vst.msk [vmem:[#allocation2 + $0x8] sm:$0x1] (!%p8288_p8), %vm502_vm1, %v11079_v0  ;;  %507 = vst.msk [vmem:[#allocation2 + $0xd4] sm:$0x1] (!%p8288_p8), %vm502_vm1, %v11079_v0  ;;  %v8290_v59 = vld [vmem:[%s474_s27] ss:$0 sm:$0xff] (!%p8288_p8) }
  0x16   : > { %s8285_s25 = sshll.u32 %s480_s29, 5  ;;  %s8286_s11 = sshll.u32 %s14247_s22, 5  ;;  %505 = vst.msk [vmem:[#allocation2 + $0xcc] sm:$0xf] (!%p8288_p8), %vm499_vm0, %v11079_v0  ;;  %506 = vst.msk [vmem:[#allocation2 + $0xd0] sm:$0xf] (!%p8288_p8), %vm499_vm0, %v11079_v0 }
  0x17   : > { %p484_p7 = scmp.lt.s32.totalorder %s8285_s25, 31  ;;  %498 = sbr.rel (%p8288_p8) target bundleno = 206 (0xce), region = 72  ;;  %508 = vst [vmem:[#allocation3] sm:$0xf] (!%p8288_p8), %v11079_v0  ;;  %509 = vst [vmem:[#allocation3 + $0x4] sm:$0xf] (!%p8288_p8), %v11079_v0 }
  0x18   : > { %510 = vst [vmem:[#allocation3 + $0x8] sm:$0x1] (!%p8288_p8), %v11079_v0  ;;  %512 = vst [vmem:[#allocation3 + $0xcc] sm:$0xf] (!%p8288_p8), %v11079_v0  ;;  %v8291_v1 = vld [vmem:[%s477_s23] ss:$0 sm:$0xff] (!%p8288_p8)  ;;  %s14130_s24 = scalar_lea.vmem (!%p8288_p8), %s14046_s1, %s14247_s22 }
  0x19   : > { %s14249_s25 = smov (!%p484_p7, %s8285_s25), 31  ;;  %513 = vst [vmem:[#allocation3 + $0xd0] sm:$0xf] (!%p8288_p8), %v11079_v0  ;;  %514 = vst [vmem:[#allocation3 + $0xd4] sm:$0x1] (!%p8288_p8), %v11079_v0  ;;  %v515_v2 = vld [vmem:[%s11193_s18] sm:$0xff] (!%p8288_p8) }
  0x1a   : > { %s487_s9 = sadd.s32 %s8286_s11, %s14249_s25  ;;  %v516_v3 = vld [vmem:[%s11193_s18 + $0x8] sm:$0xff] (!%p8288_p8)  ;;  %v517_v4 = vld [vmem:[%s11193_s18 + $0x10] sm:$0xff] (!%p8288_p8)  ;;  %v518_v5 = vld [vmem:[%s11193_s18 + $0x18] sm:$0xff] (!%p8288_p8)  ;;  %vm828_vm4 = vsmask.f32 (!%p8288_p8), 256 }
  0x1b   : > { %s8287_s13 = sshll.u32 %s487_s9, 3  ;;  %s11080_s9 = smov (!%p8288_p8), 4   ;;  %v519_v6 = vld [vmem:[%s11193_s18 + $0x20] sm:$0xff] (!%p8288_p8)  ;;  %v520_v7 = vld [vmem:[%s11193_s18 + $0x28] sm:$0xff] (!%p8288_p8)  ;;  %v521_v8 = vld [vmem:[%s11193_s18 + $0x30] sm:$0xff] (!%p8288_p8) }
  0x1c   : > { %s11207_s16 = scalar_lea.vmem %s14057_s12, %s8287_s13  ;;  %631 = vrot.lane.b32.xlu0 (!%p8288_p8), %v8291_v1, %s11080_s9  ;;  %v522_v9 = vld [vmem:[%s11193_s18 + $0x38] sm:$0xff] (!%p8288_p8)  ;;  %v523_v10 = vld [vmem:[%s11193_s18 + $0x40] sm:$0xff] (!%p8288_p8)  ;;  %v524_v11 = vld [vmem:[%s11193_s18 + $0x48] sm:$0xff] (!%p8288_p8) }
  0x1d   : > { %v525_v12 = vld [vmem:[%s11193_s18 + $0x50] sm:$0xff] (!%p8288_p8)  ;;  %v8289_v13 = vld [vmem:[%s14130_s24] ss:$0 sm:$0xff] (!%p8288_p8)  ;;  %v526_v14 = vld [vmem:[%s11193_s18 + $0x58] sm:$0xff] (!%p8288_p8) }
  0x1e   : > { %v527_v15 = vld [vmem:[%s11193_s18 + $0x60] sm:$0xff]  ;;  %v528_v16 = vld [vmem:[%s11193_s18 + $0x68] sm:$0xff]  ;;  %v529_v17 = vld [vmem:[%s11193_s18 + $0x70] sm:$0xff]  ;;  %v554_v23 = vmul.f32 %v8289_v13, %v515_v2  ;;  %v555_v24 = vmul.f32 %v8289_v13, %v516_v3  ;;  %v556_v25 = vmul.f32 %v8289_v13, %v517_v4  ;;  %v557_v26 = vmul.f32 %v8289_v13, %v518_v5 }
  0x1f   : > { %v530_v18 = vld [vmem:[%s11193_s18 + $0x78] sm:$0xff]  ;;  %v531_v19 = vld [vmem:[%s11193_s18 + $0x80] sm:$0xff]  ;;  %v532_v20 = vld [vmem:[%s11193_s18 + $0x88] sm:$0xff]  ;;  %v558_v30 = vmul.f32 %v8289_v13, %v519_v6  ;;  %v559_v31 = vmul.f32 %v8289_v13, %v520_v7  ;;  %v560_v32 = vmul.f32 %v8289_v13, %v521_v8  ;;  %v561_v33 = vmul.f32 %v8289_v13, %v522_v9 }
  0x20   : > { %v533_v21 = vld [vmem:[%s11193_s18 + $0x90] sm:$0xff]  ;;  %v534_v22 = vld [vmem:[%s11193_s18 + $0x98] sm:$0xff]  ;;  %v535_v27 = vld [vmem:[%s11193_s18 + $0xa0] sm:$0xff]  ;;  %v562_v37 = vmul.f32 %v8289_v13, %v523_v10  ;;  %v563_v38 = vmul.f32 %v8289_v13, %v524_v11  ;;  %v564_v39 = vmul.f32 %v8289_v13, %v525_v12  ;;  %v565_v40 = vmul.f32 %v8289_v13, %v526_v14 }
  0x21   : > { %v536_v28 = vld [vmem:[%s11193_s18 + $0xa8] sm:$0xff]  ;;  %v537_v29 = vld [vmem:[%s11193_s18 + $0xb0] sm:$0xff]  ;;  %v538_v34 = vld [vmem:[%s11193_s18 + $0xb8] sm:$0xff]  ;;  %v566_v44 = vmul.f32 %v8289_v13, %v527_v15  ;;  %v567_v45 = vmul.f32 %v8289_v13, %v528_v16  ;;  %v568_v46 = vmul.f32 %v8289_v13, %v529_v17  ;;  %v569_v47 = vmul.f32 %v8289_v13, %v530_v18 }
  0x22   : > { %v539_v35 = vld [vmem:[%s11193_s18 + $0xc0] sm:$0xff]  ;;  %v540_v36 = vld [vmem:[%s11193_s18 + $0xc8] sm:$0xff]  ;;  %v541_v41 = vld [vmem:[%s11193_s18 + $0xd0] sm:$0xff]  ;;  %v570_v51 = vmul.f32 %v8289_v13, %v531_v19  ;;  %v571_v52 = vmul.f32 %v8289_v13, %v532_v20  ;;  %v572_v53 = vmul.f32 %v8289_v13, %v533_v21  ;;  %v573_v54 = vmul.f32 %v8289_v13, %v534_v22 }
  0x23   : > { %v542_v42 = vld [vmem:[%s11193_s18 + $0xd8] sm:$0xff]  ;;  %v543_v43 = vld [vmem:[%s11193_s18 + $0xe0] sm:$0xff]  ;;  %v544_v48 = vld [vmem:[%s11193_s18 + $0xe8] sm:$0xff]  ;;  %v574_v55 = vmul.f32 %v8289_v13, %v535_v27  ;;  %v575_v56 = vmul.f32 %v8289_v13, %v536_v28  ;;  %v576_v57 = vmul.f32 %v8289_v13, %v537_v29  ;;  %v577_v58 = vmul.f32 %v8289_v13, %v538_v34 }
  0x24   : > { %v545_v49 = vld [vmem:[%s11193_s18 + $0xf0] sm:$0xff]  ;;  %v546_v50 = vld [vmem:[%s11193_s18 + $0xf8] sm:$0xff]  ;;  %v578_v60 = vmul.f32 %v8289_v13, %v539_v35  ;;  %v579_v61 = vmul.f32 %v8289_v13, %v540_v36  ;;  %v580_v62 = vmul.f32 %v8289_v13, %v541_v41  ;;  %v581_v63 = vmul.f32 %v8289_v13, %v542_v42  ;;  %vm11325_vm5 = vmand %vm827_vm3, %vm828_vm4 }
  0x25   : > { %v582_v0 = vmul.f32 %v8289_v13, %v543_v43  ;;  %v583_v1 = vmul.f32 %v8289_v13, %v544_v48  ;;  %v584_v2 = vmul.f32 %v8289_v13, %v545_v49  ;;  %v585_v3 = vmul.f32 %v8289_v13, %v546_v50 }
  0x26   : > { %v593_v4 = vadd.f32 %v8290_v59, %v554_v23  ;;  %v594_v5 = vadd.f32 %v8290_v59, %v555_v24  ;;  %v595_v6 = vadd.f32 %v8290_v59, %v556_v25  ;;  %v596_v7 = vadd.f32 %v8290_v59, %v557_v26 }
  0x27   : > { %v597_v8 = vadd.f32 %v8290_v59, %v558_v30  ;;  %v598_v9 = vadd.f32 %v8290_v59, %v559_v31  ;;  %v599_v10 = vadd.f32 %v8290_v59, %v560_v32  ;;  %v600_v11 = vadd.f32 %v8290_v59, %v561_v33 }
  0x28   : > { %v601_v12 = vadd.f32 %v8290_v59, %v562_v37  ;;  %v602_v14 = vadd.f32 %v8290_v59, %v563_v38  ;;  %v603_v15 = vadd.f32 %v8290_v59, %v564_v39  ;;  %v604_v16 = vadd.f32 %v8290_v59, %v565_v40 }
  0x29   : > { %v605_v17 = vadd.f32 %v8290_v59, %v566_v44  ;;  %v606_v18 = vadd.f32 %v8290_v59, %v567_v45  ;;  %v607_v19 = vadd.f32 %v8290_v59, %v568_v46  ;;  %v608_v20 = vadd.f32 %v8290_v59, %v569_v47 }
  0x2a   : > { %v609_v21 = vadd.f32 %v8290_v59, %v570_v51  ;;  %v610_v22 = vadd.f32 %v8290_v59, %v571_v52  ;;  %v611_v27 = vadd.f32 %v8290_v59, %v572_v53  ;;  %v612_v13 = vadd.f32 %v8290_v59, %v573_v54 }
  0x2b   : > { %v613_v23 = vadd.f32 %v8290_v59, %v574_v55  ;;  %v614_v24 = vadd.f32 %v8290_v59, %v575_v56  ;;  %v615_v25 = vadd.f32 %v8290_v59, %v576_v57  ;;  %v616_v26 = vadd.f32 %v8290_v59, %v577_v58 }
  0x2c   : > { %v617_v28 = vadd.f32 %v8290_v59, %v578_v60  ;;  %v618_v29 = vadd.f32 %v8290_v59, %v579_v61  ;;  %v619_v30 = vadd.f32 %v8290_v59, %v580_v62  ;;  %v620_v31 = vadd.f32 %v8290_v59, %v581_v63 }
  0x2d   : > { %v621_v32 = vadd.f32 %v8290_v59, %v582_v0  ;;  %v622_v33 = vadd.f32 %v8290_v59, %v583_v1  ;;  %v623_v34 = vadd.f32 %v8290_v59, %v584_v2  ;;  %v624_v35 = vadd.f32 %v8290_v59, %v585_v3 }
  0x8e   : > { %v632_v36 = vpop.permute.xlu0 %631 }
  0x8f   : > { %v635_v37 = vsel %vm634_vm2, %v593_v4, %v632_v36  ;;  %v636_v38 = vsel %vm634_vm2, %v594_v5, %v632_v36  ;;  %v637_v39 = vsel %vm634_vm2, %v595_v6, %v632_v36  ;;  %v638_v40 = vsel %vm634_vm2, %v596_v7, %v632_v36 }
  0x90   : > { %v639_v41 = vsel %vm634_vm2, %v597_v8, %v632_v36  ;;  %v640_v42 = vsel %vm634_vm2, %v598_v9, %v632_v36  ;;  %v641_v43 = vsel %vm634_vm2, %v599_v10, %v632_v36  ;;  %v642_v44 = vsel %vm634_vm2, %v600_v11, %v632_v36 }
  0x91   : > { %v643_v45 = vsel %vm634_vm2, %v601_v12, %v632_v36  ;;  %v644_v46 = vsel %vm634_vm2, %v602_v14, %v632_v36  ;;  %v645_v47 = vsel %vm634_vm2, %v603_v15, %v632_v36  ;;  %v646_v48 = vsel %vm634_vm2, %v604_v16, %v632_v36 }
  0x92   : > { %v647_v49 = vsel %vm634_vm2, %v605_v17, %v632_v36  ;;  %v648_v50 = vsel %vm634_vm2, %v606_v18, %v632_v36  ;;  %v649_v51 = vsel %vm634_vm2, %v607_v19, %v632_v36  ;;  %v650_v52 = vsel %vm634_vm2, %v608_v20, %v632_v36 }
  0x93   : > { %v651_v53 = vsel %vm634_vm2, %v609_v21, %v632_v36  ;;  %v652_v54 = vsel %vm634_vm2, %v610_v22, %v632_v36  ;;  %v653_v55 = vsel %vm634_vm2, %v611_v27, %v632_v36  ;;  %v654_v56 = vsel %vm634_vm2, %v612_v13, %v632_v36 }
  0x94   : > { %v655_v57 = vsel %vm634_vm2, %v613_v23, %v632_v36  ;;  %v656_v58 = vsel %vm634_vm2, %v614_v24, %v632_v36  ;;  %v657_v59 = vsel %vm634_vm2, %v615_v25, %v632_v36  ;;  %v658_v60 = vsel %vm634_vm2, %v616_v26, %v632_v36 }
  0x95   : > { %v659_v61 = vsel %vm634_vm2, %v617_v28, %v632_v36  ;;  %v660_v62 = vsel %vm634_vm2, %v618_v29, %v632_v36  ;;  %v661_v63 = vsel %vm634_vm2, %v619_v30, %v632_v36  ;;  %v662_v0 = vsel %vm634_vm2, %v620_v31, %v632_v36 }
  0x96   : > { %v663_v1 = vsel %vm634_vm2, %v621_v32, %v632_v36  ;;  %v664_v2 = vsel %vm634_vm2, %v622_v33, %v632_v36  ;;  %v665_v3 = vsel %vm634_vm2, %v623_v34, %v632_v36  ;;  %v666_v4 = vsel %vm634_vm2, %v624_v35, %v632_v36 }
  0x97   : > { %v667_v5 = vpack.c.bf16 %v636_v38, %v635_v37  ;;  %v668_v6 = vpack.c.bf16 %v638_v40, %v637_v39  ;;  %v669_v7 = vpack.c.bf16 %v640_v42, %v639_v41  ;;  %v670_v8 = vpack.c.bf16 %v642_v44, %v641_v43 }
  0x98   : > { %v671_v9 = vpack.c.bf16 %v644_v46, %v643_v45  ;;  %v672_v10 = vpack.c.bf16 %v646_v48, %v645_v47  ;;  %v673_v11 = vpack.c.bf16 %v648_v50, %v647_v49  ;;  %v674_v12 = vpack.c.bf16 %v650_v52, %v649_v51 }
  0x99   : > { %v675_v14 = vpack.c.bf16 %v652_v54, %v651_v53  ;;  %v676_v15 = vpack.c.bf16 %v654_v56, %v653_v55  ;;  %v677_v16 = vpack.c.bf16 %v656_v58, %v655_v57  ;;  %v678_v17 = vpack.c.bf16 %v658_v60, %v657_v59 }
  0x9a   : > { %v11290_v18 = vpack.c.bf16 %v660_v62, %v659_v61  ;;  %v11292_v19 = vpack.c.bf16 %v662_v0, %v661_v63  ;;  %v11294_v20 = vpack.c.bf16 %v664_v2, %v663_v1  ;;  %v11296_v21 = vpack.c.bf16 %v666_v4, %v665_v3 }
  0x9b   : > { %v684_v22 = vshrl.u32 %v667_v5, 16  ;;  %v687_v27 = vshll.u32 %v667_v5, 16  ;;  %v691_v13 = vshrl.u32 %v668_v6, 16  ;;  %v694_v23 = vshll.u32 %v668_v6, 16 }
  0x9c   : > { %v698_v24 = vshrl.u32 %v669_v7, 16  ;;  %v701_v25 = vshll.u32 %v669_v7, 16  ;;  %v705_v26 = vshrl.u32 %v670_v8, 16  ;;  %v708_v28 = vshll.u32 %v670_v8, 16 }
  0x9d   : > { %v11298_v29 = vrot.slane %v684_v22, 7  ;;  %v11300_v30 = vrot.slane %v691_v13, 7  ;;  %v712_v31 = vshrl.u32 %v671_v9, 16  ;;  %v715_v32 = vshll.u32 %v671_v9, 16 }
  0x9e   : > { %v11302_v33 = vrot.slane %v698_v24, 7  ;;  %v11304_v34 = vrot.slane %v705_v26, 7  ;;  %v719_v35 = vshrl.u32 %v672_v10, 16  ;;  %v722_v36 = vshll.u32 %v672_v10, 16 }
  0x9f   : > { %v689_v37 = vor.u32 %v687_v27, %v11298_v29  ;;  %v696_v38 = vor.u32 %v694_v23, %v11300_v30  ;;  %v11308_v39 = vrot.slane %v712_v31, 7  ;;  %v726_v40 = vshrl.u32 %v673_v11, 16 }
  0xa0   : > { %v703_v41 = vor.u32 %v701_v25, %v11302_v33  ;;  %v710_v42 = vor.u32 %v708_v28, %v11304_v34  ;;  %v11312_v43 = vrot.slane %v719_v35, 7  ;;  %v729_v44 = vshll.u32 %v673_v11, 16 }
  0xa1   : > { %v717_v45 = vor.u32 %v715_v32, %v11308_v39  ;;  %v728_v46 = vrot.slane %v726_v40, 7  ;;  %v733_v47 = vshrl.u32 %v674_v12, 16  ;;  %v736_v48 = vshll.u32 %v674_v12, 16 }
  0xa2   : > { %v724_v49 = vor.u32 %v722_v36, %v11312_v43  ;;  %v740_v50 = vshrl.u32 %v675_v14, 16  ;;  %v743_v51 = vshll.u32 %v675_v14, 16  ;;  %v747_v52 = vshrl.u32 %v676_v15, 16 }
  0xa3   : > { %v731_v53 = vor.u32 %v729_v44, %v728_v46  ;;  %v735_v54 = vrot.slane %v733_v47, 7  ;;  %v750_v55 = vshll.u32 %v676_v15, 16  ;;  %v754_v56 = vshrl.u32 %v677_v16, 16 }
  0xa4   : > { %v742_v57 = vrot.slane %v740_v50, 7  ;;  %v749_v58 = vrot.slane %v747_v52, 7  ;;  %v757_v59 = vshll.u32 %v677_v16, 16  ;;  %v761_v60 = vshrl.u32 %v678_v17, 16 }
  0xa5   : > { %v738_v61 = vor.u32 %v736_v48, %v735_v54  ;;  %v756_v62 = vrot.slane %v754_v56, 7  ;;  %v764_v63 = vshll.u32 %v678_v17, 16  ;;  %v768_v0 = vshrl.u32 %v11290_v18, 16 }
  0xa6   : > { %v745_v1 = vor.u32 %v743_v51, %v742_v57  ;;  %v752_v2 = vor.u32 %v750_v55, %v749_v58  ;;  %v763_v3 = vrot.slane %v761_v60, 7  ;;  %v771_v4 = vshll.u32 %v11290_v18, 16 }
  0xa7   : > { %v759_v5 = vor.u32 %v757_v59, %v756_v62  ;;  %v770_v6 = vrot.slane %v768_v0, 7  ;;  %v775_v7 = vshrl.u32 %v11292_v19, 16  ;;  %v778_v8 = vshll.u32 %v11292_v19, 16 }
  0xa8   : > { %v766_v9 = vor.u32 %v764_v63, %v763_v3  ;;  %v782_v10 = vshrl.u32 %v11294_v20, 16  ;;  %v785_v11 = vshll.u32 %v11294_v20, 16  ;;  %v789_v12 = vshrl.u32 %v11296_v21, 16 }
  0xa9   : > { %v773_v15 = vor.u32 %v771_v4, %v770_v6  ;;  %v777_v16 = vrot.slane %v775_v7, 7  ;;  %v792_v17 = vshll.u32 %v11296_v21, 16  ;;  %v830_v18 = vsel %vm11325_vm5, 0, %v689_v37 }
  0xaa   : > { %v784_v19 = vrot.slane %v782_v10, 7  ;;  %v791_v22 = vrot.slane %v789_v12, 7  ;;  %v831_v20 = vsel %vm11325_vm5, 0, %v696_v38  ;;  %v832_v27 = vsel %vm11325_vm5, 0, %v703_v41 }
  0xab   : > { %v780_v13 = vor.u32 %v778_v8, %v777_v16  ;;  %v833_v23 = vsel %vm11325_vm5, 0, %v710_v42  ;;  %v11340_v24 = vsel %vm11325_vm5, 0, %v717_v45  ;;  %v11344_v21 = vsel %vm11325_vm5, 0, %v724_v49 }
  0xac   : > { %v787_v25 = vor.u32 %v785_v11, %v784_v19  ;;  %v794_v26 = vor.u32 %v792_v17, %v791_v22  ;;  %v11348_v28 = vsel %vm11325_vm5, 0, %v731_v53  ;;  %v11352_v31 = vsel %vm11325_vm5, 0, %v738_v61 }
  0xad   : > { %v11356_v32 = vsel %vm11325_vm5, 0, %v745_v1  ;;  %v11360_v35 = vsel %vm11325_vm5, 0, %v752_v2  ;;  %v11364_v36 = vsel %vm11325_vm5, 0, %v759_v5  ;;  %v11368_v37 = vsel %vm11325_vm5, 0, %v766_v9 }
  0xae   : > { %v11372_v38 = vsel %vm11325_vm5, 0, %v773_v15  ;;  %v11376_v40 = vsel %vm11325_vm5, 0, %v780_v13  ;;  %v11380_v41 = vsel %vm11325_vm5, 0, %v787_v25  ;;  %v11384_v42 = vsel %vm11325_vm5, 0, %v794_v26 }
  0xaf   : > { %v846_v44 = vsel %vm11325_vm5, %v11298_v29, 0  ;;  %v847_v45 = vsel %vm11325_vm5, %v11300_v30, 0  ;;  %v848_v47 = vsel %vm11325_vm5, %v11302_v33, 0  ;;  %v849_v48 = vsel %vm11325_vm5, %v11304_v34, 0 }
  0xb0   : > { %v850_v49 = vsel %vm11325_vm5, %v11308_v39, 0  ;;  %v851_v29 = vsel %vm11325_vm5, %v11312_v43, 0  ;;  %v11406_v50 = vsel %vm11325_vm5, %v728_v46, 0  ;;  %v11410_v30 = vsel %vm11325_vm5, %v735_v54, 0 }
  0xb1   : > { %v11414_v33 = vsel %vm11325_vm5, %v742_v57, 0  ;;  %v11418_v34 = vsel %vm11325_vm5, %v749_v58, 0  ;;  %v11422_v39 = vsel %vm11325_vm5, %v756_v62, 0  ;;  %v11426_v43 = vsel %vm11325_vm5, %v763_v3, 0 }
  0xb2   : > { %v11430_v46 = vsel %vm11325_vm5, %v770_v6, 0  ;;  %v11434_v51 = vsel %vm11325_vm5, %v777_v16, 0  ;;  %v11438_v52 = vsel %vm11325_vm5, %v784_v19, 0  ;;  %v11442_v53 = vsel %vm11325_vm5, %v791_v22, 0 }
  0xb3   : > { %v8292_v54 = vcombine.low %v830_v18, %v830_v18  ;;  %v8293_v55 = vcombine.high %v830_v18, %v830_v18  ;;  %v8294_v56 = vcombine.low %v846_v44, %v846_v44  ;;  %v8295_v57 = vcombine.low %v831_v20, %v831_v20 }
  0xb4   : > { %v8296_v58 = vcombine.high %v831_v20, %v831_v20  ;;  %v8297_v59 = vcombine.low %v847_v45, %v847_v45  ;;  %v8298_v60 = vcombine.low %v832_v27, %v832_v27  ;;  %v8299_v61 = vcombine.high %v832_v27, %v832_v27 }
  0xb5   : > { %v8300_v62 = vcombine.low %v848_v47, %v848_v47  ;;  %v8301_v63 = vcombine.low %v833_v23, %v833_v23  ;;  %v8302_v0 = vcombine.high %v833_v23, %v833_v23  ;;  %v8303_v1 = vcombine.low %v849_v48, %v849_v48  ;;  %1039 = vst.msk [vmem:[#allocation2 + $0xc] sm:$0xf] %vm499_vm0, %v8292_v54 }
  0xb6   : > { %1040 = vst.msk [vmem:[#allocation2 + $0x10] sm:$0xf] %vm499_vm0, %v8293_v55  ;;  %1042 = vst.msk [vmem:[#allocation2 + $0x18] sm:$0xf] %vm499_vm0, %v8295_v57  ;;  %v8304_v2 = vcombine.low %v11340_v24, %v11340_v24  ;;  %v8305_v3 = vcombine.high %v11340_v24, %v11340_v24  ;;  %v8306_v4 = vcombine.low %v850_v49, %v850_v49 }
  0xb7   : > { %1041 = vst.msk [vmem:[#allocation2 + $0x14] sm:$0x1] %vm502_vm1, %v8294_v56  ;;  %v8307_v5 = vcombine.low %v11344_v21, %v11344_v21  ;;  %1044 = vst.msk [vmem:[#allocation2 + $0x20] sm:$0x1] %vm502_vm1, %v8297_v59  ;;  %v8308_v6 = vcombine.high %v11344_v21, %v11344_v21  ;;  %v8309_v7 = vcombine.low %v851_v29, %v851_v29 }
  0xb8   : > { %1043 = vst.msk [vmem:[#allocation2 + $0x1c] sm:$0xf] %vm499_vm0, %v8296_v58  ;;  %1045 = vst.msk [vmem:[#allocation2 + $0x24] sm:$0xf] %vm499_vm0, %v8298_v60  ;;  %v8310_v8 = vcombine.low %v11348_v28, %v11348_v28  ;;  %v8311_v9 = vcombine.high %v11348_v28, %v11348_v28  ;;  %v8312_v10 = vcombine.low %v11406_v50, %v11406_v50 }
  0xb9   : > { %1046 = vst.msk [vmem:[#allocation2 + $0x28] sm:$0xf] %vm499_vm0, %v8299_v61  ;;  %1048 = vst.msk [vmem:[#allocation2 + $0x30] sm:$0xf] %vm499_vm0, %v8301_v63  ;;  %v8313_v11 = vcombine.low %v11352_v31, %v11352_v31  ;;  %v8314_v12 = vcombine.high %v11352_v31, %v11352_v31  ;;  %v8315_v14 = vcombine.low %v11410_v30, %v11410_v30 }
  0xba   : > { %1047 = vst.msk [vmem:[#allocation2 + $0x2c] sm:$0x1] %vm502_vm1, %v8300_v62  ;;  %1050 = vst.msk [vmem:[#allocation2 + $0x38] sm:$0x1] %vm502_vm1, %v8303_v1  ;;  %v8316_v15 = vcombine.low %v11356_v32, %v11356_v32  ;;  %v8317_v16 = vcombine.high %v11356_v32, %v11356_v32  ;;  %v8318_v17 = vcombine.low %v11414_v33, %v11414_v33 }
  0xbb   : > { %1049 = vst.msk [vmem:[#allocation2 + $0x34] sm:$0xf] %vm499_vm0, %v8302_v0  ;;  %1051 = vst.msk [vmem:[#allocation2 + $0x3c] sm:$0xf] %vm499_vm0, %v8304_v2  ;;  %v8319_v18 = vcombine.low %v11360_v35, %v11360_v35  ;;  %v8320_v19 = vcombine.high %v11360_v35, %v11360_v35  ;;  %v8321_v22 = vcombine.low %v11418_v34, %v11418_v34 }
  0xbc   : > { %1052 = vst.msk [vmem:[#allocation2 + $0x40] sm:$0xf] %vm499_vm0, %v8305_v3  ;;  %1054 = vst.msk [vmem:[#allocation2 + $0x48] sm:$0xf] %vm499_vm0, %v8307_v5  ;;  %v8322_v20 = vcombine.low %v11364_v36, %v11364_v36  ;;  %v8323_v27 = vcombine.high %v11364_v36, %v11364_v36  ;;  %v8324_v13 = vcombine.low %v11422_v39, %v11422_v39 }
  0xbd   : > { %1053 = vst.msk [vmem:[#allocation2 + $0x44] sm:$0x1] %vm502_vm1, %v8306_v4  ;;  %1056 = vst.msk [vmem:[#allocation2 + $0x50] sm:$0x1] %vm502_vm1, %v8309_v7  ;;  %v8325_v23 = vcombine.low %v11368_v37, %v11368_v37  ;;  %v8326_v24 = vcombine.high %v11368_v37, %v11368_v37  ;;  %v8327_v21 = vcombine.low %v11426_v43, %v11426_v43 }
  0xbe   : > { %1055 = vst.msk [vmem:[#allocation2 + $0x4c] sm:$0xf] %vm499_vm0, %v8308_v6  ;;  %1057 = vst.msk [vmem:[#allocation2 + $0x54] sm:$0xf] %vm499_vm0, %v8310_v8  ;;  %v8328_v25 = vcombine.low %v11372_v38, %v11372_v38  ;;  %v8329_v26 = vcombine.high %v11372_v38, %v11372_v38  ;;  %v8330_v28 = vcombine.low %v11430_v46, %v11430_v46 }
  0xbf   : > { %1058 = vst.msk [vmem:[#allocation2 + $0x58] sm:$0xf] %vm499_vm0, %v8311_v9  ;;  %1060 = vst.msk [vmem:[#allocation2 + $0x60] sm:$0xf] %vm499_vm0, %v8313_v11  ;;  %v8331_v31 = vcombine.low %v11376_v40, %v11376_v40  ;;  %v8332_v32 = vcombine.high %v11376_v40, %v11376_v40  ;;  %v8333_v35 = vcombine.low %v11434_v51, %v11434_v51 }
  0xc0   : > { %1059 = vst.msk [vmem:[#allocation2 + $0x5c] sm:$0x1] %vm502_vm1, %v8312_v10  ;;  %1062 = vst.msk [vmem:[#allocation2 + $0x68] sm:$0x1] %vm502_vm1, %v8315_v14  ;;  %v8334_v36 = vcombine.low %v11380_v41, %v11380_v41  ;;  %v8335_v37 = vcombine.high %v11380_v41, %v11380_v41  ;;  %v8336_v38 = vcombine.low %v11438_v52, %v11438_v52 }
  0xc1   : > { %1061 = vst.msk [vmem:[#allocation2 + $0x64] sm:$0xf] %vm499_vm0, %v8314_v12  ;;  %1063 = vst.msk [vmem:[#allocation2 + $0x6c] sm:$0xf] %vm499_vm0, %v8316_v15  ;;  %v8337_v40 = vcombine.low %v11384_v42, %v11384_v42  ;;  %v8338_v44 = vcombine.high %v11384_v42, %v11384_v42  ;;  %v8339_v41 = vcombine.low %v11442_v53, %v11442_v53 }
  0xc2   : > { %1064 = vst.msk [vmem:[#allocation2 + $0x70] sm:$0xf] %vm499_vm0, %v8317_v16  ;;  %1066 = vst.msk [vmem:[#allocation2 + $0x78] sm:$0xf] %vm499_vm0, %v8319_v18 }
  0xc3   : > { %1065 = vst.msk [vmem:[#allocation2 + $0x74] sm:$0x1] %vm502_vm1, %v8318_v17  ;;  %1068 = vst.msk [vmem:[#allocation2 + $0x80] sm:$0x1] %vm502_vm1, %v8321_v22 }
  0xc4   : > { %1067 = vst.msk [vmem:[#allocation2 + $0x7c] sm:$0xf] %vm499_vm0, %v8320_v19  ;;  %1069 = vst.msk [vmem:[#allocation2 + $0x84] sm:$0xf] %vm499_vm0, %v8322_v20 }
  0xc5   : > { %1070 = vst.msk [vmem:[#allocation2 + $0x88] sm:$0xf] %vm499_vm0, %v8323_v27  ;;  %1072 = vst.msk [vmem:[#allocation2 + $0x90] sm:$0xf] %vm499_vm0, %v8325_v23 }
  0xc6   : > { %1071 = vst.msk [vmem:[#allocation2 + $0x8c] sm:$0x1] %vm502_vm1, %v8324_v13  ;;  %1074 = vst.msk [vmem:[#allocation2 + $0x98] sm:$0x1] %vm502_vm1, %v8327_v21 }
  0xc7   : > { %1073 = vst.msk [vmem:[#allocation2 + $0x94] sm:$0xf] %vm499_vm0, %v8326_v24  ;;  %1075 = vst.msk [vmem:[#allocation2 + $0x9c] sm:$0xf] %vm499_vm0, %v8328_v25 }
  0xc8   : > { %1076 = vst.msk [vmem:[#allocation2 + $0xa0] sm:$0xf] %vm499_vm0, %v8329_v26  ;;  %1078 = vst.msk [vmem:[#allocation2 + $0xa8] sm:$0xf] %vm499_vm0, %v8331_v31 }
  0xc9   : > { %1077 = vst.msk [vmem:[#allocation2 + $0xa4] sm:$0x1] %vm502_vm1, %v8330_v28  ;;  %1080 = vst.msk [vmem:[#allocation2 + $0xb0] sm:$0x1] %vm502_vm1, %v8333_v35 }
  0xca   : > { %1079 = vst.msk [vmem:[#allocation2 + $0xac] sm:$0xf] %vm499_vm0, %v8332_v32  ;;  %1081 = vst.msk [vmem:[#allocation2 + $0xb4] sm:$0xf] %vm499_vm0, %v8334_v36 }
  0xcb   : > { %1082 = vst.msk [vmem:[#allocation2 + $0xb8] sm:$0xf] %vm499_vm0, %v8335_v37  ;;  %1084 = vst.msk [vmem:[#allocation2 + $0xc0] sm:$0xf] %vm499_vm0, %v8337_v40 }
  0xcc   : > { %1083 = vst.msk [vmem:[#allocation2 + $0xbc] sm:$0x1] %vm502_vm1, %v8336_v38  ;;  %1086 = vst.msk [vmem:[#allocation2 + $0xc8] sm:$0x1] %vm502_vm1, %v8339_v41 }
  0xcd   : > { %1085 = vst.msk [vmem:[#allocation2 + $0xc4] sm:$0xf] %vm499_vm0, %v8338_v44 }
  0xce PF: > { %p8340_p9 = scmp.ge.s32.totalorder %s11061_s21, 1 }
  0xd0   : > { %1090 = sbr.rel (%p8340_p9) target bundleno = 775 (0x307), region = 76 }
  0xd7   : > { %v10895_v42 = vld [vmem:[%s14049_s4 + $0x14] sm:$0xff]   ;;  %s9042_s15 = smul.u32 192, %s11061_s21  ;;  %v10897_v47 = vld [vmem:[%s14049_s4 + $0x1c] sm:$0xff]   ;;  %v10899_v49 = vld [vmem:[%s14049_s4 + $0x24] ss:$0 sps:$4 sm:$0x33]  }
  0xd8   : > { %v10896_v45 = vld [vmem:[%s14049_s4 + $0x50] sm:$0xff]   ;;  %9471 = vmatprep.subr.bf16.mxu1 %v10895_v42  ;;  %v10898_v48 = vld [vmem:[%s14049_s4 + $0x58] sm:$0xff]   ;;  %vm1659_vm6 = vcmask 1041408   ;;  %v10900_v29 = vld [vmem:[%s14049_s4 + $0x60] ss:$0 sps:$4 sm:$0x33]  }
  0xd9   : > { %9623 = vmatprep.subr.bf16.mxu0 %v10896_v45  ;;  %9472 = vmatpush3.bf16.msra.mxu1 %v10895_v42  ;;  %s11582_s23 = scalar_lea.vmem [#allocation2], %s9042_s15  ;;  %v1661_v33 = vsel %vm1659_vm6, %v10899_v49, 0  ;;  %v11592_v34 = vsel %vm1659_vm6, %v10900_v29, 0  ;;  %v11599_v46 = vld [vmem:[%s14049_s4] sm:$0xff]   ;;  %vm1154_vm7 = vsmask.f32 3328 }
  0xda   : > { %9624 = vmatpush3.bf16.msra.mxu0 %v10896_v45  ;;  %9473 = vmatprep.subr.bf16.mxu1 %v10897_v47  ;;  %v11585_v50 = vld [vmem:[%s11582_s23] sm:$0xf]  ;;  %v11588_v30 = vld [vmem:[%s11582_s23 + $0x4] sm:$0xf]  ;;  %14133 = vst [vmem:[#allocation9_spill] sm:$0xff] %v11592_v34  ;;  %vm1610_vm9 = vcmask 293888  }
  0xdb   : > { %9625 = vmatprep.subr.bf16.mxu0 %v10898_v48  ;;  %v1097_v39 = vld [vmem:[%s11582_s23 + $0x8] sm:$0x1]  ;;  %v1158_v43 = vshrl.u32 %v11585_v50, 16  ;;  %v1161_v51 = vshll.u32 %v11585_v50, 16  ;;  %v1167_v52 = vshll.u32 %v11588_v30, 16  ;;  %v1171_v53 = vshrl.u32 %v11588_v30, 16 }
  0xdc   : > { %v11608_v54 = vld [vmem:[%s14049_s4 + $0x64] sm:$0xff]   ;;  %vm1155_vm8 = vsmask.f32 7440  ;;  %v1177_v56 = vshll.u32 %v1097_v39, 16  ;;  %v11612_v61 = vld [vmem:[%s11582_s23 + $0xc] sm:$0xf] }
  0xdd   : > { %9474 = vmatpush3.bf16.msra.mxu1 %v10897_v47  ;;  %v1160_v55 = vrot.slane %v1158_v43, 4  ;;  %v1163_v57 = vrot.slane %v1161_v51, 5  ;;  %v1169_v58 = vrot.slane %v1167_v52, 5  ;;  %v1173_v59 = vrot.slane %v1171_v53, 4  ;;  %v11615_v62 = vld [vmem:[%s11582_s23 + $0x10] sm:$0xf]  ;;  %vm11626_vm10 = vmor %vm1154_vm7, %vm1155_vm8 }
  0xde   : > { %9626 = vmatpush3.bf16.msra.mxu0 %v10898_v48  ;;  %10843 = vmatprep.subr.msk.bf16.mxu1 %vm1659_vm6, %v10899_v49  ;;  %v1179_v60 = vrot.slane %v1177_v56, 5  ;;  %v11620_v1 = vld [vmem:[%s11582_s23 + $0x14] sm:$0x1]  ;;  %v1182_v2 = vshrl.u32 %v11612_v61, 16  ;;  %v1185_v3 = vshll.u32 %v11612_v61, 16  ;;  %v1191_v5 = vshll.u32 %v11615_v62, 16 }
  0xdf   : > { %10847 = vmatprep.subr.msk.bf16.mxu0 %vm1659_vm6, %v10900_v29  ;;  %v1164_v63 = vor.u32 %v1163_v57, %v1160_v55  ;;  %v1174_v0 = vor.u32 %v1173_v59, %v1169_v58  ;;  %v1195_v6 = vshrl.u32 %v11615_v62, 16  ;;  %v1201_v7 = vshll.u32 %v11620_v1, 16  ;;  %v11639_v14 = vld [vmem:[%s11582_s23 + $0x18] sm:$0xf]  ;;  %v11643_v19 = vld [vmem:[%s11582_s23 + $0x1c] sm:$0xf] }
  0xe0   : > { %v11635_v8 = vcombine.low %v11612_v61, %v11615_v62  ;;  %v1184_v11 = vrot.slane %v1182_v2, 4  ;;  %v1187_v12 = vrot.slane %v1185_v3, 5  ;;  %v1193_v15 = vrot.slane %v1191_v5, 5  ;;  %v11650_v13 = vld [vmem:[%s11582_s23 + $0x20] sm:$0x1]  ;;  %v10905_v57 = vld [vmem:[%s14049_s4 + $0x8] sm:$0xff]  }
  0xe1   : > { %9476 = vmatpush3.bf16.msra.mxu1 %v1661_v33  ;;  %v1165_v9 = vrot.slane %v1164_v63, 4  ;;  %v1175_v10 = vrot.slane %v1174_v0, 4  ;;  %v1197_v16 = vrot.slane %v1195_v6, 4  ;;  %v1203_v17 = vrot.slane %v1201_v7, 5  ;;  %v11656_v28 = vld [vmem:[%s11582_s23 + $0x24] sm:$0xf] }
  0xe2   : > { %9628 = vmatpush3.bf16.msra.mxu0 %v11592_v34  ;;  %9509 = vmatprep.subr.bf16.mxu1 %v11599_v46  ;;  %v2162_v18 = vrot.slane %v11620_v1, 5  ;;  %v1188_v27 = vor.u32 %v1187_v12, %v1184_v11  ;;  %v1206_v23 = vshrl.u32 %v11639_v14, 16  ;;  %v1209_v25 = vshll.u32 %v11639_v14, 16  ;;  %v11661_v37 = vld [vmem:[%s11582_s23 + $0x28] sm:$0xf]  ;;  %s12637_s30 = scalar_lea.vmem [#allocation3], %s9042_s15 }
  0xe3   : > { %9661 = vmatprep.subr.bf16.mxu0 %v11608_v54  ;;  %v1170_v22 = vsel %vm11626_vm10, %v1165_v9, %v1169_v58  ;;  %v1180_v20 = vsel %vm11626_vm10, %v1175_v10, %v1179_v60  ;;  %v1198_v21 = vor.u32 %v1197_v16, %v1193_v15  ;;  %v1215_v26 = vshll.u32 %v11643_v19, 16  ;;  %v11666_v42 = vld [vmem:[%s11582_s23 + $0x2c] sm:$0x1]  ;;  %v11672_v29 = vld [vmem:[%s11582_s23 + $0x30] sm:$0xf] }
  0xe4   : > { %v8349_v24 = vcombine.low %v1170_v22, %v1180_v20  ;;  %v1189_v31 = vrot.slane %v1188_v27, 4  ;;  %v1208_v32 = vrot.slane %v1206_v23, 4  ;;  %v1219_v35 = vshrl.u32 %v11643_v19, 16  ;;  %v11685_v0 = vld [vmem:[%s11582_s23 + $0x34] sm:$0xf] }
  0xe5   : > { %v1225_v36 = vshll.u32 %v11650_v13, 16  ;;  %v1199_v38 = vrot.slane %v1198_v21, 4  ;;  %v1211_v40 = vrot.slane %v1209_v25, 5  ;;  %v1217_v44 = vrot.slane %v1215_v26, 5  ;;  %v11690_v6 = vld [vmem:[%s11582_s23 + $0x38] sm:$0x1] }
  0xe6   : > { %9477 = vmatprep.mubr.msk.bf16.mxu1 %vm1610_vm9, %v8349_v24  ;;  %v2166_v41 = vrot.slane %v11643_v19, 5  ;;  %v1194_v45 = vsel %vm11626_vm10, %v1189_v31, %v1193_v15  ;;  %v1221_v47 = vrot.slane %v1219_v35, 4  ;;  %v2169_v49 = vrot.slane %v11650_v13, 5  ;;  %v11698_v15 = vld [vmem:[%s11582_s23 + $0x3c] sm:$0xf]  ;;  %v10904_v25 = vld [vmem:[%s14049_s4 + $0x6c] sm:$0xff]  }
  0xe7   : > { %v1227_v48 = vrot.slane %v1225_v36, 5  ;;  %v1204_v33 = vsel %vm11626_vm10, %v1199_v38, %v1203_v17  ;;  %v1212_v39 = vor.u32 %v1211_v40, %v1208_v32  ;;  %v1230_v43 = vshrl.u32 %v11656_v28, 16  ;;  %v11701_v16 = vld [vmem:[%s11582_s23 + $0x40] sm:$0xf] }
  0xe8   : > { %v1233_v51 = vshll.u32 %v11656_v28, 16  ;;  %v8350_v52 = vcombine.low %v1194_v45, %v1204_v33  ;;  %v1222_v53 = vor.u32 %v1221_v47, %v1217_v44  ;;  %v1239_v55 = vshll.u32 %v11661_v37, 16  ;;  %v11725_v47 = vld [vmem:[%s11582_s23 + $0x48] sm:$0xf] }
  0xe9   : > { %v1243_v56 = vshrl.u32 %v11661_v37, 16  ;;  %v1213_v58 = vrot.slane %v1212_v39, 4  ;;  %v1232_v59 = vrot.slane %v1230_v43, 4  ;;  %v1249_v63 = vshll.u32 %v11666_v42, 16 }
  0xea   : > { %v1235_v60 = vrot.slane %v1233_v51, 5  ;;  %9629 = vmatprep.mubr.msk.bf16.mxu0 %vm1610_vm9, %v8350_v52  ;;  %9478 = vmatmul.mubr.msk.bf16.vlgmr.msra.gmra.mrb[0].mxu1 %vm1610_vm9, %v8350_v52  ;;  %v1223_v2 = vrot.slane %v1222_v53, 4  ;;  %v1241_v3 = vrot.slane %v1239_v55, 5  ;;  %v1254_v7 = vshrl.u32 %v11672_v29, 16  ;;  %v11732_v51 = vld [vmem:[%s11582_s23 + $0x4c] sm:$0xf] }
  0xeb   : > { %v1245_v5 = vrot.slane %v1243_v56, 4  ;;  %9510 = vmatpush3.bf16.msra.mxu1 %v11599_v46  ;;  %v1218_v9 = vsel %vm11626_vm10, %v1213_v58, %v1217_v44  ;;  %v1251_v11 = vrot.slane %v1249_v63, 5  ;;  %v1257_v12 = vshll.u32 %v11672_v29, 16  ;;  %v11721_v44 = vld [vmem:[%s11582_s23 + $0x44] sm:$0x1] }
  0xec   : > { %v1236_v10 = vor.u32 %v1235_v60, %v1232_v59  ;;  %v1228_v17 = vsel %vm11626_vm10, %v1223_v2, %v1227_v48  ;;  %v1256_v20 = vrot.slane %v1254_v7, 4  ;;  %v1263_v27 = vshll.u32 %v11685_v0, 16  ;;  %9511 = vmatprep.subr.bf16.mxu1 %v10905_v57 }
  0xed   : > { %v1246_v22 = vor.u32 %v1245_v5, %v1241_v3  ;;  %v11706_v46 = vcombine.low %v1218_v9, %v1228_v17  ;;  %v1259_v24 = vrot.slane %v1257_v12, 5  ;;  %v1267_v21 = vshrl.u32 %v11685_v0, 16  ;;  %v11749_v5 = vld [vmem:[%s11582_s23 + $0x50] sm:$0x1] }
  0xee   : > { %v1237_v23 = vrot.slane %v1236_v10, 4  ;;  %v1265_v31 = vrot.slane %v1263_v27, 5  ;;  %v1273_v32 = vshll.u32 %v11690_v6, 16  ;;  %v1278_v35 = vshrl.u32 %v11698_v15, 16 }
  0xef   : > { %14136 = vst [vmem:[#allocation10_spill] sm:$0xff] %v11706_v46  ;;  %v1247_v26 = vrot.slane %v1246_v22, 4  ;;  %9630 = vmatmul.mubr.msk.bf16.vlgmr.msra.gmra.mrb[0].mxu0 %vm1610_vm9, %v11706_v46  ;;  %9481 = vmatprep.mubr.msk.bf16.mxu1 %vm1610_vm9, %v11706_v46  ;;  %v1260_v38 = vor.u32 %v1259_v24, %v1256_v20  ;;  %v1269_v40 = vrot.slane %v1267_v21, 4  ;;  %v1281_v45 = vshll.u32 %v11698_v15, 16 }
  0xf0   : > { %v1242_v36 = vsel %vm11626_vm10, %v1237_v23, %v1241_v3  ;;  %9662 = vmatpush3.bf16.msra.mxu0 %v11608_v54  ;;  %v1275_v33 = vrot.slane %v1273_v32, 5  ;;  %v1280_v39 = vrot.slane %v1278_v35, 4  ;;  %v1287_v43 = vshll.u32 %v11701_v16, 16  ;;  %9512 = vmatpush3.bf16.msra.mxu1 %v10905_v57  ;;  %v10906_v54 = vld [vmem:[%s14049_s4 + $0x74] ss:$0 sps:$4 sm:$0x33]  }
  0xf1   : > { %v1252_v48 = vsel %vm11626_vm10, %v1247_v26, %v1251_v11  ;;  %v1261_v53 = vrot.slane %v1260_v38, 4  ;;  %v1270_v55 = vor.u32 %v1269_v40, %v1265_v31  ;;  %9663 = vmatprep.subr.bf16.mxu0 %v10904_v25  ;;  %v1283_v56 = vrot.slane %v1281_v45, 5  ;;  %v11758_v23 = vld [vmem:[%s11582_s23 + $0x54] sm:$0xf]  ;;  %v11769_v32 = vld [vmem:[%s14049_s4 + $0x78] sm:$0xff]  }
  0xf2   : > { %v11734_v52 = vcombine.low %v1242_v36, %v1252_v48  ;;  %v1289_v58 = vrot.slane %v1287_v43, 5  ;;  %v1291_v59 = vshrl.u32 %v11701_v16, 16  ;;  %v1297_v60 = vshll.u32 %v11721_v44, 16  ;;  %14138 = vst [vmem:[#allocation12_spill] sm:$0xff] %v11758_v23  ;;  %v11775_v45 = vld [vmem:[%s11582_s23 + $0x5c] sm:$0x1] }
  0xf3   : > { %v1302_v63 = vshrl.u32 %v11725_v47, 16  ;;  %v1266_v57 = vsel %vm11626_vm10, %v1261_v53, %v1265_v31  ;;  %v1271_v2 = vrot.slane %v1270_v55, 4  ;;  %v1284_v3 = vor.u32 %v1283_v56, %v1280_v39  ;;  %v11764_v31 = vld [vmem:[%s11582_s23 + $0x58] sm:$0xf] }
  0xf4   : > { %14137 = vst [vmem:[#allocation11_spill] sm:$0xff] %v11734_v52  ;;  %9633 = vmatprep.mubr.msk.bf16.mxu0 %vm1610_vm9, %v11734_v52  ;;  %9482 = vmatmul.mubr.msk.bf16.gmra.mrb[4].mxu1 %vm1610_vm9, %v11734_v52  ;;  %v1305_v7 = vshll.u32 %v11725_v47, 16  ;;  %v1293_v9 = vrot.slane %v1291_v59, 4  ;;  %v1299_v10 = vrot.slane %v1297_v60, 5  ;;  %v1311_v12 = vshll.u32 %v11732_v51, 16  ;;  %14140 = vst [vmem:[#allocation14_spill] sm:$0xff] %v11764_v31 }
  0xf5   : > { %9664 = vmatpush3.bf16.msra.mxu0 %v10904_v25  ;;  %v1304_v11 = vrot.slane %v1302_v63, 4  ;;  %vm2147_vm11 = vcmask 1042432   ;;  %vm2148_vm12 = vcmask 1046532   ;;  %v1276_v17 = vsel %vm11626_vm10, %v1271_v2, %v1275_v33  ;;  %v11792_v2 = vld [vmem:[%s11582_s23 + $0x64] sm:$0xf] }
  0xf6   : > { %v1285_v22 = vrot.slane %v1284_v3, 4  ;;  %v1307_v20 = vrot.slane %v1305_v7, 5  ;;  %v1315_v27 = vshrl.u32 %v11732_v51, 16  ;;  %10849 = vmatprep.subr.msk.bf16.mxu0 %vm1659_vm6, %v10906_v54  ;;  %v11760_v24 = vcombine.low %v1266_v57, %v1276_v17  ;;  %vm11827_vm13 = vmor %vm2147_vm11, %vm2148_vm12 }
  0xf7   : > { %v1294_v21 = vor.u32 %v1293_v9, %v1289_v58  ;;  %v1313_v25 = vrot.slane %v1311_v12, 5  ;;  %v1321_v26 = vshll.u32 %v11749_v5, 16  ;;  %v3083_v40 = vsel %vm1659_vm6, %v10906_v54, 0  ;;  %v11800_v12 = vld [vmem:[%s11582_s23 + $0x68] sm:$0x1] }
  0xf8   : > { %14139 = vst [vmem:[#allocation13_spill] sm:$0xff] %v11760_v24  ;;  %v1290_v35 = vsel %vm11626_vm10, %v1285_v22, %v1289_v58  ;;  %v1308_v36 = vor.u32 %v1307_v20, %v1304_v11  ;;  %v1317_v38 = vrot.slane %v1315_v27, 4  ;;  %9634 = vmatmul.mubr.msk.bf16.gmra.mrb[4].mxu0 %vm1610_vm9, %v11760_v24  ;;  %9485 = vmatprep.mubr.msk.bf16.mxu1 %vm1610_vm9, %v11760_v24  ;;  %v1326_v39 = vshrl.u32 %v11758_v23, 16  ;;  %v11786_v58 = vld [vmem:[%s11582_s23 + $0x60] sm:$0xf] }
  0xf9   : > { %v1295_v48 = vrot.slane %v1294_v21, 4  ;;  %v1323_v33 = vrot.slane %v1321_v26, 5  ;;  %v1329_v43 = vshll.u32 %v11758_v23, 16  ;;  %9666 = vmatpush3.bf16.msra.mxu0 %v3083_v40  ;;  %v1335_v56 = vshll.u32 %v11764_v31, 16 }
  0xfa   : > { %v1309_v53 = vrot.slane %v1308_v36, 4  ;;  %v1318_v55 = vor.u32 %v1317_v38, %v1313_v25  ;;  %v1339_v54 = vshrl.u32 %v11764_v31, 16  ;;  %v1328_v60 = vrot.slane %v1326_v39, 4  ;;  %9699 = vmatprep.subr.bf16.mxu0 %v11769_v32  ;;  %v11806_v27 = vld [vmem:[%s14049_s4 + $0x10] ss:$0 sps:$4 sm:$0x33]  }
  0xfb   : > { %v1300_v59 = vsel %vm11626_vm10, %v1295_v48, %v1299_v10  ;;  %v1331_v63 = vrot.slane %v1329_v43, 5  ;;  %v1345_v57 = vshll.u32 %v11775_v45, 16  ;;  %v1337_v11 = vrot.slane %v1335_v56, 5  ;;  %v11820_v39 = vld [vmem:[%s11582_s23 + $0x6c] sm:$0xf]  ;;  %10844 = vmatprep.subr.msk.bf16.mxu1 %vm1659_vm6, %v11806_v27 }
  0xfc   : > { %v11795_v3 = vcombine.low %v1290_v35, %v1300_v59  ;;  %v1314_v7 = vsel %vm11626_vm10, %v1309_v53, %v1313_v25  ;;  %v1319_v9 = vrot.slane %v1318_v55, 4  ;;  %v1341_v10 = vrot.slane %v1339_v54, 4 }
  0xfd   : > { %v1332_v17 = vor.u32 %v1331_v63, %v1328_v60  ;;  %v1347_v22 = vrot.slane %v1345_v57, 5  ;;  %v1350_v20 = vshrl.u32 %v11786_v58, 16  ;;  %v1353_v25 = vshll.u32 %v11786_v58, 16 }
  0xfe   : > { %14141 = vst [vmem:[#allocation15_spill] sm:$0xff] %v11795_v3  ;;  %9637 = vmatprep.mubr.msk.bf16.mxu0 %vm1610_vm9, %v11795_v3  ;;  %9486 = vmatmul.mubr.msk.bf16.gmra.mrb[8].mxu1 %vm1610_vm9, %v11795_v3  ;;  %v1324_v21 = vsel %vm11626_vm10, %v1319_v9, %v1323_v33  ;;  %v1359_v26 = vshll.u32 %v11792_v2, 16  ;;  %v1363_v35 = vshrl.u32 %v11792_v2, 16  ;;  %v1342_v40 = vor.u32 %v1341_v10, %v1337_v11 }
  0xff   : > { %v11817_v36 = vcombine.low %v1314_v7, %v1324_v21  ;;  %v1333_v38 = vrot.slane %v1332_v17, 4  ;;  %v1352_v48 = vrot.slane %v1350_v20, 4  ;;  %v1355_v43 = vrot.slane %v1353_v25, 5  ;;  %v11840_v17 = vld [vmem:[%s11582_s23 + $0x70] sm:$0xf] }
 0x100   : > { %v1361_v53 = vrot.slane %v1359_v26, 5  ;;  %v1365_v33 = vrot.slane %v1363_v35, 4  ;;  %v1369_v55 = vshll.u32 %v11800_v12, 16  ;;  %v1343_v59 = vrot.slane %v1342_v40, 4  ;;  %v11848_v25 = vld [vmem:[%s11582_s23 + $0x74] sm:$0x1] }
 0x101   : > { %14142 = vst [vmem:[#allocation16_spill] sm:$0xff] %v11817_v36  ;;  %9638 = vmatmul.mubr.msk.bf16.gmra.mrb[8].mxu0 %vm1610_vm9, %v11817_v36  ;;  %9489 = vmatprep.mubr.msk.bf16.mxu1 %vm1610_vm9, %v11817_v36  ;;  %v1338_v54 = vsel %vm11626_vm10, %v1333_v38, %v1337_v11  ;;  %v8420_v60 = vrot.slane %v11612_v61, 9  ;;  %v2159_v63 = vrot.slane %v11615_v62, 5  ;;  %v1356_v57 = vor.u32 %v1355_v43, %v1352_v48 }
 0x102   : > { %v1366_v7 = vor.u32 %v1365_v33, %v1361_v53  ;;  %v1371_v9 = vrot.slane %v1369_v55, 5  ;;  %v1374_v10 = vshrl.u32 %v11820_v39, 16  ;;  %v1348_v20 = vsel %vm11626_vm10, %v1343_v59, %v1347_v22  ;;  %v11860_v33 = vld [vmem:[%s11582_s23 + $0x78] sm:$0xf]  ;;  %v11874_v59 = vld [vmem:[%s11582_s23 + $0x7c] sm:$0xf] }
 0x103   : > { %v2160_v21 = vsel %vm11827_vm13, %v8420_v60, %v2159_v63  ;;  %v2161_v11 = vrot.slane %v2159_v63, 4  ;;  %v1377_v61 = vshll.u32 %v11820_v39, 16  ;;  %v11851_v62 = vcombine.low %v1338_v54, %v1348_v20 }
 0x104   : > { %v1357_v26 = vrot.slane %v1356_v57, 4  ;;  %v1367_v35 = vrot.slane %v1366_v7, 4  ;;  %v1376_v38 = vrot.slane %v1374_v10, 4  ;;  %v1383_v48 = vshll.u32 %v11840_v17, 16  ;;  %v11879_v10 = vld [vmem:[%s11582_s23 + $0x80] sm:$0x1] }
 0x105   : > { %14145 = vst [vmem:[#allocation17_spill] sm:$0xff] %v11851_v62  ;;  %v2163_v40 = vsel %vm11827_vm13, %v2161_v11, %v2162_v18  ;;  %v1379_v22 = vrot.slane %v1377_v61, 5  ;;  %v1387_v43 = vshrl.u32 %v11840_v17, 16  ;;  %9641 = vmatprep.mubr.msk.bf16.mxu0 %vm1610_vm9, %v11851_v62  ;;  %v1393_v54 = vshll.u32 %v11848_v25, 16 }
 0x106   : > { %9490 = vmatmul.mubr.msk.bf16.gmra.mrb[12].mxu1 %vm1610_vm9, %v11851_v62  ;;  %v1362_v1 = vsel %vm11626_vm10, %v1357_v26, %v1361_v53  ;;  %v1372_v18 = vsel %vm11626_vm10, %v1367_v35, %v1371_v9  ;;  %v11870_v55 = vcombine.low %v2160_v21, %v2163_v40  ;;  %v1385_v57 = vrot.slane %v1383_v48, 5 }
 0x107   : > { %v11876_v60 = vcombine.low %v1362_v1, %v1372_v18  ;;  %v1380_v63 = vor.u32 %v1379_v22, %v1376_v38  ;;  %v1389_v7 = vrot.slane %v1387_v43, 4  ;;  %v1395_v20 = vrot.slane %v1393_v54, 5  ;;  %v11903_v43 = vld [vmem:[%s11582_s23 + $0x84] sm:$0xf] }
 0x108   : > { %14146 = vst [vmem:[#allocation18_spill] sm:$0xff] %v11870_v55  ;;  %v8421_v53 = vrot.slane %v11639_v14, 9  ;;  %v2168_v9 = vrot.slane %v2166_v41, 4  ;;  %v1398_v21 = vshrl.u32 %v11860_v33, 16  ;;  %v1401_v26 = vshll.u32 %v11860_v33, 16 }
 0x109   : > { %14147 = vst [vmem:[#allocation19_spill] sm:$0xff] %v11876_v60  ;;  %9642 = vmatmul.mubr.msk.bf16.gmra.mrb[12].mxu0 %vm1610_vm9, %v11876_v60  ;;  %9493 = vmatprep.mubr.msk.bf16.mxu1 %vm1610_vm9, %v11876_v60  ;;  %v1381_v11 = vrot.slane %v1380_v63, 4  ;;  %v1390_v61 = vor.u32 %v1389_v7, %v1385_v57  ;;  %v1407_v35 = vshll.u32 %v11874_v59, 16  ;;  %v1411_v48 = vshrl.u32 %v11874_v59, 16  ;;  %v11916_v60 = vld [vmem:[%s11582_s23 + $0x88] sm:$0xf] }
 0x10a   : > { %9667 = vmatprep.mubr.msk.bf16.mxu0 %vm1610_vm9, %v11870_v55  ;;  %v2167_v38 = vsel %vm11827_vm13, %v8421_v53, %v2166_v41  ;;  %v2170_v40 = vsel %vm11827_vm13, %v2168_v9, %v2169_v49  ;;  %v1400_v22 = vrot.slane %v1398_v21, 4  ;;  %v1403_v63 = vrot.slane %v1401_v26, 5 }
 0x10b   : > { %v1386_v1 = vsel %vm11626_vm10, %v1381_v11, %v1385_v57  ;;  %v1391_v18 = vrot.slane %v1390_v61, 4  ;;  %v11907_v54 = vcombine.low %v2167_v38, %v2170_v40  ;;  %v1409_v41 = vrot.slane %v1407_v35, 5  ;;  %v11919_v57 = vld [vmem:[%s11582_s23 + $0x8c] sm:$0x1] }
 0x10c   : > { %v1413_v7 = vrot.slane %v1411_v48, 4  ;;  %v1417_v13 = vshll.u32 %v11879_v10, 16  ;;  %v8422_v49 = vrot.slane %v11656_v28, 9  ;;  %v1404_v9 = vor.u32 %v1403_v63, %v1400_v22 }
 0x10d   : > { %14148 = vst [vmem:[#allocation20_spill] sm:$0xff] %v11907_v54  ;;  %v1396_v53 = vsel %vm11626_vm10, %v1391_v18, %v1395_v20  ;;  %v2173_v21 = vrot.slane %v11661_v37, 5  ;;  %v2176_v34 = vrot.slane %v11666_v42, 5  ;;  %v1422_v35 = vshrl.u32 %v11903_v43, 16  ;;  %v10909_v42 = vld [vmem:[%s14049_s4 + $0x80] sm:$0xff]  }
 0x10e   : > { %v11921_v11 = vcombine.low %v1386_v1, %v1396_v53  ;;  %v1414_v61 = vor.u32 %v1413_v7, %v1409_v41  ;;  %v1419_v26 = vrot.slane %v1417_v13, 5  ;;  %v1405_v38 = vrot.slane %v1404_v9, 4  ;;  %v11935_v7 = vld [vmem:[%s11582_s23 + $0x90] sm:$0xf]  ;;  %v11938_v13 = vld [vmem:[%s11582_s23 + $0x94] sm:$0xf] }
 0x10f   : > { %v2174_v20 = vsel %vm11827_vm13, %v8422_v49, %v2173_v21  ;;  %v2175_v40 = vrot.slane %v2173_v21, 4  ;;  %v1425_v22 = vshll.u32 %v11903_v43, 16  ;;  %v1424_v1 = vrot.slane %v1422_v35, 4  ;;  %v11955_v35 = vld [vmem:[%s14049_s4 + $0x88] ss:$0 sps:$4 sm:$0x33]  }
 0x110   : > { %14149 = vst [vmem:[#allocation21_spill] sm:$0xff] %v11921_v11  ;;  %9494 = vmatmul.mubr.msk.bf16.gmra.mrb[16].mxu1 %vm1610_vm9, %v11921_v11  ;;  %v1415_v48 = vrot.slane %v1414_v61, 4  ;;  %v1431_v18 = vshll.u32 %v11916_v60, 16  ;;  %v1435_v63 = vshrl.u32 %v11916_v60, 16  ;;  %v1410_v49 = vsel %vm11626_vm10, %v1405_v38, %v1409_v41  ;;  %v11950_v61 = vld [vmem:[%s14049_s4 + $0x28] sm:$0xff]  }
 0x111   : > { %9668 = vmatmul.mubr.msk.bf16.vlgmr.msra.gmra.mrb[0].mxu0 %vm1610_vm9, %v11907_v54  ;;  %v2177_v53 = vsel %vm11827_vm13, %v2175_v40, %v2176_v34  ;;  %v1427_v9 = vrot.slane %v1425_v22, 5  ;;  %v1441_v21 = vshll.u32 %v11919_v57, 16  ;;  %v8423_v36 = vrot.slane %v11672_v29, 9 }
 0x112   : > { %9700 = vmatpush3.bf16.msra.mxu0 %v11769_v32  ;;  %v1420_v41 = vsel %vm11626_vm10, %v1415_v48, %v1419_v26  ;;  %v11960_v34 = vcombine.low %v2174_v20, %v2177_v53  ;;  %v1433_v38 = vrot.slane %v1431_v18, 5  ;;  %v1437_v40 = vrot.slane %v1435_v63, 4  ;;  %v11972_v20 = vld [vmem:[%s11582_s23 + $0x98] sm:$0x1] }
 0x113   : > { %v11962_v22 = vcombine.low %v1410_v49, %v1420_v41  ;;  %v1428_v11 = vor.u32 %v1427_v9, %v1424_v1  ;;  %v1443_v62 = vrot.slane %v1441_v21, 5  ;;  %9701 = vmatprep.subr.bf16.mxu0 %v10909_v42  ;;  %v2180_v32 = vrot.slane %v11685_v0, 5 }
 0x114   : > { %14150 = vst [vmem:[#allocation22_spill] sm:$0xff] %v11960_v34  ;;  %9671 = vmatprep.mubr.msk.bf16.mxu0 %vm1610_vm9, %v11960_v34  ;;  %v1438_v3 = vor.u32 %v1437_v40, %v1433_v38  ;;  %v2183_v24 = vrot.slane %v11690_v6, 5  ;;  %v1968_v26 = vsel %vm1659_vm6, %v11806_v27, 0  ;;  %v1446_v1 = vshrl.u32 %v11935_v7, 16  ;;  %v11986_v40 = vld [vmem:[%s11582_s23 + $0x9c] sm:$0xf] }
 0x115   : > { %14151 = vst [vmem:[#allocation23_spill] sm:$0xff] %v11962_v22  ;;  %9497 = vmatprep.mubr.msk.bf16.mxu1 %vm1610_vm9, %v11962_v22  ;;  %v1429_v48 = vrot.slane %v1428_v11, 4  ;;  %9514 = vmatpush3.bf16.msra.mxu1 %v1968_v26  ;;  %v1449_v18 = vshll.u32 %v11935_v7, 16  ;;  %v1455_v63 = vshll.u32 %v11938_v13, 16  ;;  %v2181_v6 = vsel %vm11827_vm13, %v8423_v36, %v2180_v32  ;;  %v11996_v26 = vld [vmem:[%s11582_s23 + $0xa0] sm:$0xf] }
 0x116   : > { %v1439_v49 = vrot.slane %v1438_v3, 4  ;;  %v2182_v27 = vrot.slane %v2180_v32, 4  ;;  %v1459_v53 = vshrl.u32 %v11938_v13, 16  ;;  %9702 = vmatpush3.bf16.msra.mxu0 %v10909_v42  ;;  %9547 = vmatprep.subr.bf16.mxu1 %v11950_v61  ;;  %v1448_v9 = vrot.slane %v1446_v1, 4 }
 0x117   : > { %v1434_v11 = vsel %vm11626_vm10, %v1429_v48, %v1433_v38  ;;  %v1451_v21 = vrot.slane %v1449_v18, 5  ;;  %v1457_v41 = vrot.slane %v1455_v63, 5  ;;  %10850 = vmatprep.subr.msk.bf16.mxu0 %vm1659_vm6, %v11955_v35  ;;  %v1465_v32 = vshll.u32 %v11972_v20, 16  ;;  %v12004_v63 = vld [vmem:[%s11582_s23 + $0xa4] sm:$0x1] }
 0x118   : > { %v1444_v3 = vsel %vm11626_vm10, %v1439_v49, %v1443_v62  ;;  %v2184_v36 = vsel %vm11827_vm13, %v2182_v27, %v2183_v24  ;;  %v1461_v42 = vrot.slane %v1459_v53, 4  ;;  %v8424_v18 = vrot.slane %v11698_v15, 9 }
 0x119   : > { %v11998_v38 = vcombine.low %v1434_v11, %v1444_v3  ;;  %v12000_v48 = vcombine.low %v2181_v6, %v2184_v36  ;;  %v1452_v1 = vor.u32 %v1451_v21, %v1448_v9  ;;  %v1467_v52 = vrot.slane %v1465_v32, 5 }
 0x11a   : > { %v1462_v22 = vor.u32 %v1461_v42, %v1457_v41  ;;  %v2187_v62 = vrot.slane %v11701_v16, 5  ;;  %v2190_v24 = vrot.slane %v11721_v44, 5  ;;  %v1470_v6 = vshrl.u32 %v11986_v40, 16 }
 0x11b   : > { %14152 = vst [vmem:[#allocation24_spill] sm:$0xff] %v11998_v38  ;;  %14153 = vst [vmem:[#allocation25_spill] sm:$0xff] %v12000_v48  ;;  %9498 = vmatmul.mubr.msk.bf16.gmra.mrb[20].mxu1 %vm1610_vm9, %v11998_v38  ;;  %9672 = vmatmul.mubr.msk.bf16.gmra.mrb[4].mxu0 %vm1610_vm9, %v12000_v48  ;;  %v1453_v49 = vrot.slane %v1452_v1, 4  ;;  %v1473_v27 = vshll.u32 %v11986_v40, 16  ;;  %v1479_v53 = vshll.u32 %v11996_v26, 16  ;;  %v1483_v21 = vshrl.u32 %v11996_v26, 16 }
 0x11c   : > { %v1463_v11 = vrot.slane %v1462_v22, 4  ;;  %v2188_v9 = vsel %vm11827_vm13, %v8424_v18, %v2187_v62  ;;  %v2189_v44 = vrot.slane %v2187_v62, 4  ;;  %v1472_v36 = vrot.slane %v1470_v6, 4  ;;  %v12026_v18 = vld [vmem:[%s11582_s23 + $0xa8] sm:$0xf] }
 0x11d   : > { %v1458_v3 = vsel %vm11626_vm10, %v1453_v49, %v1457_v41  ;;  %v1475_v42 = vrot.slane %v1473_v27, 5  ;;  %v1481_v32 = vrot.slane %v1479_v53, 5  ;;  %v1485_v22 = vrot.slane %v1483_v21, 4  ;;  %v12029_v62 = vld [vmem:[%s11582_s23 + $0xac] sm:$0xf] }
 0x11e   : > { %v1468_v1 = vsel %vm11626_vm10, %v1463_v11, %v1467_v52  ;;  %v2191_v38 = vsel %vm11827_vm13, %v2189_v44, %v2190_v24  ;;  %v1489_v46 = vshll.u32 %v12004_v63, 16  ;;  %v8425_v6 = vrot.slane %v11725_v47, 9  ;;  %v12043_v44 = vld [vmem:[%s11582_s23 + $0xb0] sm:$0x1] }
 0x11f   : > { %v12031_v48 = vcombine.low %v1458_v3, %v1468_v1  ;;  %v12033_v41 = vcombine.low %v2188_v9, %v2191_v38  ;;  %v1476_v49 = vor.u32 %v1475_v42, %v1472_v36  ;;  %v1486_v27 = vor.u32 %v1485_v22, %v1481_v32 }
 0x120   : > { %v1491_v52 = vrot.slane %v1489_v46, 5  ;;  %v2194_v53 = vrot.slane %v11732_v51, 5  ;;  %v2197_v24 = vrot.slane %v11749_v5, 5  ;;  %v1494_v38 = vshrl.u32 %v12026_v18, 16 }
 0x121   : > { %14154 = vst [vmem:[#allocation26_spill] sm:$0xff] %v12031_v48  ;;  %14155 = vst [vmem:[#allocation27_spill] sm:$0xff] %v12033_v41  ;;  %9501 = vmatprep.mubr.msk.bf16.mxu1 %vm1610_vm9, %v12031_v48  ;;  %9675 = vmatprep.mubr.msk.bf16.mxu0 %vm1610_vm9, %v12033_v41  ;;  %v1477_v11 = vrot.slane %v1476_v49, 4  ;;  %v1497_v9 = vshll.u32 %v12026_v18, 16  ;;  %v1503_v46 = vshll.u32 %v12029_v62, 16  ;;  %v1487_v21 = vrot.slane %v1486_v27, 4 }
 0x122   : > { %v2195_v5 = vsel %vm11827_vm13, %v8425_v6, %v2194_v53  ;;  %v2196_v3 = vrot.slane %v2194_v53, 4  ;;  %v1507_v36 = vshrl.u32 %v12029_v62, 16  ;;  %v1496_v1 = vrot.slane %v1494_v38, 4  ;;  %v12059_v6 = vld [vmem:[%s11582_s23 + $0xb4] sm:$0xf] }
 0x123   : > { %v1482_v42 = vsel %vm11626_vm10, %v1477_v11, %v1481_v32  ;;  %v1499_v22 = vrot.slane %v1497_v9, 5  ;;  %v1505_v49 = vrot.slane %v1503_v46, 5  ;;  %v1492_v48 = vsel %vm11626_vm10, %v1487_v21, %v1491_v52  ;;  %v12062_v53 = vld [vmem:[%s11582_s23 + $0xb8] sm:$0xf] }
 0x124   : > { %v2198_v41 = vsel %vm11827_vm13, %v2196_v3, %v2197_v24  ;;  %v1509_v27 = vrot.slane %v1507_v36, 4  ;;  %v1513_v34 = vshll.u32 %v12043_v44, 16  ;;  %v12064_v54 = vcombine.low %v1482_v42, %v1492_v48  ;;  %v12076_v48 = vld [vmem:[%s11582_s23 + $0xbc] sm:$0x1] }
 0x125   : > { %v12066_v32 = vcombine.low %v2195_v5, %v2198_v41  ;;  %v1500_v11 = vor.u32 %v1499_v22, %v1496_v1  ;;  %v8426_v38 = vrot.slane %v11758_v23, 9  ;;  %v2201_v46 = vrot.slane %v11764_v31, 5 }
 0x126   : > { %14156 = vst [vmem:[#allocation28_spill] sm:$0xff] %v12064_v54  ;;  %v1510_v9 = vor.u32 %v1509_v27, %v1505_v49  ;;  %v1515_v52 = vrot.slane %v1513_v34, 5  ;;  %v2204_v24 = vrot.slane %v11775_v45, 5  ;;  %9502 = vmatmul.mubr.msk.bf16.gmra.mrb[24].mxu1 %vm1610_vm9, %v12064_v54  ;;  %v1518_v41 = vshrl.u32 %v12059_v6, 16 }
 0x127   : > { %14157 = vst [vmem:[#allocation29_spill] sm:$0xff] %v12066_v32  ;;  %9676 = vmatmul.mubr.msk.bf16.gmra.mrb[8].mxu0 %vm1610_vm9, %v12066_v32  ;;  %v1501_v21 = vrot.slane %v1500_v11, 4  ;;  %v1521_v5 = vshll.u32 %v12059_v6, 16  ;;  %v1527_v3 = vshll.u32 %v12062_v53, 16  ;;  %v2202_v36 = vsel %vm11827_vm13, %v8426_v38, %v2201_v46 }
 0x128   : > { %v1511_v34 = vrot.slane %v1510_v9, 4  ;;  %v2203_v45 = vrot.slane %v2201_v46, 4  ;;  %v1531_v42 = vshrl.u32 %v12062_v53, 16  ;;  %v1520_v22 = vrot.slane %v1518_v41, 4 }
 0x129   : > { %v1506_v1 = vsel %vm11626_vm10, %v1501_v21, %v1505_v49  ;;  %v1523_v27 = vrot.slane %v1521_v5, 5  ;;  %v1529_v11 = vrot.slane %v1527_v3, 5  ;;  %v1537_v9 = vshll.u32 %v12076_v48, 16 }
 0x12a   : > { %v1516_v54 = vsel %vm11626_vm10, %v1511_v34, %v1515_v52  ;;  %v2205_v32 = vsel %vm11827_vm13, %v2203_v45, %v2204_v24  ;;  %v1533_v55 = vrot.slane %v1531_v42, 4  ;;  %v8427_v31 = vrot.slane %v11786_v58, 9 }
 0x12b   : > { %v12091_v23 = vcombine.low %v1506_v1, %v1516_v54  ;;  %v12093_v38 = vcombine.low %v2202_v36, %v2205_v32  ;;  %v1524_v46 = vor.u32 %v1523_v27, %v1520_v22  ;;  %v1539_v21 = vrot.slane %v1537_v9, 5 }
 0x12c   : > { %v1534_v49 = vor.u32 %v1533_v55, %v1529_v11  ;;  %v2208_v41 = vrot.slane %v11792_v2, 5  ;;  %v2211_v5 = vrot.slane %v11800_v12, 5  ;;  %v8428_v54 = vrot.slane %v11820_v39, 9 }
 0x12d   : > { %9505 = vmatprep.mubr.msk.bf16.mxu1 %vm1610_vm9, %v12091_v23  ;;  %9679 = vmatprep.mubr.msk.bf16.mxu0 %vm1610_vm9, %v12093_v38  ;;  %v1525_v52 = vrot.slane %v1524_v46, 4  ;;  %v2215_v32 = vrot.slane %v11840_v17, 5  ;;  %v2218_v24 = vrot.slane %v11848_v25, 5  ;;  %v8384_v12 = vcombine.low %v11585_v50, %v11588_v30 }
 0x12e   : > { %v1535_v3 = vrot.slane %v1534_v49, 4  ;;  %v2209_v55 = vsel %vm11827_vm13, %v8427_v31, %v2208_v41  ;;  %v2210_v34 = vrot.slane %v2208_v41, 4  ;;  %v2222_v1 = vrot.slane %v11874_v59, 5 }
 0x12f   : > { %v1530_v36 = vsel %vm11626_vm10, %v1525_v52, %v1529_v11  ;;  %v2216_v45 = vsel %vm11827_vm13, %v8428_v54, %v2215_v32  ;;  %v2217_v42 = vrot.slane %v2215_v32, 4  ;;  %v8429_v31 = vrot.slane %v11860_v33, 9 }
 0x130   : > { %v1540_v25 = vsel %vm11626_vm10, %v1535_v3, %v1539_v21  ;;  %v2212_v22 = vsel %vm11827_vm13, %v2210_v34, %v2211_v5  ;;  %v2225_v27 = vrot.slane %v11879_v10, 5  ;;  %v2224_v46 = vrot.slane %v2222_v1, 4  ;;  %v12139_v5 = vld [vmem:[%s14049_s4 + $0x8c] sm:$0xff]  }
 0x131   : > { %v12120_v50 = vcombine.low %v1530_v36, %v1540_v25  ;;  %v12122_v30 = vcombine.low %v2209_v55, %v2212_v22  ;;  %v2219_v11 = vsel %vm11827_vm13, %v2217_v42, %v2218_v24  ;;  %v8430_v49 = vrot.slane %v11903_v43, 9 }
 0x132   : > { %v12126_v9 = vcombine.low %v2216_v45, %v2219_v11  ;;  %v2229_v21 = vrot.slane %v11916_v60, 5  ;;  %v2232_v10 = vrot.slane %v11919_v57, 5  ;;  %v2236_v41 = vrot.slane %v11938_v13, 5 }
 0x133   : > { %9506 = vmatmul.mubr.msk.bf16.gmra.mrb[28].mxu1 %vm1610_vm9, %v12120_v50  ;;  %9680 = vmatmul.mubr.msk.bf16.gmra.mrb[12].mxu0 %vm1610_vm9, %v12122_v30  ;;  %v2223_v52 = vsel %vm11827_vm13, %v8429_v31, %v2222_v1  ;;  %v2226_v54 = vsel %vm11827_vm13, %v2224_v46, %v2225_v27  ;;  %v3308_v57 = vsel %vm1659_vm6, %v11955_v35, 0  ;;  %v2243_v55 = vrot.slane %v11996_v26, 5  ;;  %v10917_v31 = vld [vmem:[%s14049_s4 + $0x30] sm:$0xff]  }
 0x134   : > { %9515 = vmatprep.mubr.msk.bf16.mxu1 %vm1610_vm9, %v8384_v12  ;;  %9683 = vmatprep.mubr.msk.bf16.mxu0 %vm1610_vm9, %v12126_v9  ;;  %v2231_v32 = vrot.slane %v2229_v21, 4  ;;  %v2230_v24 = vsel %vm11827_vm13, %v8430_v49, %v2229_v21  ;;  %v12155_v34 = vcombine.low %v2223_v52, %v2226_v54  ;;  %v8431_v12 = vrot.slane %v11935_v7, 9 }
 0x135   : > { %9704 = vmatpush3.bf16.msra.mxu0 %v3308_v57  ;;  %v2238_v36 = vrot.slane %v2236_v41, 4  ;;  %v2239_v45 = vrot.slane %v11972_v20, 5  ;;  %v12162_v35 = vcombine.low %v11639_v14, %v11643_v19  ;;  %v8432_v42 = vrot.slane %v11986_v40, 9 }
 0x136   : > { %v2233_v3 = vsel %vm11827_vm13, %v2231_v32, %v2232_v10  ;;  %9737 = vmatprep.subr.bf16.mxu0 %v12139_v5  ;;  %v2245_v25 = vrot.slane %v2243_v55, 4  ;;  %v2246_v22 = vrot.slane %v12004_v63, 5  ;;  %v2237_v14 = vsel %vm11827_vm13, %v8431_v12, %v2236_v41 }
 0x137   : > { %v12165_v1 = vcombine.low %v2230_v24, %v2233_v3  ;;  %v2240_v19 = vsel %vm11827_vm13, %v2238_v36, %v2239_v45  ;;  %v2250_v20 = vrot.slane %v12029_v62, 5  ;;  %v12185_v63 = vcombine.low %v11656_v28, %v11661_v37  ;;  %v10925_v37 = vld [vmem:[%s14049_s4 + $0x38] ss:$0 sps:$4 sm:$0x33]  }
 0x138   : > { %v2244_v27 = vsel %vm11827_vm13, %v8432_v42, %v2243_v55  ;;  %v2247_v11 = vsel %vm11827_vm13, %v2245_v25, %v2246_v22  ;;  %v2257_v46 = vrot.slane %v12062_v53, 5  ;;  %v12200_v28 = vcombine.low %v11820_v39, %v11840_v17 }
 0x139   : > { %v12205_v49 = vcombine.low %v2237_v14, %v2240_v19  ;;  %v12209_v21 = vcombine.low %v11672_v29, %v11685_v0  ;;  %v8433_v10 = vrot.slane %v12026_v18, 9  ;;  %v12215_v39 = vcombine.low %v11860_v33, %v11874_v59 }
 0x13a   : > { %v12219_v17 = vcombine.low %v11903_v43, %v11916_v60  ;;  %v12223_v41 = vcombine.low %v11935_v7, %v11938_v13  ;;  %v12225_v52 = vcombine.low %v2244_v27, %v2247_v11  ;;  %v12229_v29 = vcombine.low %v11986_v40, %v11996_v26  ;;  %v12242_v7 = vld [vmem:[%s11582_s23 + $0xc4] sm:$0xf]  ;;  %v12249_v40 = vld [vmem:[%s14049_s4 + $0x3c] sm:$0xff]  }
 0x13b   : > { %9516 = vmatmul.mubr.msk.bf16.vlgmr.msra.gmra.mrb[0].mxu1 %vm1610_vm9, %v11635_v8  ;;  %9684 = vmatmul.mubr.msk.bf16.gmra.mrb[16].mxu0 %vm1610_vm9, %v12155_v34  ;;  %v12233_v0 = vcombine.low %v12026_v18, %v12029_v62  ;;  %v12237_v33 = vcombine.low %v12059_v6, %v12062_v53  ;;  %v8434_v59 = vrot.slane %v12059_v6, 9  ;;  %v2259_v60 = vrot.slane %v2257_v46, 4  ;;  %v12269_v53 = vld [vmem:[%s11582_s23 + $0xc0] sm:$0xf] }
 0x13c   : > { %9548 = vmatpush3.bf16.msra.mxu1 %v11950_v61  ;;  %9519 = vmatprep.mubr.msk.bf16.mxu1 %vm1610_vm9, %v12162_v35  ;;  %v12196_v61 = vcombine.low %v11786_v58, %v11792_v2  ;;  %v2253_v58 = vrot.slane %v12043_v44, 5  ;;  %v2252_v2 = vrot.slane %v2250_v20, 4  ;;  %v2260_v43 = vrot.slane %v12076_v48, 5  ;;  %v1145_v48 = vld [vmem:[%s11582_s23 + $0xc8] sm:$0x1] }
 0x13d   : > { %9687 = vmatprep.mubr.msk.bf16.mxu0 %vm1610_vm9, %v12165_v1  ;;  %9549 = vmatprep.subr.bf16.mxu1 %v10917_v31  ;;  %v2380_v13 = vsel %vm1659_vm6, %v10925_v37, 0  ;;  %v2251_v26 = vsel %vm11827_vm13, %v8433_v10, %v2250_v20  ;;  %v3050_v62 = vrot.slane %v12242_v7, 5  ;;  %v2258_v44 = vsel %vm11827_vm13, %v8434_v59, %v2257_v46  ;;  %v14159_v10 = vld [vmem:[#allocation12_spill] sm:$0xff] }
 0x13e   : > { %v2254_v18 = vsel %vm11827_vm13, %v2252_v2, %v2253_v58  ;;  %v2261_v6 = vsel %vm11827_vm13, %v2259_v60, %v2260_v43  ;;  %v12274_v54 = vcombine.low %v11698_v15, %v11701_v16  ;;  %v12280_v57 = vcombine.low %v11725_v47, %v11732_v51 }
 0x13f   : > { %v12276_v32 = vcombine.low %v2251_v26, %v2254_v18  ;;  %v2801_v24 = vshrl.u32 %v12269_v53, 16  ;;  %v2804_v3 = vshll.u32 %v12269_v53, 16  ;;  %v2810_v55 = vshll.u32 %v12242_v7, 16  ;;  %v10932_v26 = vld [vmem:[%s14049_s4 + $0x9c] ss:$0 sps:$4 sm:$0x33]  }
 0x140   : > { %9550 = vmatpush3.bf16.msra.mxu1 %v10917_v31  ;;  %v2814_v12 = vshrl.u32 %v12242_v7, 16  ;;  %v12287_v36 = vcombine.low %v2258_v44, %v2261_v6  ;;  %v8525_v15 = vrot.slane %v12269_v53, 9  ;;  %v3052_v16 = vrot.slane %v3050_v62, 4  ;;  %v10941_v6 = vld [vmem:[%s11582_s23 + $0x8] sm:$0x1] }
 0x141   : > { %10845 = vmatprep.subr.msk.bf16.mxu1 %vm1659_vm6, %v10925_v37  ;;  %v3053_v45 = vrot.slane %v1145_v48, 5  ;;  %v2803_v42 = vrot.slane %v2801_v24, 4  ;;  %v2806_v25 = vrot.slane %v2804_v3, 5  ;;  %v2812_v47 = vrot.slane %v2810_v55, 5  ;;  %v14158_v37 = vld [vmem:[#allocation14_spill] sm:$0xff] }
 0x142   : > { %v2816_v51 = vrot.slane %v2814_v12, 4  ;;  %v2820_v14 = vshll.u32 %v1145_v48, 16  ;;  %v3051_v19 = vsel %vm11827_vm13, %v8525_v15, %v3050_v62  ;;  %v12304_v58 = vcombine.low %v14159_v10, %v14158_v37  ;;  %v10940_v62 = vld [vmem:[%s11582_s23 + $0x4] sm:$0xf]  ;;  %v10942_v24 = vld [vmem:[%s11582_s23] sm:$0xf] }
 0x143   : > { %9520 = vmatmul.mubr.msk.bf16.gmra.mrb[4].mxu1 %vm1610_vm9, %v12185_v63  ;;  %9688 = vmatmul.mubr.msk.bf16.gmra.mrb[20].mxu0 %vm1610_vm9, %v12205_v49  ;;  %v2807_v22 = vor.u32 %v2806_v25, %v2803_v42  ;;  %v3054_v20 = vsel %vm11827_vm13, %v3052_v16, %v3053_v45  ;;  %v3555_v18 = vsel %vm1659_vm6, %v10932_v26, 0  ;;  %v2152_v44 = vrot.slane %v10940_v62, 5  ;;  %v10933_v45 = vld [vmem:[%s14049_s4 + $0x44] sm:$0xff]   ;;  %v14160_v42 = vld [vmem:[#allocation18_spill] sm:$0xff]  ;;  %v14168_v10 = vld [vmem:[#allocation13_spill] sm:$0xff] }
 0x144   : > { %9523 = vmatprep.mubr.msk.bf16.mxu1 %vm1610_vm9, %v12209_v21  ;;  %9691 = vmatprep.mubr.msk.bf16.mxu0 %vm1610_vm9, %v12225_v52  ;;  %v2817_v31 = vor.u32 %v2816_v51, %v2812_v47  ;;  %v2822_v46 = vrot.slane %v2820_v14, 5  ;;  %v12306_v2 = vcombine.low %v3051_v19, %v3054_v20  ;;  %v2155_v48 = vrot.slane %v10941_v6, 5  ;;  %v14161_v25 = vld [vmem:[#allocation20_spill] sm:$0xff]  ;;  %v14164_v19 = vld [vmem:[#allocation27_spill] sm:$0xff]  ;;  %v14165_v20 = vld [vmem:[#allocation29_spill] sm:$0xff] }
 0x145   : > { %9552 = vmatpush3.bf16.msra.mxu1 %v2380_v13  ;;  %v2808_v27 = vrot.slane %v2807_v22, 4  ;;  %v10928_v13 = vld [vmem:[%s14049_s4 + $0x94] sm:$0xff]   ;;  %v8419_v3 = vrot.slane %v10942_v24, 9  ;;  %v2154_v55 = vrot.slane %v2152_v44, 4  ;;  %v12402_v14 = vcombine.low %v12269_v53, %v12242_v7  ;;  %v14167_v37 = vld [vmem:[#allocation11_spill] sm:$0xff]  ;;  %v14175_v6 = vld [vmem:[#allocation24_spill] sm:$0xff] }
 0x146   : > { %9585 = vmatprep.subr.bf16.mxu1 %v12249_v40  ;;  %v2818_v11 = vrot.slane %v2817_v31, 4  ;;  %v14162_v22 = vld [vmem:[#allocation22_spill] sm:$0xff]  ;;  %v10943_v31 = vld [vmem:[%s14049_s4 + $0x50] sm:$0xff]   ;;  %vm4251_vm14 = vcmask 1040384   ;;  %vm4252_vm15 = vsmask.f32 256 }
 0x147   : > { %v2813_v59 = vsel %vm11626_vm10, %v2808_v27, %v2812_v47  ;;  %v2153_v12 = vsel %vm11827_vm13, %v8419_v3, %v2152_v44  ;;  %v2156_v15 = vsel %vm11827_vm13, %v2154_v55, %v2155_v48  ;;  %v10937_v47 = vld [vmem:[%s14049_s4 + $0x4c] ss:$0 sps:$4 sm:$0x33]   ;;  %v14166_v53 = vld [vmem:[#allocation10_spill] sm:$0xff]  ;;  %v14173_v62 = vld [vmem:[#allocation21_spill] sm:$0xff] }
 0x148   : > { %v2823_v60 = vsel %vm11626_vm10, %v2818_v11, %v2822_v46  ;;  %v8440_v16 = vcombine.low %v2153_v12, %v2156_v15  ;;  %v2605_v51 = vsel %vm1659_vm6, %v10937_v47, 0  ;;  %v12413_v27 = vld [vmem:[%s11582_s23 + $0xcc] sm:$0xf]  ;;  %v12416_v11 = vld [vmem:[%s11582_s23 + $0xd0] sm:$0xf]  ;;  %v14174_v44 = vld [vmem:[#allocation23_spill] sm:$0xff] }
 0x149   : > { %v12312_v43 = vcombine.low %v2813_v59, %v2823_v60  ;;  %v8556_v7 = vcombine.low %v12413_v27, %v12416_v11  ;;  %v10938_v46 = vld [vmem:[%s14049_s4 + $0xa8] sm:$0xff]   ;;  %v10939_v59 = vld [vmem:[%s14049_s4 + $0xb0] ss:$0 sps:$4 sm:$0x33]   ;;  %v3504_v48 = vshrl.u32 %v12413_v27, 16  ;;  %v3507_v24 = vshll.u32 %v12413_v27, 16  ;;  %vm12619_vm0 = vmand %vm4251_vm14, %vm4252_vm15 }
 0x14a   : > { %v3786_v60 = vsel %vm1659_vm6, %v10939_v59, 0  ;;  %v3517_v3 = vshrl.u32 %v12416_v11, 16  ;;  %v14176_v55 = vld [vmem:[#allocation26_spill] sm:$0xff]  ;;  %v3753_v4 = vrot.slane %v12416_v11, 5 }
 0x14b   : > { %9524 = vmatmul.mubr.msk.bf16.gmra.mrb[8].mxu1 %vm1610_vm9, %v12274_v54  ;;  %9692 = vmatmul.mubr.msk.bf16.gmra.mrb[24].mxu0 %vm1610_vm9, %v12276_v32  ;;  %v3506_v12 = vrot.slane %v3504_v48, 4  ;;  %v3509_v15 = vrot.slane %v3507_v24, 5 }
 0x14c   : > { %9527 = vmatprep.mubr.msk.bf16.mxu1 %vm1610_vm9, %v12280_v57  ;;  %9695 = vmatprep.mubr.msk.bf16.mxu0 %vm1610_vm9, %v12287_v36 }
 0x153   : > { %9528 = vmatmul.mubr.msk.bf16.gmra.mrb[12].mxu1 %vm1610_vm9, %v12304_v58  ;;  %9696 = vmatmul.mubr.msk.bf16.gmra.mrb[28].mxu0 %vm1610_vm9, %v12306_v2 }
 0x154   : > { %9531 = vmatprep.mubr.msk.bf16.mxu1 %vm1610_vm9, %v12196_v61  ;;  %9705 = vmatprep.mubr.msk.bf16.mxu0 %vm1610_vm9, %v12162_v35 }
 0x15b   : > { %9532 = vmatmul.mubr.msk.bf16.gmra.mrb[16].mxu1 %vm1610_vm9, %v12200_v28  ;;  %9706 = vmatmul.mubr.msk.bf16.vlgmr.msra.gmra.mrb[0].mxu0 %vm1610_vm9, %v12185_v63 }
 0x15c   : > { %9738 = vmatpush3.bf16.msra.mxu0 %v12139_v5  ;;  %9535 = vmatprep.mubr.msk.bf16.mxu1 %vm1610_vm9, %v12215_v39  ;;  %v10936_v5 = vld [vmem:[%s14049_s4 + $0xa0] sm:$0xff]  }
 0x15d   : > { %9709 = vmatprep.mubr.msk.bf16.mxu0 %vm1610_vm9, %v12209_v21  ;;  %9739 = vmatprep.subr.bf16.mxu0 %v10928_v13 }
 0x160   : > { %9740 = vmatpush3.bf16.msra.mxu0 %v10928_v13  ;;  %v14169_v13 = vld [vmem:[#allocation15_spill] sm:$0xff] }
 0x161   : > { %10851 = vmatprep.subr.msk.bf16.mxu0 %vm1659_vm6, %v10932_v26  ;;  %v14170_v26 = vld [vmem:[#allocation16_spill] sm:$0xff] }
 0x163   : > { %9536 = vmatmul.mubr.msk.bf16.gmra.mrb[20].mxu1 %vm1610_vm9, %v12219_v17  ;;  %9710 = vmatmul.mubr.msk.bf16.gmra.mrb[4].mxu0 %vm1610_vm9, %v12274_v54 }
 0x164   : > { %9539 = vmatprep.mubr.msk.bf16.mxu1 %vm1610_vm9, %v12223_v41  ;;  %9713 = vmatprep.mubr.msk.bf16.mxu0 %vm1610_vm9, %v12280_v57 }
 0x165   : > { %9742 = vmatpush3.bf16.msra.mxu0 %v3555_v18  ;;  %v14171_v18 = vld [vmem:[#allocation17_spill] sm:$0xff] }
 0x166   : > { %9775 = vmatprep.subr.bf16.mxu0 %v10936_v5 }
 0x16b   : > { %9540 = vmatmul.mubr.msk.bf16.gmra.mrb[24].mxu1 %vm1610_vm9, %v12229_v29  ;;  %9714 = vmatmul.mubr.msk.bf16.gmra.mrb[8].mxu0 %vm1610_vm9, %v12304_v58 }
 0x16c   : > { %9543 = vmatprep.mubr.msk.bf16.mxu1 %vm1610_vm9, %v12233_v0  ;;  %9717 = vmatprep.mubr.msk.bf16.mxu0 %vm1610_vm9, %v12196_v61 }
 0x173   : > { %9544 = vmatmul.mubr.msk.bf16.gmra.mrb[28].mxu1 %vm1610_vm9, %v12237_v33  ;;  %9718 = vmatmul.mubr.msk.bf16.gmra.mrb[12].mxu0 %vm1610_vm9, %v12200_v28 }
 0x174   : > { %9553 = vmatprep.mubr.msk.bf16.mxu1 %vm1610_vm9, %v8440_v16  ;;  %9721 = vmatprep.mubr.msk.bf16.mxu0 %vm1610_vm9, %v12215_v39 }
 0x17b   : > { %9554 = vmatmul.mubr.msk.bf16.vlgmr.msra.gmra.mrb[0].mxu1 %vm1610_vm9, %v14160_v42  ;;  %9722 = vmatmul.mubr.msk.bf16.gmra.mrb[16].mxu0 %vm1610_vm9, %v12219_v17  ;;  %v1148_v42 = vld [vmem:[%s11582_s23 + $0xd4] sm:$0x1] }
 0x17c   : > { %9586 = vmatpush3.bf16.msra.mxu1 %v12249_v40  ;;  %9557 = vmatprep.mubr.msk.bf16.mxu1 %vm1610_vm9, %v14161_v25  ;;  %v14163_v40 = vld [vmem:[#allocation25_spill] sm:$0xff] }
 0x17d   : > { %9725 = vmatprep.mubr.msk.bf16.mxu0 %vm1610_vm9, %v12223_v41  ;;  %9587 = vmatprep.subr.bf16.mxu1 %v10933_v45 }
 0x180   : > { %9588 = vmatpush3.bf16.msra.mxu1 %v10933_v45  ;;  %v3519_v45 = vrot.slane %v3517_v3, 4 }
 0x181   : > { %10846 = vmatprep.subr.msk.bf16.mxu1 %vm1659_vm6, %v10937_v47  ;;  %v14177_v47 = vld [vmem:[#allocation28_spill] sm:$0xff] }
 0x183   : > { %9558 = vmatmul.mubr.msk.bf16.gmra.mrb[4].mxu1 %vm1610_vm9, %v14162_v22  ;;  %9726 = vmatmul.mubr.msk.bf16.gmra.mrb[20].mxu0 %vm1610_vm9, %v12229_v29 }
 0x184   : > { %9561 = vmatprep.mubr.msk.bf16.mxu1 %vm1610_vm9, %v14163_v40  ;;  %9729 = vmatprep.mubr.msk.bf16.mxu0 %vm1610_vm9, %v12233_v0 }
 0x185   : > { %9590 = vmatpush3.bf16.msra.mxu1 %v2605_v51  ;;  %v3510_v51 = vor.u32 %v3509_v15, %v3506_v12 }
 0x186   : > { %10325 = vmatprep.subr.bf16.mxu1 %v10943_v31 }
 0x18b   : > { %9562 = vmatmul.mubr.msk.bf16.gmra.mrb[8].mxu1 %vm1610_vm9, %v14164_v19  ;;  %9730 = vmatmul.mubr.msk.bf16.gmra.mrb[24].mxu0 %vm1610_vm9, %v12237_v33 }
 0x18c   : > { %9565 = vmatprep.mubr.msk.bf16.mxu1 %vm1610_vm9, %v14165_v20  ;;  %9733 = vmatprep.mubr.msk.bf16.mxu0 %vm1610_vm9, %v12402_v14 }
 0x193   : > { %9566 = vmatmul.mubr.msk.bf16.gmra.mrb[12].mxu1 %vm1610_vm9, %v12093_v38  ;;  %9734 = vmatmul.mubr.msk.bf16.gmra.mrb[28].mxu0 %vm1610_vm9, %v8556_v7  ;;  %v3523_v7 = vshll.u32 %v1148_v42, 16 }
 0x194   : > { %9569 = vmatprep.mubr.msk.bf16.mxu1 %vm1610_vm9, %v12122_v30  ;;  %9743 = vmatprep.mubr.msk.bf16.mxu0 %vm1610_vm9, %v14166_v53  ;;  %v14178_v53 = vld [vmem:[#allocation9_spill] sm:$0xff] }
 0x19b   : > { %9570 = vmatmul.mubr.msk.bf16.gmra.mrb[16].mxu1 %vm1610_vm9, %v12126_v9  ;;  %9744 = vmatmul.mubr.msk.bf16.vlgmr.msra.gmra.mrb[0].mxu0 %vm1610_vm9, %v14167_v37 }
 0x19c   : > { %9776 = vmatpush3.bf16.msra.mxu0 %v10936_v5  ;;  %9573 = vmatprep.mubr.msk.bf16.mxu1 %vm1610_vm9, %v12155_v34  ;;  %v14172_v5 = vld [vmem:[#allocation19_spill] sm:$0xff] }
 0x19d   : > { %9747 = vmatprep.mubr.msk.bf16.mxu0 %vm1610_vm9, %v14168_v10  ;;  %9777 = vmatprep.subr.bf16.mxu0 %v10938_v46  ;;  %v3525_v10 = vrot.slane %v3523_v7, 5 }
 0x1a0   : > { %9778 = vmatpush3.bf16.msra.mxu0 %v10938_v46  ;;  %v3511_v46 = vrot.slane %v3510_v51, 4 }
 0x1a1   : > { %10852 = vmatprep.subr.msk.bf16.mxu0 %vm1659_vm6, %v10939_v59 }
 0x1a3   : > { %9574 = vmatmul.mubr.msk.bf16.gmra.mrb[20].mxu1 %vm1610_vm9, %v12165_v1  ;;  %9748 = vmatmul.mubr.msk.bf16.gmra.mrb[4].mxu0 %vm1610_vm9, %v14169_v13 }
 0x1a4   : > { %9577 = vmatprep.mubr.msk.bf16.mxu1 %vm1610_vm9, %v12205_v49  ;;  %9751 = vmatprep.mubr.msk.bf16.mxu0 %vm1610_vm9, %v14170_v26 }
 0x1a5   : > { %9780 = vmatpush3.bf16.msra.mxu0 %v3786_v60 }
 0x1ab   : > { %9578 = vmatmul.mubr.msk.bf16.gmra.mrb[24].mxu1 %vm1610_vm9, %v12225_v52  ;;  %9752 = vmatmul.mubr.msk.bf16.gmra.mrb[8].mxu0 %vm1610_vm9, %v14171_v18 }
 0x1ac   : > { %9581 = vmatprep.mubr.msk.bf16.mxu1 %vm1610_vm9, %v12276_v32  ;;  %9755 = vmatprep.mubr.msk.bf16.mxu0 %vm1610_vm9, %v14172_v5 }
 0x1b3   : > { %9582 = vmatmul.mubr.msk.bf16.gmra.mrb[28].mxu1 %vm1610_vm9, %v12287_v36  ;;  %9756 = vmatmul.mubr.msk.bf16.gmra.mrb[12].mxu0 %vm1610_vm9, %v14173_v62 }
 0x1b4   : > { %9591 = vmatprep.mubr.msk.bf16.mxu1 %vm1610_vm9, %v11635_v8  ;;  %9759 = vmatprep.mubr.msk.bf16.mxu0 %vm1610_vm9, %v14174_v44  ;;  %v3513_v8 = vshll.u32 %v12416_v11, 16 }
 0x1b6   : > { %v3515_v16 = vrot.slane %v3513_v8, 5 }
 0x1bb   : > { %9592 = vmatmul.mubr.msk.bf16.vlgmr.msra.gmra.mrb[0].mxu1 %vm1610_vm9, %v12162_v35  ;;  %9760 = vmatmul.mubr.msk.bf16.gmra.mrb[16].mxu0 %vm1610_vm9, %v14175_v6  ;;  %v10944_v35 = vld [vmem:[%s14049_s4 + $0x58] sm:$0xff]  }
 0x1bc   : > { %10328 = vmatpush3.bf16.msra.mxu1 %v10943_v31  ;;  %9595 = vmatprep.mubr.msk.bf16.mxu1 %vm1610_vm9, %v12185_v63  ;;  %v10945_v63 = vld [vmem:[%s14049_s4 + $0x60] ss:$0 sps:$4 sm:$0x33]   ;;  %v3520_v31 = vor.u32 %v3519_v45, %v3515_v16 }
 0x1bd   : > { %9763 = vmatprep.mubr.msk.bf16.mxu0 %vm1610_vm9, %v14176_v55  ;;  %10326 = vmatprep.subr.bf16.mxu1 %v10944_v35 }
 0x1be   : > { %v3521_v37 = vrot.slane %v3520_v31, 4 }
 0x1c0   : > { %10329 = vmatpush3.bf16.msra.mxu1 %v10944_v35 }
 0x1c1   : > { %10848 = vmatprep.subr.msk.bf16.mxu1 %vm1659_vm6, %v10945_v63 }
 0x1c3   : > { %9596 = vmatmul.mubr.msk.bf16.gmra.mrb[4].mxu1 %vm1610_vm9, %v12209_v21  ;;  %9764 = vmatmul.mubr.msk.bf16.gmra.mrb[20].mxu0 %vm1610_vm9, %v14177_v47  ;;  %v3516_v21 = vsel %vm11626_vm10, %v3511_v46, %v3515_v16 }
 0x1c4   : > { %9599 = vmatprep.mubr.msk.bf16.mxu1 %vm1610_vm9, %v12274_v54  ;;  %9767 = vmatprep.mubr.msk.bf16.mxu0 %vm1610_vm9, %v12091_v23  ;;  %v3526_v54 = vsel %vm11626_vm10, %v3521_v37, %v3525_v10 }
 0x1c5   : > { %10330 = vmatpush3.bf16.msra.mxu1 %v14178_v53  ;;  %v8581_v59 = vcombine.low %v3516_v21, %v3526_v54 }
 0x1cb   : > { %9600 = vmatmul.mubr.msk.bf16.gmra.mrb[8].mxu1 %vm1610_vm9, %v12280_v57  ;;  %9768 = vmatmul.mubr.msk.bf16.gmra.mrb[24].mxu0 %vm1610_vm9, %v12120_v50 }
 0x1cc   : > { %9603 = vmatprep.mubr.msk.bf16.mxu1 %vm1610_vm9, %v12304_v58  ;;  %9771 = vmatprep.mubr.msk.bf16.mxu0 %vm1610_vm9, %v12312_v43 }
 0x1d3   : > { %9604 = vmatmul.mubr.msk.bf16.gmra.mrb[12].mxu1 %vm1610_vm9, %v12196_v61  ;;  %9772 = vmatmul.mubr.msk.bf16.gmra.mrb[28].mxu0 %vm1610_vm9, %v8581_v59 }
 0x1d4   : > { %9607 = vmatprep.mubr.msk.bf16.mxu1 %vm1610_vm9, %v12200_v28  ;;  %9781 = vmatprep.mubr.msk.bf16.mxu0 %vm1610_vm9, %v14161_v25 }
 0x1db   : > { %9608 = vmatmul.mubr.msk.bf16.gmra.mrb[16].mxu1 %vm1610_vm9, %v12215_v39  ;;  %9782 = vmatmul.mubr.msk.bf16.vlgmr.msra.gmra.mrb[0].mxu0 %vm1610_vm9, %v14162_v22 }
 0x1dc   : > { %9611 = vmatprep.mubr.msk.bf16.mxu1 %vm1610_vm9, %v12219_v17  ;;  %9785 = vmatprep.mubr.msk.bf16.mxu0 %vm1610_vm9, %v14163_v40  ;;  %v12604_v40 = vld [vmem:[%s14051_s6] ss:$0 sm:$0xff] }
 0x1e3   : > { %9612 = vmatmul.mubr.msk.bf16.gmra.mrb[20].mxu1 %vm1610_vm9, %v12223_v41  ;;  %9786 = vmatmul.mubr.msk.bf16.gmra.mrb[4].mxu0 %vm1610_vm9, %v14164_v19 }
 0x1e4   : > { %9615 = vmatprep.mubr.msk.bf16.mxu1 %vm1610_vm9, %v12229_v29  ;;  %9789 = vmatprep.mubr.msk.bf16.mxu0 %vm1610_vm9, %v14165_v20 }
 0x1eb   : > { %9616 = vmatmul.mubr.msk.bf16.gmra.mrb[24].mxu1 %vm1610_vm9, %v12233_v0  ;;  %9790 = vmatmul.mubr.msk.bf16.gmra.mrb[8].mxu0 %vm1610_vm9, %v12093_v38  ;;  %v8601_v38 = vrot.slane %v12413_v27, 9 }
 0x1ec   : > { %9619 = vmatprep.mubr.msk.bf16.mxu1 %vm1610_vm9, %v12237_v33  ;;  %9793 = vmatprep.mubr.msk.bf16.mxu0 %vm1610_vm9, %v12122_v30  ;;  %v3755_v30 = vrot.slane %v3753_v4, 4 }
 0x1f3   : > { %9620 = vmatmul.mubr.msk.bf16.gmra.mrb[28].mxu1 %vm1610_vm9, %v12402_v14  ;;  %9794 = vmatmul.mubr.msk.bf16.gmra.mrb[12].mxu0 %vm1610_vm9, %v12126_v9  ;;  %v3756_v9 = vrot.slane %v1148_v42, 5 }
 0x1f4   : > { %9645 = vmatprep.mubr.msk.bf16.mxu1 %vm1610_vm9, %v14173_v62  ;;  %9797 = vmatprep.mubr.msk.bf16.mxu0 %vm1610_vm9, %v12155_v34  ;;  %v3754_v34 = vsel %vm11827_vm13, %v8601_v38, %v3753_v4 }
 0x1fb   : > { %9646 = vmatmul.mubr.msk.bf16.vlgmr.msra.gmra.mrb[16].mxu1 %vm1610_vm9, %v14174_v44  ;;  %9798 = vmatmul.mubr.msk.bf16.gmra.mrb[16].mxu0 %vm1610_vm9, %v12165_v1  ;;  %v3757_v1 = vsel %vm11827_vm13, %v3755_v30, %v3756_v9 }
 0x1fc   : > { %9649 = vmatprep.mubr.msk.bf16.mxu1 %vm1610_vm9, %v14175_v6  ;;  %9801 = vmatprep.mubr.msk.bf16.mxu0 %vm1610_vm9, %v12205_v49  ;;  %v8607_v61 = vcombine.low %v3754_v34, %v3757_v1 }
 0x203   : > { %9650 = vmatmul.mubr.msk.bf16.gmra.mrb[20].mxu1 %vm1610_vm9, %v14176_v55  ;;  %9802 = vmatmul.mubr.msk.bf16.gmra.mrb[20].mxu0 %vm1610_vm9, %v12225_v52 }
 0x204   : > { %9653 = vmatprep.mubr.msk.bf16.mxu1 %vm1610_vm9, %v14177_v47  ;;  %9805 = vmatprep.mubr.msk.bf16.mxu0 %vm1610_vm9, %v12276_v32 }
 0x20b   : > { %9654 = vmatmul.mubr.msk.bf16.gmra.mrb[24].mxu1 %vm1610_vm9, %v12091_v23  ;;  %9806 = vmatmul.mubr.msk.bf16.gmra.mrb[24].mxu0 %vm1610_vm9, %v12287_v36 }
 0x20c   : > { %9657 = vmatprep.mubr.msk.bf16.mxu1 %vm1610_vm9, %v12120_v50  ;;  %9809 = vmatprep.mubr.msk.bf16.mxu0 %vm1610_vm9, %v12306_v2 }
 0x213   : > { %9658 = vmatmul.mubr.msk.bf16.gmra.mrb[28].mxu1 %vm1610_vm9, %v12312_v43  ;;  %9810 = vmatmul.mubr.msk.bf16.gmra.mrb[28].mxu0 %vm1610_vm9, %v8607_v61  ;;  %v12599_v43 = vld [vmem:[%s14050_s5] ss:$0 sm:$0xff] }
 0x28e   : > { %v9593_v23 = vpop.f32.mrb[0].mxu1 }
 0x28f   : > { %v2641_v28 = vpop.f32.mrb[1].mxu1 }
 0x290   : > { %v9594_v49 = vpop.f32.mrb[2].mxu1 }
 0x291   : > { %v2644_v39 = vpop.f32.mrb[3].mxu1 }
 0x296   : > { %v9597_v50 = vpop.f32.mrb[4].mxu1 }
 0x297   : > { %v2657_v17 = vpop.f32.mrb[5].mxu1 }
 0x298   : > { %v9598_v41 = vpop.f32.mrb[6].mxu1 }
 0x299   : > { %v2660_v52 = vpop.f32.mrb[7].mxu1 }
 0x29e   : > { %v12580_v29 = vpop.f32.mrb[8].mxu1 }
 0x29f   : > { %v12582_v0 = vpop.f32.mrb[9].mxu1 }
 0x2a0   : > { %v12584_v56 = vpop.f32.mrb[10].mxu1 }
 0x2a1   : > { %v12586_v33 = vpop.f32.mrb[11].mxu1 }
 0x2a6   : > { %v12588_v32 = vpop.f32.mrb[12].mxu1 }
 0x2a7   : > { %v12590_v57 = vpop.f32.mrb[13].mxu1 }
 0x2a8   : > { %v12592_v36 = vpop.f32.mrb[14].mxu1 }
 0x2a9   : > { %v12594_v58 = vpop.f32.mrb[15].mxu1 }
 0x2ae   : > { %v9783_v2 = vpop.f32.mrb[0].mxu0 }
 0x2af   : > { %v10331_v25 = vadd.f32 %v9783_v2, %v9593_v23  ;;  %v3822_v22 = vpop.f32.mrb[1].mxu0 }
 0x2b0   : > { %v10332_v14 = vadd.f32 %v3822_v22, %v2641_v28  ;;  %v9784_v19 = vpop.f32.mrb[2].mxu0 }
 0x2b1   : > { %v3990_v20 = vmul.f32 %v10331_v25, %v12599_v43  ;;  %v10333_v27 = vadd.f32 %v9784_v19, %v9594_v49  ;;  %v3825_v11 = vpop.f32.mrb[3].mxu0 }
 0x2b2   : > { %v3988_v60 = vmul.f32 %v10332_v14, %v12599_v43  ;;  %v10334_v13 = vadd.f32 %v3825_v11, %v2644_v39 }
 0x2b3   : > { %v4029_v26 = vadd.f32 %v12604_v40, %v3990_v20  ;;  %v3991_v18 = vmul.f32 %v10333_v27, %v12599_v43 }
 0x2b4   : > { %v4027_v5 = vadd.f32 %v12604_v40, %v3988_v60  ;;  %v3989_v62 = vmul.f32 %v10334_v13, %v12599_v43 }
 0x2b5   : > { %v4030_v44 = vadd.f32 %v12604_v40, %v3991_v18  ;;  %v4061_v24 = vmax.f32 %v4029_v26, 0.0 }
 0x2b6   : > { %v4028_v6 = vadd.f32 %v12604_v40, %v3989_v62  ;;  %v9787_v48 = vpop.f32.mrb[4].mxu0  ;;  %v4059_v35 = vmax.f32 %v4027_v5, 0.0 }
 0x2b7   : > { %v4062_v3 = vmax.f32 %v4030_v44, 0.0  ;;  %v10335_v8 = vadd.f32 %v9787_v48, %v9597_v50  ;;  %v3838_v55 = vpop.f32.mrb[5].mxu0 }
 0x2b8   : > { %v4060_v12 = vmax.f32 %v4028_v6, 0.0  ;;  %v10336_v15 = vadd.f32 %v3838_v55, %v2657_v17  ;;  %v9788_v16 = vpop.f32.mrb[6].mxu0 }
 0x2b9   : > { %v4092_v45 = vpack.c.bf16 %v4062_v3, %v4061_v24  ;;  %v3994_v42 = vmul.f32 %v10335_v8, %v12599_v43  ;;  %v10337_v63 = vadd.f32 %v9788_v16, %v9598_v41  ;;  %v3841_v47 = vpop.f32.mrb[7].mxu0 }
 0x2ba   : > { %v4091_v51 = vpack.c.bf16 %v4060_v12, %v4059_v35  ;;  %v3992_v31 = vmul.f32 %v10336_v15, %v12599_v43  ;;  %v10338_v7 = vadd.f32 %v3841_v47, %v2660_v52 }
 0x2bb   : > { %v4115_v53 = vshrl.u32 %v4092_v45, 16  ;;  %v4033_v46 = vadd.f32 %v12604_v40, %v3994_v42  ;;  %v3995_v37 = vmul.f32 %v10337_v63, %v12599_v43  ;;  %v4118_v38 = vshll.u32 %v4092_v45, 16 }
 0x2bc   : > { %v4108_v21 = vshrl.u32 %v4091_v51, 16  ;;  %v4031_v54 = vadd.f32 %v12604_v40, %v3992_v31  ;;  %v3993_v59 = vmul.f32 %v10338_v7, %v12599_v43  ;;  %v4111_v30 = vshll.u32 %v4091_v51, 16 }
 0x2bd   : > { %v4117_v4 = vrot.slane %v4115_v53, 7  ;;  %v4034_v9 = vadd.f32 %v12604_v40, %v3995_v37  ;;  %v4065_v1 = vmax.f32 %v4033_v46, 0.0 }
 0x2be   : > { %v4110_v34 = vrot.slane %v4108_v21, 7  ;;  %v4063_v61 = vmax.f32 %v4031_v54, 0.0  ;;  %v4032_v23 = vadd.f32 %v12604_v40, %v3993_v59  ;;  %v9791_v28 = vpop.f32.mrb[8].mxu0 }
 0x2bf   : > { %v4120_v49 = vor.u32 %v4118_v38, %v4117_v4  ;;  %v4271_v39 = vsel %vm12619_vm0, %v4117_v4, 0  ;;  %v4066_v50 = vmax.f32 %v4034_v9, 0.0  ;;  %v10339_v17 = vadd.f32 %v9791_v28, %v12580_v29  ;;  %v3854_v41 = vpop.f32.mrb[9].mxu0 }
 0x2c0   : > { %v8634_v52 = vcombine.low %v4271_v39, %v4271_v39  ;;  %v4113_v2 = vor.u32 %v4111_v30, %v4110_v34  ;;  %v4270_v25 = vsel %vm12619_vm0, %v4110_v34, 0  ;;  %v4064_v22 = vmax.f32 %v4032_v23, 0.0  ;;  %v9792_v14 = vpop.f32.mrb[10].mxu0 }
 0x2c1   : > { %v4255_v19 = vsel %vm12619_vm0, 0, %v4120_v49  ;;  %v8631_v20 = vcombine.low %v4270_v25, %v4270_v25  ;;  %v4094_v27 = vpack.c.bf16 %v4066_v50, %v4065_v1  ;;  %v3998_v11 = vmul.f32 %v10339_v17, %v12599_v43  ;;  %v3857_v60 = vpop.f32.mrb[11].mxu0 }
 0x2c2   : > { %v8632_v13 = vcombine.low %v4255_v19, %v4255_v19  ;;  %v8633_v26 = vcombine.high %v4255_v19, %v4255_v19  ;;  %8684 = vst [vmem:[%s12637_s30 + $0x20] sm:$0x1] %v8634_v52  ;;  %v4254_v29 = vsel %vm12619_vm0, 0, %v4113_v2  ;;  %v4093_v18 = vpack.c.bf16 %v4064_v22, %v4063_v61 }
 0x2c3   : > { %v8629_v5 = vcombine.low %v4254_v29, %v4254_v29  ;;  %v8630_v62 = vcombine.high %v4254_v29, %v4254_v29  ;;  %8681 = vst [vmem:[%s12637_s30 + $0x14] sm:$0x1] %v8631_v20  ;;  %v4129_v44 = vshrl.u32 %v4094_v27, 16  ;;  %v4037_v48 = vadd.f32 %v12604_v40, %v3998_v11 }
 0x2c4   : > { %8682 = vst [vmem:[%s12637_s30 + $0x18] sm:$0xf] %v8632_v13  ;;  %8683 = vst [vmem:[%s12637_s30 + $0x1c] sm:$0xf] %v8633_v26  ;;  %v4122_v6 = vshrl.u32 %v4093_v18, 16  ;;  %v10340_v24 = vadd.f32 %v3854_v41, %v12582_v0  ;;  %v4132_v8 = vshll.u32 %v4094_v27, 16  ;;  %v10341_v55 = vadd.f32 %v9792_v14, %v12584_v56 }
 0x2c5   : > { %8679 = vst [vmem:[%s12637_s30 + $0xc] sm:$0xf] %v8629_v5  ;;  %8680 = vst [vmem:[%s12637_s30 + $0x10] sm:$0xf] %v8630_v62  ;;  %v4131_v3 = vrot.slane %v4129_v44, 7  ;;  %v10342_v35 = vadd.f32 %v3857_v60, %v12586_v33  ;;  %v4125_v15 = vshll.u32 %v4093_v18, 16 }
 0x2c6   : > { %v4124_v12 = vrot.slane %v4122_v6, 7  ;;  %v4069_v16 = vmax.f32 %v4037_v48, 0.0  ;;  %v3996_v45 = vmul.f32 %v10340_v24, %v12599_v43  ;;  %v9795_v42 = vpop.f32.mrb[12].mxu0  ;;  %v3999_v0 = vmul.f32 %v10341_v55, %v12599_v43 }
 0x2c7   : > { %v4134_v63 = vor.u32 %v4132_v8, %v4131_v3  ;;  %v4273_v47 = vsel %vm12619_vm0, %v4131_v3, 0  ;;  %v3997_v51 = vmul.f32 %v10342_v35, %v12599_v43  ;;  %v3870_v31 = vpop.f32.mrb[13].mxu0  ;;  %v10343_v49 = vadd.f32 %v9795_v42, %v12588_v32 }
 0x2c8   : > { %v8640_v7 = vcombine.low %v4273_v47, %v4273_v47  ;;  %v4127_v56 = vor.u32 %v4125_v15, %v4124_v12  ;;  %v4272_v33 = vsel %vm12619_vm0, %v4124_v12, 0  ;;  %v4035_v53 = vadd.f32 %v12604_v40, %v3996_v45  ;;  %v9796_v46 = vpop.f32.mrb[14].mxu0 }
 0x2c9   : > { %v4257_v37 = vsel %vm12619_vm0, 0, %v4134_v63  ;;  %v8637_v21 = vcombine.low %v4272_v33, %v4272_v33  ;;  %v4038_v54 = vadd.f32 %v12604_v40, %v3999_v0  ;;  %v4036_v59 = vadd.f32 %v12604_v40, %v3997_v51  ;;  %v3873_v4 = vpop.f32.mrb[15].mxu0 }
 0x2ca   : > { %v8638_v38 = vcombine.low %v4257_v37, %v4257_v37  ;;  %v8639_v30 = vcombine.high %v4257_v37, %v4257_v37  ;;  %8690 = vst [vmem:[%s12637_s30 + $0x38] sm:$0x1] %v8640_v7  ;;  %v4256_v9 = vsel %vm12619_vm0, 0, %v4127_v56  ;;  %v4067_v34 = vmax.f32 %v4035_v53, 0.0 }
 0x2cb   : > { %v8635_v1 = vcombine.low %v4256_v9, %v4256_v9  ;;  %v8636_v61 = vcombine.high %v4256_v9, %v4256_v9  ;;  %8687 = vst [vmem:[%s12637_s30 + $0x2c] sm:$0x1] %v8637_v21  ;;  %v4070_v23 = vmax.f32 %v4038_v54, 0.0  ;;  %v4068_v28 = vmax.f32 %v4036_v59, 0.0 }
 0x2cc   : > { %8688 = vst [vmem:[%s12637_s30 + $0x30] sm:$0xf] %v8638_v38  ;;  %8689 = vst [vmem:[%s12637_s30 + $0x34] sm:$0xf] %v8639_v30  ;;  %v10344_v39 = vadd.f32 %v3870_v31, %v12590_v57  ;;  %v10345_v50 = vadd.f32 %v9796_v46, %v12592_v36  ;;  %v10346_v17 = vadd.f32 %v3873_v4, %v12594_v58 }
 0x2cd   : > { %8685 = vst [vmem:[%s12637_s30 + $0x24] sm:$0xf] %v8635_v1  ;;  %8686 = vst [vmem:[%s12637_s30 + $0x28] sm:$0xf] %v8636_v61  ;;  %v4096_v41 = vpack.c.bf16 %v4070_v23, %v4069_v16  ;;  %v4095_v52 = vpack.c.bf16 %v4068_v28, %v4067_v34  ;;  %v4002_v2 = vmul.f32 %v10343_v49, %v12599_v43 }
 0x2ce   : > { %v4000_v25 = vmul.f32 %v10344_v39, %v12599_v43  ;;  %v4003_v22 = vmul.f32 %v10345_v50, %v12599_v43  ;;  %v4001_v14 = vmul.f32 %v10346_v17, %v12599_v43  ;;  %v9647_v19 = vpop.f32.mrb[16].mxu1  ;;  %v9799_v32 = vpop.f32.mrb[16].mxu0 }
 0x2cf   : > { %v4143_v20 = vshrl.u32 %v4096_v41, 16  ;;  %v4146_v57 = vshll.u32 %v4096_v41, 16  ;;  %v4136_v27 = vshrl.u32 %v4095_v52, 16  ;;  %v4139_v36 = vshll.u32 %v4095_v52, 16  ;;  %v2952_v11 = vpop.f32.mrb[17].mxu1  ;;  %v3886_v58 = vpop.f32.mrb[17].mxu0 }
 0x2d0   : > { %v4041_v60 = vadd.f32 %v12604_v40, %v4002_v2  ;;  %v4039_v13 = vadd.f32 %v12604_v40, %v4000_v25  ;;  %v4042_v26 = vadd.f32 %v12604_v40, %v4003_v22  ;;  %v4040_v29 = vadd.f32 %v12604_v40, %v4001_v14  ;;  %v9648_v18 = vpop.f32.mrb[18].mxu1  ;;  %v9800_v5 = vpop.f32.mrb[18].mxu0 }
 0x2d1   : > { %v4145_v62 = vrot.slane %v4143_v20, 7  ;;  %v4138_v44 = vrot.slane %v4136_v27, 7  ;;  %v10347_v6 = vadd.f32 %v9799_v32, %v9647_v19  ;;  %v10348_v48 = vadd.f32 %v3886_v58, %v2952_v11  ;;  %v2955_v24 = vpop.f32.mrb[19].mxu1  ;;  %v3889_v3 = vpop.f32.mrb[19].mxu0 }
 0x2d2   : > { %v4073_v8 = vmax.f32 %v4041_v60, 0.0  ;;  %v4071_v55 = vmax.f32 %v4039_v13, 0.0  ;;  %v4074_v35 = vmax.f32 %v4042_v26, 0.0  ;;  %v4072_v12 = vmax.f32 %v4040_v29, 0.0 }
 0x2d3   : > { %v4148_v15 = vor.u32 %v4146_v57, %v4145_v62  ;;  %v4275_v16 = vsel %vm12619_vm0, %v4145_v62, 0  ;;  %v4141_v45 = vor.u32 %v4139_v36, %v4138_v44  ;;  %v4274_v42 = vsel %vm12619_vm0, %v4138_v44, 0 }
 0x2d4   : > { %v8646_v63 = vcombine.low %v4275_v16, %v4275_v16  ;;  %v8643_v47 = vcombine.low %v4274_v42, %v4274_v42  ;;  %v4098_v0 = vpack.c.bf16 %v4074_v35, %v4073_v8  ;;  %v4097_v51 = vpack.c.bf16 %v4072_v12, %v4071_v55 }
 0x2d5   : > { %v4259_v31 = vsel %vm12619_vm0, 0, %v4148_v15  ;;  %v4258_v7 = vsel %vm12619_vm0, 0, %v4141_v45  ;;  %v4006_v56 = vmul.f32 %v10347_v6, %v12599_v43  ;;  %v4004_v33 = vmul.f32 %v10348_v48, %v12599_v43 }
 0x2d6   : > { %v8644_v53 = vcombine.low %v4259_v31, %v4259_v31  ;;  %v8645_v46 = vcombine.high %v4259_v31, %v4259_v31  ;;  %8696 = vst [vmem:[%s12637_s30 + $0x50] sm:$0x1] %v8646_v63  ;;  %v8641_v37 = vcombine.low %v4258_v7, %v4258_v7  ;;  %v8642_v21 = vcombine.high %v4258_v7, %v4258_v7  ;;  %v9651_v54 = vpop.f32.mrb[20].mxu1  ;;  %v9803_v59 = vpop.f32.mrb[20].mxu0 }
 0x2d7   : > { %8693 = vst [vmem:[%s12637_s30 + $0x44] sm:$0x1] %v8643_v47  ;;  %v4157_v4 = vshrl.u32 %v4098_v0, 16  ;;  %v4160_v38 = vshll.u32 %v4098_v0, 16  ;;  %v4150_v30 = vshrl.u32 %v4097_v51, 16  ;;  %v4153_v9 = vshll.u32 %v4097_v51, 16 }
 0x2d8   : > { %v2968_v34 = vpop.f32.mrb[21].mxu1  ;;  %v3902_v1 = vpop.f32.mrb[21].mxu0  ;;  %8694 = vst [vmem:[%s12637_s30 + $0x48] sm:$0xf] %v8644_v53  ;;  %8695 = vst [vmem:[%s12637_s30 + $0x4c] sm:$0xf] %v8645_v46  ;;  %v4045_v61 = vadd.f32 %v12604_v40, %v4006_v56  ;;  %v4043_v23 = vadd.f32 %v12604_v40, %v4004_v33  ;;  %v10349_v28 = vadd.f32 %v9800_v5, %v9648_v18 }
 0x2d9   : > { %8691 = vst [vmem:[%s12637_s30 + $0x3c] sm:$0xf] %v8641_v37  ;;  %8692 = vst [vmem:[%s12637_s30 + $0x40] sm:$0xf] %v8642_v21  ;;  %v10350_v49 = vadd.f32 %v3889_v3, %v2955_v24  ;;  %v9652_v39 = vpop.f32.mrb[22].mxu1  ;;  %v9804_v50 = vpop.f32.mrb[22].mxu0  ;;  %v10351_v52 = vadd.f32 %v9803_v59, %v9651_v54  ;;  %v10352_v2 = vadd.f32 %v3902_v1, %v2968_v34 }
 0x2da   : > { %v4159_v17 = vrot.slane %v4157_v4, 7  ;;  %v4152_v41 = vrot.slane %v4150_v30, 7  ;;  %v2971_v25 = vpop.f32.mrb[23].mxu1  ;;  %v3905_v22 = vpop.f32.mrb[23].mxu0  ;;  %v4077_v14 = vmax.f32 %v4045_v61, 0.0  ;;  %v4075_v19 = vmax.f32 %v4043_v23, 0.0 }
 0x2db   : > { %v4007_v32 = vmul.f32 %v10349_v28, %v12599_v43  ;;  %v4005_v20 = vmul.f32 %v10350_v49, %v12599_v43  ;;  %v4010_v5 = vmul.f32 %v10351_v52, %v12599_v43  ;;  %v4008_v62 = vmul.f32 %v10352_v2, %v12599_v43 }
 0x2dc   : > { %v4162_v57 = vor.u32 %v4160_v38, %v4159_v17  ;;  %v4277_v27 = vsel %vm12619_vm0, %v4159_v17, 0  ;;  %v4155_v36 = vor.u32 %v4153_v9, %v4152_v41  ;;  %v4276_v11 = vsel %vm12619_vm0, %v4152_v41, 0 }
 0x2dd   : > { %v8652_v58 = vcombine.low %v4277_v27, %v4277_v27  ;;  %v8649_v60 = vcombine.low %v4276_v11, %v4276_v11  ;;  %v4046_v13 = vadd.f32 %v12604_v40, %v4007_v32  ;;  %v4044_v26 = vadd.f32 %v12604_v40, %v4005_v20 }
 0x2de   : > { %v4261_v29 = vsel %vm12619_vm0, 0, %v4162_v57  ;;  %v4260_v18 = vsel %vm12619_vm0, 0, %v4155_v36  ;;  %v9655_v3 = vpop.f32.mrb[24].mxu1  ;;  %v9807_v8 = vpop.f32.mrb[24].mxu0  ;;  %v4049_v12 = vadd.f32 %v12604_v40, %v4010_v5  ;;  %v4047_v15 = vadd.f32 %v12604_v40, %v4008_v62 }
 0x2df   : > { %v8650_v44 = vcombine.low %v4261_v29, %v4261_v29  ;;  %v8651_v6 = vcombine.high %v4261_v29, %v4261_v29  ;;  %8702 = vst [vmem:[%s12637_s30 + $0x68] sm:$0x1] %v8652_v58  ;;  %v8647_v48 = vcombine.low %v4260_v18, %v4260_v18  ;;  %v8648_v24 = vcombine.high %v4260_v18, %v4260_v18  ;;  %v2984_v16 = vpop.f32.mrb[25].mxu1  ;;  %v3918_v45 = vpop.f32.mrb[25].mxu0 }
 0x2e0   : > { %8699 = vst [vmem:[%s12637_s30 + $0x5c] sm:$0x1] %v8649_v60  ;;  %v4078_v55 = vmax.f32 %v4046_v13, 0.0  ;;  %v4076_v35 = vmax.f32 %v4044_v26, 0.0  ;;  %v10353_v42 = vadd.f32 %v9804_v50, %v9652_v39  ;;  %v10354_v63 = vadd.f32 %v3905_v22, %v2971_v25  ;;  %v9656_v51 = vpop.f32.mrb[26].mxu1  ;;  %v9808_v31 = vpop.f32.mrb[26].mxu0 }
 0x2e1   : > { %8700 = vst [vmem:[%s12637_s30 + $0x60] sm:$0xf] %v8650_v44  ;;  %8701 = vst [vmem:[%s12637_s30 + $0x64] sm:$0xf] %v8651_v6  ;;  %v10355_v47 = vadd.f32 %v9807_v8, %v9655_v3  ;;  %v10356_v0 = vadd.f32 %v3918_v45, %v2984_v16  ;;  %v4081_v33 = vmax.f32 %v4049_v12, 0.0  ;;  %v4079_v53 = vmax.f32 %v4047_v15, 0.0 }
 0x2e2   : > { %8697 = vst [vmem:[%s12637_s30 + $0x54] sm:$0xf] %v8647_v48  ;;  %8698 = vst [vmem:[%s12637_s30 + $0x58] sm:$0xf] %v8648_v24  ;;  %v4100_v7 = vpack.c.bf16 %v4078_v55, %v4077_v14  ;;  %v4099_v56 = vpack.c.bf16 %v4076_v35, %v4075_v19  ;;  %v2987_v46 = vpop.f32.mrb[27].mxu1  ;;  %v3921_v37 = vpop.f32.mrb[27].mxu0  ;;  %v4011_v21 = vmul.f32 %v10353_v42, %v12599_v43 }
 0x2e3   : > { %v4009_v54 = vmul.f32 %v10354_v63, %v12599_v43  ;;  %v4014_v59 = vmul.f32 %v10355_v47, %v12599_v43  ;;  %v4012_v4 = vmul.f32 %v10356_v0, %v12599_v43  ;;  %v10357_v50 = vadd.f32 %v9808_v31, %v9656_v51 }
 0x2e4   : > { %v4171_v38 = vshrl.u32 %v4100_v7, 16  ;;  %v4174_v30 = vshll.u32 %v4100_v7, 16  ;;  %v4164_v9 = vshrl.u32 %v4099_v56, 16  ;;  %v4167_v34 = vshll.u32 %v4099_v56, 16 }
 0x2e5   : > { %v4050_v1 = vadd.f32 %v12604_v40, %v4011_v21  ;;  %v4048_v61 = vadd.f32 %v12604_v40, %v4009_v54  ;;  %v12730_v23 = vadd.f32 %v12604_v40, %v4014_v59  ;;  %v12733_v28 = vadd.f32 %v12604_v40, %v4012_v4 }
 0x2e6   : > { %v4173_v49 = vrot.slane %v4171_v38, 7  ;;  %v4166_v39 = vrot.slane %v4164_v9, 7  ;;  %v10358_v17 = vadd.f32 %v3921_v37, %v2987_v46  ;;  %v9659_v22 = vpop.f32.mrb[28].mxu1  ;;  %v9811_v14 = vpop.f32.mrb[28].mxu0  ;;  %v4015_v62 = vmul.f32 %v10357_v50, %v12599_v43 }
 0x2e7   : > { %v4082_v41 = vmax.f32 %v4050_v1, 0.0  ;;  %v4080_v52 = vmax.f32 %v4048_v61, 0.0  ;;  %v4085_v2 = vmax.f32 %v12730_v23, 0.0  ;;  %v4083_v25 = vmax.f32 %v12733_v28, 0.0  ;;  %v3000_v27 = vpop.f32.mrb[29].mxu1  ;;  %v3934_v36 = vpop.f32.mrb[29].mxu0 }
 0x2e8   : > { %v4176_v19 = vor.u32 %v4174_v30, %v4173_v49  ;;  %v4279_v32 = vsel %vm12619_vm0, %v4173_v49, 0  ;;  %v4169_v20 = vor.u32 %v4167_v34, %v4166_v39  ;;  %v4278_v57 = vsel %vm12619_vm0, %v4166_v39, 0  ;;  %v9660_v26 = vpop.f32.mrb[30].mxu1  ;;  %v9812_v29 = vpop.f32.mrb[30].mxu0 }
 0x2e9   : > { %v8658_v11 = vcombine.low %v4279_v32, %v4279_v32  ;;  %v8655_v58 = vcombine.low %v4278_v57, %v4278_v57  ;;  %v4102_v60 = vpack.c.bf16 %v4082_v41, %v4081_v33  ;;  %v4101_v13 = vpack.c.bf16 %v4080_v52, %v4079_v53  ;;  %v3003_v6 = vpop.f32.mrb[31].mxu1  ;;  %v3937_v48 = vpop.f32.mrb[31].mxu0 }
 0x2ea   : > { %v4263_v18 = vsel %vm12619_vm0, 0, %v4176_v19  ;;  %v4262_v5 = vsel %vm12619_vm0, 0, %v4169_v20  ;;  %v4013_v44 = vmul.f32 %v10358_v17, %v12599_v43  ;;  %v4054_v45 = vadd.f32 %v12604_v40, %v4015_v62 }
 0x2eb   : > { %v8656_v24 = vcombine.low %v4263_v18, %v4263_v18  ;;  %v8657_v3 = vcombine.high %v4263_v18, %v4263_v18  ;;  %8708 = vst [vmem:[%s12637_s30 + $0x80] sm:$0x1] %v8658_v11  ;;  %v8653_v8 = vcombine.low %v4262_v5, %v4262_v5  ;;  %v8654_v55 = vcombine.high %v4262_v5, %v4262_v5 }
 0x2ec   : > { %8705 = vst [vmem:[%s12637_s30 + $0x74] sm:$0x1] %v8655_v58  ;;  %v4185_v35 = vshrl.u32 %v4102_v60, 16  ;;  %v4188_v12 = vshll.u32 %v4102_v60, 16  ;;  %v4178_v15 = vshrl.u32 %v4101_v13, 16  ;;  %v4181_v16 = vshll.u32 %v4101_v13, 16 }
 0x2ed   : > { %8706 = vst [vmem:[%s12637_s30 + $0x78] sm:$0xf] %v8656_v24  ;;  %8707 = vst [vmem:[%s12637_s30 + $0x7c] sm:$0xf] %v8657_v3  ;;  %v4052_v42 = vadd.f32 %v12604_v40, %v4013_v44  ;;  %v10359_v63 = vadd.f32 %v9811_v14, %v9659_v22  ;;  %v10360_v47 = vadd.f32 %v3934_v36, %v3000_v27  ;;  %v4086_v56 = vmax.f32 %v4054_v45, 0.0 }
 0x2ee   : > { %8703 = vst [vmem:[%s12637_s30 + $0x6c] sm:$0xf] %v8653_v8  ;;  %8704 = vst [vmem:[%s12637_s30 + $0x70] sm:$0xf] %v8654_v55  ;;  %v4187_v0 = vrot.slane %v4185_v35, 7  ;;  %v4180_v51 = vrot.slane %v4178_v15, 7  ;;  %v10361_v31 = vadd.f32 %v9812_v29, %v9660_v26  ;;  %v10362_v7 = vadd.f32 %v3937_v48, %v3003_v6 }
 0x2ef   : > { %v4084_v33 = vmax.f32 %v4052_v42, 0.0  ;;  %v4018_v53 = vmul.f32 %v10359_v63, %v12599_v43  ;;  %v4016_v46 = vmul.f32 %v10360_v47, %v12599_v43  ;;  %v4104_v30 = vpack.c.bf16 %v4086_v56, %v4085_v2 }
 0x2f0   : > { %v4190_v37 = vor.u32 %v4188_v12, %v4187_v0  ;;  %v4281_v21 = vsel %vm12619_vm0, %v4187_v0, 0  ;;  %v4183_v54 = vor.u32 %v4181_v16, %v4180_v51  ;;  %v4280_v59 = vsel %vm12619_vm0, %v4180_v51, 0 }
 0x2f1   : > { %v8664_v4 = vcombine.low %v4281_v21, %v4281_v21  ;;  %v8661_v38 = vcombine.low %v4280_v59, %v4280_v59  ;;  %v4103_v9 = vpack.c.bf16 %v4084_v33, %v4083_v25  ;;  %v4199_v39 = vshrl.u32 %v4104_v30, 16 }
 0x2f2   : > { %v4265_v34 = vsel %vm12619_vm0, 0, %v4190_v37  ;;  %v4264_v1 = vsel %vm12619_vm0, 0, %v4183_v54  ;;  %v4057_v17 = vadd.f32 %v12604_v40, %v4018_v53  ;;  %v4055_v41 = vadd.f32 %v12604_v40, %v4016_v46 }
 0x2f3   : > { %v8662_v61 = vcombine.low %v4265_v34, %v4265_v34  ;;  %v8663_v23 = vcombine.high %v4265_v34, %v4265_v34  ;;  %8714 = vst [vmem:[%s12637_s30 + $0x98] sm:$0x1] %v8664_v4  ;;  %v8659_v28 = vcombine.low %v4264_v1, %v4264_v1  ;;  %v8660_v49 = vcombine.high %v4264_v1, %v4264_v1 }
 0x2f4   : > { %8711 = vst [vmem:[%s12637_s30 + $0x8c] sm:$0x1] %v8661_v38  ;;  %v4192_v50 = vshrl.u32 %v4103_v9, 16  ;;  %v4019_v52 = vmul.f32 %v10361_v31, %v12599_v43  ;;  %v4017_v2 = vmul.f32 %v10362_v7, %v12599_v43  ;;  %v4201_v25 = vrot.slane %v4199_v39, 7 }
 0x2f5   : > { %8712 = vst [vmem:[%s12637_s30 + $0x90] sm:$0xf] %v8662_v61  ;;  %8713 = vst [vmem:[%s12637_s30 + $0x94] sm:$0xf] %v8663_v23  ;;  %v4202_v22 = vshll.u32 %v4104_v30, 16  ;;  %v4195_v19 = vshll.u32 %v4103_v9, 16 }
 0x2f6   : > { %8709 = vst [vmem:[%s12637_s30 + $0x84] sm:$0xf] %v8659_v28  ;;  %8710 = vst [vmem:[%s12637_s30 + $0x88] sm:$0xf] %v8660_v49  ;;  %v4194_v14 = vrot.slane %v4192_v50, 7  ;;  %v4058_v32 = vadd.f32 %v12604_v40, %v4019_v52  ;;  %v4056_v20 = vadd.f32 %v12604_v40, %v4017_v2  ;;  %v4283_v27 = vsel %vm12619_vm0, %v4201_v25, 0 }
 0x2f7   : > { %v4204_v57 = vor.u32 %v4202_v22, %v4201_v25  ;;  %v8670_v58 = vcombine.low %v4283_v27, %v4283_v27  ;;  %v4089_v29 = vmax.f32 %v4057_v17, 0.0  ;;  %v4087_v18 = vmax.f32 %v4055_v41, 0.0 }
 0x2f8   : > { %v4197_v36 = vor.u32 %v4195_v19, %v4194_v14  ;;  %v4282_v11 = vsel %vm12619_vm0, %v4194_v14, 0  ;;  %v4090_v60 = vmax.f32 %v4058_v32, 0.0  ;;  %v4088_v13 = vmax.f32 %v4056_v20, 0.0 }
 0x2f9   : > { %v8667_v43 = vcombine.low %v4282_v11, %v4282_v11  ;;  %v4267_v40 = vsel %vm12619_vm0, 0, %v4204_v57  ;;  %8720 = vst [vmem:[%s12637_s30 + $0xb0] sm:$0x1] %v8670_v58 }
 0x2fa   : > { %v4266_v26 = vsel %vm12619_vm0, 0, %v4197_v36  ;;  %v8668_v5 = vcombine.low %v4267_v40, %v4267_v40  ;;  %v8669_v62 = vcombine.high %v4267_v40, %v4267_v40  ;;  %v4106_v48 = vpack.c.bf16 %v4090_v60, %v4089_v29 }
 0x2fb   : > { %v8665_v44 = vcombine.low %v4266_v26, %v4266_v26  ;;  %v8666_v6 = vcombine.high %v4266_v26, %v4266_v26  ;;  %8717 = vst [vmem:[%s12637_s30 + $0xa4] sm:$0x1] %v8667_v43  ;;  %v4105_v24 = vpack.c.bf16 %v4088_v13, %v4087_v18 }
 0x2fc   : > { %8718 = vst [vmem:[%s12637_s30 + $0xa8] sm:$0xf] %v8668_v5  ;;  %8719 = vst [vmem:[%s12637_s30 + $0xac] sm:$0xf] %v8669_v62  ;;  %v4213_v3 = vshrl.u32 %v4106_v48, 16  ;;  %v4216_v35 = vshll.u32 %v4106_v48, 16 }
 0x2fd   : > { %8715 = vst [vmem:[%s12637_s30 + $0x9c] sm:$0xf] %v8665_v44  ;;  %8716 = vst [vmem:[%s12637_s30 + $0xa0] sm:$0xf] %v8666_v6  ;;  %v4206_v8 = vshrl.u32 %v4105_v24, 16  ;;  %v4209_v15 = vshll.u32 %v4105_v24, 16 }
 0x2fe   : > { %v4215_v55 = vrot.slane %v4213_v3, 7 }
 0x2ff   : > { %v4208_v12 = vrot.slane %v4206_v8, 7 }
 0x300   : > { %v4218_v16 = vor.u32 %v4216_v35, %v4215_v55  ;;  %v4285_v45 = vsel %vm12619_vm0, %v4215_v55, 0 }
 0x301   : > { %v4211_v42 = vor.u32 %v4209_v15, %v4208_v12  ;;  %v4284_v63 = vsel %vm12619_vm0, %v4208_v12, 0  ;;  %v8676_v47 = vcombine.low %v4285_v45, %v4285_v45 }
 0x302   : > { %v8673_v0 = vcombine.low %v4284_v63, %v4284_v63  ;;  %v4269_v51 = vsel %vm12619_vm0, 0, %v4218_v16 }
 0x303   : > { %v4268_v31 = vsel %vm12619_vm0, 0, %v4211_v42  ;;  %v8674_v7 = vcombine.low %v4269_v51, %v4269_v51  ;;  %v8675_v56 = vcombine.high %v4269_v51, %v4269_v51  ;;  %8726 = vst [vmem:[%s12637_s30 + $0xc8] sm:$0x1] %v8676_v47 }
 0x304   : > { %v8671_v33 = vcombine.low %v4268_v31, %v4268_v31  ;;  %v8672_v53 = vcombine.high %v4268_v31, %v4268_v31  ;;  %8723 = vst [vmem:[%s12637_s30 + $0xbc] sm:$0x1] %v8673_v0 }
 0x305   : > { %8724 = vst [vmem:[%s12637_s30 + $0xc0] sm:$0xf] %v8674_v7  ;;  %8725 = vst [vmem:[%s12637_s30 + $0xc4] sm:$0xf] %v8675_v56 }
 0x306   : > { %8721 = vst [vmem:[%s12637_s30 + $0xb4] sm:$0xf] %v8671_v33  ;;  %8722 = vst [vmem:[%s12637_s30 + $0xb8] sm:$0xf] %v8672_v53 }
 0x307 PF: > { %p8727_p10 = scmp.le.s32.totalorder %s11061_s21, 0 }
 0x309   : > { %4517 = sbr.rel (%p8727_p10) target bundleno = 1575 (0x627), region = 80 }
 0x310   : > { %v10946_v46 = vld [vmem:[%s14052_s7 + $0x40] sm:$0xff]   ;;  %v10948_v37 = vld [vmem:[%s14052_s7 + $0x48] sm:$0xff]   ;;  %v10950_v54 = vld [vmem:[%s14052_s7 + $0x50] sm:$0xff]   ;;  %s9043_s29 = smul.u32 192, %s11179_s28  ;;  %vm4593_vm1 = vsmask.f32 3328 }
 0x311   : > { %v10947_v10 = vld [vmem:[%s14052_s7 + $0x100] sm:$0xff]   ;;  %9813 = vmatprep.subr.bf16.mxu1 %v10946_v46  ;;  %v10949_v21 = vld [vmem:[%s14052_s7 + $0x108] sm:$0xff]   ;;  %v10951_v59 = vld [vmem:[%s14052_s7 + $0x110] sm:$0xff]   ;;  %vm4594_vm2 = vsmask.f32 7440  ;;  %vm5591_vm4 = vcmask 1042432  }
 0x312   : > { %10005 = vmatprep.subr.bf16.mxu0 %v10947_v10  ;;  %9814 = vmatpush3.bf16.msra.mxu1 %v10946_v46  ;;  %v10952_v4 = vld [vmem:[%s14052_s7 + $0x58] sm:$0xff]   ;;  %v10954_v30 = vld [vmem:[%s14052_s7 + $0x60] sm:$0xff]   ;;  %v10956_v34 = vld [vmem:[%s14052_s7 + $0x68] sm:$0xff]   ;;  %s12843_s28 = scalar_lea.vmem [#allocation3], %s9043_s29  ;;  %vm5592_vm5 = vcmask 1046532   ;;  %s14233_s17 = sld [smem:[#allocation53_spill]] }
 0x313   : > { %10006 = vmatpush3.bf16.msra.mxu0 %v10947_v10  ;;  %9815 = vmatprep.subr.bf16.mxu1 %v10948_v37  ;;  %v10953_v38 = vld [vmem:[%s14052_s7 + $0x118] sm:$0xff]   ;;  %v10955_v9 = vld [vmem:[%s14052_s7 + $0x120] sm:$0xff]   ;;  %v10957_v1 = vld [vmem:[%s14052_s7 + $0x128] sm:$0xff]   ;;  %vm7793_vm7 = vcmask 523264   ;;  %s14234_s20 = sld [smem:[#allocation54_spill]] }
 0x314   : > { %10007 = vmatprep.subr.bf16.mxu0 %v10949_v21  ;;  %v12846_v61 = vld [vmem:[%s12843_s28] sm:$0xf]  ;;  %v12849_v23 = vld [vmem:[%s12843_s28 + $0x4] sm:$0xf]  ;;  %v4525_v28 = vld [vmem:[%s12843_s28 + $0x8] sm:$0x1] }
 0x315   : > { %v4597_v49 = vshrl.u32 %v12846_v61, 16  ;;  %v4600_v39 = vshll.u32 %v12846_v61, 16  ;;  %v10958_v50 = vld [vmem:[%s14052_s7 + $0x70] sm:$0xff]   ;;  %v4606_v17 = vshll.u32 %v12849_v23, 16  ;;  %v4610_v41 = vshrl.u32 %v12849_v23, 16  ;;  %v10960_v29 = vld [vmem:[%s14052_s7 + $0x78] sm:$0xff]   ;;  %vm12888_vm3 = vmor %vm4593_vm1, %vm4594_vm2 }
 0x316   : > { %9816 = vmatpush3.bf16.msra.mxu1 %v10948_v37  ;;  %v4616_v52 = vshll.u32 %v4525_v28, 16  ;;  %v12860_v2 = vld [vmem:[%s12843_s28 + $0xc] sm:$0xf]  ;;  %v12863_v14 = vld [vmem:[%s12843_s28 + $0x10] sm:$0xf]  ;;  %v10961_v45 = vld [vmem:[%s14052_s7 + $0x138] sm:$0xff]  }
 0x317   : > { %10008 = vmatpush3.bf16.msra.mxu0 %v10949_v21  ;;  %9817 = vmatprep.subr.bf16.mxu1 %v10950_v54  ;;  %v4599_v25 = vrot.slane %v4597_v49, 4  ;;  %v4602_v22 = vrot.slane %v4600_v39, 5  ;;  %v12866_v19 = vld [vmem:[%s12843_s28 + $0x14] sm:$0x1]  ;;  %v4608_v20 = vrot.slane %v4606_v17, 5  ;;  %v4612_v57 = vrot.slane %v4610_v41, 4  ;;  %vm13275_vm6 = vmor %vm5591_vm4, %vm5592_vm5 }
 0x318   : > { %10009 = vmatprep.subr.bf16.mxu0 %v10951_v59  ;;  %v4618_v27 = vrot.slane %v4616_v52, 5  ;;  %v4621_v36 = vshrl.u32 %v12860_v2, 16  ;;  %v12872_v11 = vld [vmem:[%s12843_s28 + $0x18] sm:$0xf]  ;;  %v10959_v58 = vld [vmem:[%s14052_s7 + $0x130] sm:$0xff]   ;;  %v4624_v60 = vshll.u32 %v12860_v2, 16 }
 0x319   : > { %v4603_v43 = vor.u32 %v4602_v22, %v4599_v25  ;;  %v4630_v13 = vshll.u32 %v12863_v14, 16  ;;  %v4634_v40 = vshrl.u32 %v12863_v14, 16  ;;  %v12881_v26 = vld [vmem:[%s12843_s28 + $0x1c] sm:$0xf]  ;;  %v4613_v5 = vor.u32 %v4612_v57, %v4608_v20  ;;  %v12894_v6 = vld [vmem:[%s12843_s28 + $0x20] sm:$0x1] }
 0x31a   : > { %9818 = vmatpush3.bf16.msra.mxu1 %v10950_v54  ;;  %v4623_v62 = vrot.slane %v4621_v36, 4  ;;  %v4640_v44 = vshll.u32 %v12866_v19, 16  ;;  %v4645_v48 = vshrl.u32 %v12872_v11, 16  ;;  %v4626_v3 = vrot.slane %v4624_v60, 5  ;;  %v12905_v51 = vld [vmem:[%s12843_s28 + $0x24] sm:$0xf] }
 0x31b   : > { %10010 = vmatpush3.bf16.msra.mxu0 %v10951_v59  ;;  %9819 = vmatprep.subr.bf16.mxu1 %v10952_v4  ;;  %v4604_v24 = vrot.slane %v4603_v43, 4  ;;  %v4632_v8 = vrot.slane %v4630_v13, 5  ;;  %v4636_v55 = vrot.slane %v4634_v40, 4  ;;  %v4614_v35 = vrot.slane %v4613_v5, 4  ;;  %v12912_v53 = vld [vmem:[%s12843_s28 + $0x28] sm:$0xf] }
 0x31c   : > { %10011 = vmatprep.subr.bf16.mxu0 %v10953_v38  ;;  %v4642_v12 = vrot.slane %v4640_v44, 5  ;;  %v4647_v15 = vrot.slane %v4645_v48, 4  ;;  %v4648_v16 = vshll.u32 %v12872_v11, 16  ;;  %v4627_v63 = vor.u32 %v4626_v3, %v4623_v62  ;;  %v12915_v54 = vld [vmem:[%s12843_s28 + $0x2c] sm:$0x1]  ;;  %v10962_v28 = vld [vmem:[%s14052_s7 + $0x140] sm:$0xff]  }
 0x31d   : > { %v4609_v42 = vsel %vm12888_vm3, %v4604_v24, %v4608_v20  ;;  %v4637_v47 = vor.u32 %v4636_v55, %v4632_v8  ;;  %v4654_v0 = vshll.u32 %v12881_v26, 16  ;;  %v4619_v31 = vsel %vm12888_vm3, %v4614_v35, %v4618_v27  ;;  %v12937_v36 = vld [vmem:[%s12843_s28 + $0x34] sm:$0xf]  ;;  %v12942_v13 = vld [vmem:[%s12843_s28 + $0x38] sm:$0x1]  ;;  %v7778_v18 = vld [vmem:[%s14055_s10] sm:$0xff] }
 0x31e   : > { %9820 = vmatpush3.bf16.msra.mxu1 %v10952_v4  ;;  %v4650_v7 = vrot.slane %v4648_v16, 5  ;;  %v4658_v56 = vshrl.u32 %v12881_v26, 16  ;;  %v4664_v33 = vshll.u32 %v12894_v6, 16  ;;  %v8748_v46 = vcombine.low %v4609_v42, %v4619_v31  ;;  %v12950_v24 = vld [vmem:[%s12843_s28 + $0x3c] sm:$0xf] }
 0x31f   : > { %10012 = vmatpush3.bf16.msra.mxu0 %v10953_v38  ;;  %9821 = vmatprep.subr.bf16.mxu1 %v10954_v30  ;;  %v4628_v10 = vrot.slane %v4627_v63, 4  ;;  %v4638_v37 = vrot.slane %v4637_v47, 4  ;;  %v4656_v21 = vrot.slane %v4654_v0, 5  ;;  %v4669_v49 = vshrl.u32 %v12905_v51, 16  ;;  %v10963_v63 = vld [vmem:[%s14052_s7 + $0x148] sm:$0xff]   ;;  %v10969_v47 = vld [vmem:[%s14052_s7 + $0x10] sm:$0xff]  }
 0x320   : > { %10013 = vmatprep.subr.bf16.mxu0 %v10955_v9  ;;  %v4651_v59 = vor.u32 %v4650_v7, %v4647_v15  ;;  %v4660_v4 = vrot.slane %v4658_v56, 4  ;;  %v4666_v38 = vrot.slane %v4664_v33, 5  ;;  %9829 = vmatprep.mubr.bf16.mxu1 %v8748_v46  ;;  %v4672_v39 = vshll.u32 %v12905_v51, 16 }
 0x321   : > { %v4678_v25 = vshll.u32 %v12912_v53, 16  ;;  %v4671_v22 = vrot.slane %v4669_v49, 4  ;;  %v4682_v57 = vshrl.u32 %v12912_v53, 16  ;;  %v4688_v27 = vshll.u32 %v12915_v54, 16 }
 0x322   : > { %9822 = vmatpush3.bf16.msra.mxu1 %v10954_v30  ;;  %v4652_v41 = vrot.slane %v4651_v59, 4  ;;  %v4661_v52 = vor.u32 %v4660_v4, %v4656_v21  ;;  %v4674_v20 = vrot.slane %v4672_v39, 5  ;;  %v4702_v55 = vshll.u32 %v12937_v36, 16  ;;  %v13112_v30 = vld [vmem:[%s12843_s28 + $0x84] sm:$0xf] }
 0x323   : > { %10014 = vmatpush3.bf16.msra.mxu0 %v10955_v9  ;;  %9823 = vmatprep.subr.bf16.mxu1 %v10956_v34  ;;  %v12919_v9 = vld [vmem:[%s12843_s28 + $0x30] sm:$0xf]  ;;  %v4680_v60 = vrot.slane %v4678_v25, 5  ;;  %v4684_v62 = vrot.slane %v4682_v57, 4  ;;  %v4690_v44 = vrot.slane %v4688_v27, 5  ;;  %v4706_v35 = vshrl.u32 %v12937_v36, 16 }
 0x324   : > { %10015 = vmatprep.subr.bf16.mxu0 %v10957_v1  ;;  %v4662_v43 = vrot.slane %v4661_v52, 4  ;;  %v4693_v40 = vshrl.u32 %v12919_v9, 16  ;;  %v4675_v5 = vor.u32 %v4674_v20, %v4671_v22  ;;  %v4696_v48 = vshll.u32 %v12919_v9, 16  ;;  %v12994_v57 = vld [vmem:[%s12843_s28 + $0x50] sm:$0x1]  ;;  %v10971_v27 = vld [vmem:[%s14052_s7 + $0x18] sm:$0xff]  }
 0x325   : > { %v4704_v0 = vrot.slane %v4702_v55, 5  ;;  %v4708_v31 = vrot.slane %v4706_v35, 4  ;;  %v4712_v7 = vshll.u32 %v12942_v13, 16  ;;  %v4717_v56 = vshrl.u32 %v12950_v24, 16 }
 0x326   : > { %9824 = vmatpush3.bf16.msra.mxu1 %v10956_v34  ;;  %v4633_v34 = vsel %vm12888_vm3, %v4628_v10, %v4632_v8  ;;  %v4667_v3 = vsel %vm12888_vm3, %v4662_v43, %v4666_v38  ;;  %v4695_v8 = vrot.slane %v4693_v40, 4  ;;  %v4676_v16 = vrot.slane %v4675_v5, 4 }
 0x327   : > { %10016 = vmatpush3.bf16.msra.mxu0 %v10957_v1  ;;  %9825 = vmatprep.subr.bf16.mxu1 %v10958_v50  ;;  %v4643_v1 = vsel %vm12888_vm3, %v4638_v37, %v4642_v12  ;;  %v12957_v12 = vld [vmem:[%s12843_s28 + $0x40] sm:$0xf]  ;;  %v4698_v42 = vrot.slane %v4696_v48, 5  ;;  %v12974_v37 = vld [vmem:[%s12843_s28 + $0x44] sm:$0x1]  ;;  %v4709_v59 = vor.u32 %v4708_v31, %v4704_v0  ;;  %v4714_v4 = vrot.slane %v4712_v7, 5 }
 0x328   : > { %10017 = vmatprep.subr.bf16.mxu0 %v10959_v58  ;;  %v8749_v17 = vcombine.low %v4633_v34, %v4643_v1  ;;  %v4681_v33 = vsel %vm12888_vm3, %v4676_v16, %v4680_v60  ;;  %v4719_v38 = vrot.slane %v4717_v56, 4  ;;  %v4726_v34 = vshll.u32 %v12957_v12, 16  ;;  %v12979_v1 = vld [vmem:[%s12843_s28 + $0x48] sm:$0xf]  ;;  %v13014_v16 = vld [vmem:[%s12843_s28 + $0x58] sm:$0xf] }
 0x329   : > { %v4699_v10 = vor.u32 %v4698_v42, %v4695_v8  ;;  %v4710_v25 = vrot.slane %v4709_v59, 4  ;;  %v4736_v20 = vshll.u32 %v12974_v37, 16  ;;  %v4741_v40 = vshrl.u32 %v12979_v1, 16  ;;  %v13019_v7 = vld [vmem:[%s12843_s28 + $0x5c] sm:$0x1] }
 0x32a   : > { %9826 = vmatpush3.bf16.msra.mxu1 %v10958_v50  ;;  %v10966_v50 = vld [vmem:[%s14052_s7] sm:$0xff]   ;;  %10021 = vmatprep.mubr.bf16.mxu0 %v8749_v17  ;;  %v4728_v22 = vrot.slane %v4726_v34, 5  ;;  %v4760_v31 = vshll.u32 %v12994_v57, 16  ;;  %v4774_v34 = vshll.u32 %v13014_v16, 16 }
 0x32b   : > { %10018 = vmatpush3.bf16.msra.mxu0 %v10959_v58  ;;  %9827 = vmatprep.subr.bf16.mxu1 %v10960_v29  ;;  %v4657_v58 = vsel %vm12888_vm3, %v4652_v41, %v4656_v21  ;;  %v4720_v21 = vshll.u32 %v12950_v24, 16  ;;  %v4700_v39 = vrot.slane %v4699_v10, 4  ;;  %v12985_v41 = vld [vmem:[%s12843_s28 + $0x4c] sm:$0xf]  ;;  %v4715_v5 = vsel %vm12888_vm3, %v4710_v25, %v4714_v4  ;;  %v13022_v56 = vld [vmem:[%s12843_s28 + $0x60] sm:$0xf] }
 0x32c   : > { %10019 = vmatprep.subr.bf16.mxu0 %v10961_v45  ;;  %v12959_v15 = vcombine.low %v4657_v58, %v4667_v3  ;;  %v4750_v48 = vshll.u32 %v12985_v41, 16  ;;  %v4743_v35 = vrot.slane %v4741_v40, 4  ;;  %v13041_v25 = vld [vmem:[%s12843_s28 + $0x64] sm:$0xf]  ;;  %v10974_v40 = vld [vmem:[%s14052_s7 + $0x28] sm:$0xff]  }
 0x32d   : > { %v4705_v58 = vsel %vm12888_vm3, %v4700_v39, %v4704_v0  ;;  %v4754_v0 = vshrl.u32 %v12985_v41, 16 }
 0x32e   : > { %9828 = vmatpush3.bf16.msra.mxu1 %v10960_v29  ;;  %v10968_v29 = vld [vmem:[%s14052_s7 + $0x8] sm:$0xff]   ;;  %14183 = vst [vmem:[#allocation30_spill] sm:$0xff] %v12959_v15  ;;  %v13011_v3 = vcombine.low %v4705_v58, %v4715_v5  ;;  %v4752_v42 = vrot.slane %v4750_v48, 5 }
 0x32f   : > { %10020 = vmatpush3.bf16.msra.mxu0 %v10961_v45  ;;  %9861 = vmatprep.subr.bf16.mxu1 %v10966_v50  ;;  %v4685_v45 = vor.u32 %v4684_v62, %v4680_v60  ;;  %v4738_v62 = vrot.slane %v4736_v20, 5  ;;  %v4756_v4 = vrot.slane %v4754_v0, 4  ;;  %v13057_v48 = vld [vmem:[%s12843_s28 + $0x6c] sm:$0xf]  ;;  %v13066_v0 = vld [vmem:[%s12843_s28 + $0x70] sm:$0xf] }
 0x330   : > { %10053 = vmatprep.subr.bf16.mxu0 %v10962_v28  ;;  %14185 = vst [vmem:[#allocation32_spill] sm:$0xff] %v13011_v3 }
 0x331   : > { %9830 = vmatmul.mubr.bf16.vlgmr.msra.gmra.mrb[0].mxu1 %v8749_v17  ;;  %v4686_v46 = vrot.slane %v4685_v45, 4  ;;  %v4730_v17 = vshrl.u32 %v12957_v12, 16  ;;  %v4757_v58 = vor.u32 %v4756_v4, %v4752_v42  ;;  %v4802_v4 = vshrl.u32 %v13041_v25, 16 }
 0x332   : > { %9862 = vmatpush3.bf16.msra.mxu1 %v10966_v50  ;;  %10022 = vmatmul.mubr.bf16.vlgmr.msra.gmra.mrb[0].mxu0 %v12959_v15  ;;  %v4722_v50 = vrot.slane %v4720_v21, 5 }
 0x333   : > { %9863 = vmatprep.subr.bf16.mxu1 %v10968_v29  ;;  %9833 = vmatprep.mubr.bf16.mxu1 %v12959_v15  ;;  %v4691_v49 = vsel %vm12888_vm3, %v4686_v46, %v4690_v44  ;;  %v4732_v60 = vrot.slane %v4730_v17, 4  ;;  %v4744_v44 = vshll.u32 %v12979_v1, 16  ;;  %v4778_v17 = vshrl.u32 %v13014_v16, 16 }
 0x334   : > { %10054 = vmatpush3.bf16.msra.mxu0 %v10962_v28  ;;  %v10964_v28 = vld [vmem:[%s14052_s7 + $0x150] sm:$0xff]   ;;  %v12990_v52 = vcombine.low %v4681_v33, %v4691_v49  ;;  %v4723_v43 = vor.u32 %v4722_v50, %v4719_v38  ;;  %v4762_v38 = vrot.slane %v4760_v31, 5 }
 0x335   : > { %10055 = vmatprep.subr.bf16.mxu0 %v10963_v63  ;;  %v4733_v55 = vor.u32 %v4732_v60, %v4728_v22  ;;  %v4746_v45 = vrot.slane %v4744_v44, 5  ;;  %v13046_v60 = vld [vmem:[%s12843_s28 + $0x68] sm:$0x1]  ;;  %v4789_v44 = vshrl.u32 %v13022_v56, 16 }
 0x336   : > { %9864 = vmatpush3.bf16.msra.mxu1 %v10968_v29  ;;  %14184 = vst [vmem:[#allocation31_spill] sm:$0xff] %v12990_v52  ;;  %v13003_v29 = vld [vmem:[%s12843_s28 + $0x54] sm:$0xf]  ;;  %10025 = vmatprep.mubr.bf16.mxu0 %v12990_v52  ;;  %v4724_v8 = vrot.slane %v4723_v43, 4  ;;  %v4776_v43 = vrot.slane %v4774_v34, 5 }
 0x337   : > { %9865 = vmatprep.subr.bf16.mxu1 %v10969_v47  ;;  %v4734_v46 = vrot.slane %v4733_v55, 4  ;;  %v4765_v10 = vshrl.u32 %v13003_v29, 16  ;;  %v4768_v21 = vshll.u32 %v13003_v29, 16  ;;  %v4747_v59 = vor.u32 %v4746_v45, %v4743_v35 }
 0x338   : > { %10056 = vmatpush3.bf16.msra.mxu0 %v10963_v63  ;;  %v10965_v63 = vld [vmem:[%s14052_s7 + $0x158] sm:$0xff]   ;;  %v4729_v33 = vsel %vm12888_vm3, %v4724_v8, %v4728_v22  ;;  %v4758_v55 = vrot.slane %v4757_v58, 4  ;;  %v4792_v35 = vshll.u32 %v13022_v56, 16  ;;  %v4798_v45 = vshll.u32 %v13041_v25, 16 }
 0x339   : > { %9834 = vmatmul.mubr.bf16.gmra.mrb[4].mxu1 %v12990_v52  ;;  %10057 = vmatprep.subr.bf16.mxu0 %v10964_v28  ;;  %v4739_v49 = vsel %vm12888_vm3, %v4734_v46, %v4738_v62  ;;  %v4767_v39 = vrot.slane %v4765_v10, 4  ;;  %v4770_v50 = vrot.slane %v4768_v21, 5  ;;  %v4748_v20 = vrot.slane %v4747_v59, 4 }
 0x33a   : > { %9866 = vmatpush3.bf16.msra.mxu1 %v10969_v47  ;;  %v10972_v47 = vld [vmem:[%s14052_s7 + $0x20] sm:$0xff]   ;;  %10026 = vmatmul.mubr.bf16.gmra.mrb[4].mxu0 %v13011_v3  ;;  %v13043_v22 = vcombine.low %v4729_v33, %v4739_v49  ;;  %v4784_v62 = vshll.u32 %v13019_v7, 16  ;;  %v4791_v10 = vrot.slane %v4789_v44, 4  ;;  %v4763_v21 = vsel %vm12888_vm3, %v4758_v55, %v4762_v38  ;;  %v10975_v38 = vld [vmem:[%s14052_s7 + $0x30] sm:$0xff]  }
 0x33b   : > { %9867 = vmatprep.subr.bf16.mxu1 %v10971_v27  ;;  %9837 = vmatprep.mubr.bf16.mxu1 %v13011_v3  ;;  %v4771_v5 = vor.u32 %v4770_v50, %v4767_v39  ;;  %v4753_v8 = vsel %vm12888_vm3, %v4748_v20, %v4752_v42  ;;  %v4794_v59 = vrot.slane %v4792_v35, 5  ;;  %v4800_v42 = vrot.slane %v4798_v45, 5  ;;  %v10973_v55 = vld [vmem:[%s14052_s7 + $0x170] sm:$0xff]   ;;  %v10977_v35 = vld [vmem:[%s14052_s7 + $0x38] sm:$0xff]  }
 0x33c   : > { %10058 = vmatpush3.bf16.msra.mxu0 %v10964_v28  ;;  %14186 = vst [vmem:[#allocation33_spill] sm:$0xff] %v13043_v22  ;;  %v10967_v28 = vld [vmem:[%s14052_s7 + $0x160] sm:$0xff]   ;;  %10029 = vmatprep.mubr.bf16.mxu0 %v13043_v22  ;;  %v4786_v46 = vrot.slane %v4784_v62, 5  ;;  %v13071_v34 = vcombine.low %v4753_v8, %v4763_v21  ;;  %v4808_v50 = vshll.u32 %v13046_v60, 16  ;;  %v4804_v20 = vrot.slane %v4802_v4, 4 }
 0x33d   : > { %10059 = vmatprep.subr.bf16.mxu0 %v10965_v63  ;;  %v4772_v31 = vrot.slane %v4771_v5, 4  ;;  %v4813_v58 = vshrl.u32 %v13057_v48, 16  ;;  %v13088_v5 = vld [vmem:[%s12843_s28 + $0x78] sm:$0xf]  ;;  %v4822_v44 = vshll.u32 %v13066_v0, 16  ;;  %v4826_v8 = vshrl.u32 %v13066_v0, 16 }
 0x33e   : > { %9868 = vmatpush3.bf16.msra.mxu1 %v10971_v27  ;;  %v4780_v27 = vrot.slane %v4778_v17, 4  ;;  %14187 = vst [vmem:[#allocation34_spill] sm:$0xff] %v13071_v34  ;;  %v4795_v17 = vor.u32 %v4794_v59, %v4791_v10  ;;  %v4810_v62 = vrot.slane %v4808_v50, 5  ;;  %v13105_v10 = vld [vmem:[%s12843_s28 + $0x7c] sm:$0xf] }
 0x33f   : > { %9869 = vmatprep.subr.bf16.mxu1 %v10972_v47  ;;  %v4777_v49 = vsel %vm12888_vm3, %v4772_v31, %v4776_v43  ;;  %v4824_v59 = vrot.slane %v4822_v44, 5  ;;  %v4828_v4 = vrot.slane %v4826_v8, 4  ;;  %v13109_v50 = vld [vmem:[%s12843_s28 + $0x80] sm:$0x1]  ;;  %v4846_v44 = vshll.u32 %v13105_v10, 16 }
 0x340   : > { %v4781_v33 = vor.u32 %v4780_v27, %v4776_v43  ;;  %10060 = vmatpush3.bf16.msra.mxu0 %v10965_v63  ;;  %v13077_v63 = vld [vmem:[%s12843_s28 + $0x74] sm:$0x1]  ;;  %v4816_v43 = vshll.u32 %v13057_v48, 16  ;;  %v4796_v31 = vrot.slane %v4795_v17, 4  ;;  %v4840_v17 = vshll.u32 %v13088_v5, 16 }
 0x341   : > { %9838 = vmatmul.mubr.bf16.gmra.mrb[8].mxu1 %v13043_v22  ;;  %10061 = vmatprep.subr.bf16.mxu0 %v10967_v28  ;;  %v13165_v22 = vld [vmem:[%s12843_s28 + $0x98] sm:$0x1] }
 0x342   : > { %9870 = vmatpush3.bf16.msra.mxu1 %v10972_v47  ;;  %v4782_v39 = vrot.slane %v4781_v33, 4  ;;  %v10970_v47 = vld [vmem:[%s14052_s7 + $0x168] sm:$0xff]   ;;  %10030 = vmatmul.mubr.bf16.gmra.mrb[8].mxu0 %v13071_v34  ;;  %v4805_v33 = vor.u32 %v4804_v20, %v4800_v42  ;;  %v4818_v21 = vrot.slane %v4816_v43, 5  ;;  %v4829_v43 = vor.u32 %v4828_v4, %v4824_v59  ;;  %14195 = vst [vmem:[#allocation42_spill] sm:$0xff] %v13165_v22 }
 0x343   : > { %9871 = vmatprep.subr.bf16.mxu1 %v10974_v40  ;;  %9841 = vmatprep.mubr.bf16.mxu1 %v13071_v34  ;;  %v13121_v20 = vld [vmem:[%s12843_s28 + $0x88] sm:$0xf]  ;;  %v4848_v4 = vrot.slane %v4846_v44, 5  ;;  %v13159_v44 = vld [vmem:[%s14052_s7 + $0x180] sm:$0xff]  }
 0x344   : > { %v4787_v27 = vsel %vm12888_vm3, %v4782_v39, %v4786_v46  ;;  %v4815_v46 = vrot.slane %v4813_v58, 4  ;;  %10062 = vmatpush3.bf16.msra.mxu0 %v10967_v28  ;;  %v4832_v39 = vshll.u32 %v13077_v63, 16  ;;  %v4801_v28 = vsel %vm12888_vm3, %v4796_v31, %v4800_v42  ;;  %14189 = vst [vmem:[#allocation36_spill] sm:$0xff] %v13121_v20  ;;  %v10976_v31 = vld [vmem:[%s14052_s7 + $0x178] sm:$0xff]  }
 0x345   : > { %v13102_v45 = vcombine.low %v4777_v49, %v4787_v27  ;;  %10063 = vmatprep.subr.bf16.mxu0 %v10970_v47  ;;  %v4806_v49 = vrot.slane %v4805_v33, 4  ;;  %v4850_v42 = vshrl.u32 %v13105_v10, 16  ;;  %v4874_v34 = vshrl.u32 %v13121_v20, 16 }
 0x346   : > { %9872 = vmatpush3.bf16.msra.mxu1 %v10974_v40  ;;  %v4837_v40 = vshrl.u32 %v13088_v5, 16  ;;  %v4819_v58 = vor.u32 %v4818_v21, %v4815_v46  ;;  %v4834_v27 = vrot.slane %v4832_v39, 5  ;;  %v4830_v21 = vrot.slane %v4829_v43, 4  ;;  %v13154_v43 = vld [vmem:[%s12843_s28 + $0x94] sm:$0xf] }
 0x347   : > { %14188 = vst [vmem:[#allocation35_spill] sm:$0xff] %v13102_v45  ;;  %9873 = vmatprep.subr.bf16.mxu1 %v10975_v38  ;;  %10033 = vmatprep.mubr.bf16.mxu0 %v13102_v45  ;;  %v4811_v8 = vsel %vm12888_vm3, %v4806_v49, %v4810_v62  ;;  %v13135_v62 = vld [vmem:[%s14052_s7 + $0x80] sm:$0xff]   ;;  %v4852_v39 = vrot.slane %v4850_v42, 4  ;;  %v4856_v49 = vshll.u32 %v13109_v50, 16  ;;  %14193 = vst [vmem:[#allocation40_spill] sm:$0xff] %v13154_v43 }
 0x348   : > { %v4839_v32 = vrot.slane %v4837_v40, 4  ;;  %10064 = vmatpush3.bf16.msra.mxu0 %v10970_v47  ;;  %v13130_v33 = vcombine.low %v4801_v28, %v4811_v8  ;;  %v4820_v46 = vrot.slane %v4819_v58, 4  ;;  %v13139_v40 = vld [vmem:[%s12843_s28 + $0x8c] sm:$0x1]  ;;  %v13151_v58 = vld [vmem:[%s12843_s28 + $0x90] sm:$0xf] }
 0x349   : > { %9842 = vmatmul.mubr.bf16.gmra.mrb[12].mxu1 %v13102_v45  ;;  %v4842_v45 = vrot.slane %v4840_v17, 5  ;;  %10065 = vmatprep.subr.bf16.mxu0 %v10973_v55  ;;  %14191 = vst [vmem:[#allocation38_spill] sm:$0xff] %v13139_v40  ;;  %v4835_v17 = vsel %vm12888_vm3, %v4830_v21, %v4834_v27  ;;  %14192 = vst [vmem:[#allocation39_spill] sm:$0xff] %v13151_v58  ;;  %v4853_v42 = vor.u32 %v4852_v39, %v4848_v4 }
 0x34a   : > { %9874 = vmatpush3.bf16.msra.mxu1 %v10975_v38  ;;  %14190 = vst [vmem:[#allocation37_spill] sm:$0xff] %v13130_v33  ;;  %v4861_v38 = vshrl.u32 %v13112_v30, 16  ;;  %10034 = vmatmul.mubr.bf16.gmra.mrb[12].mxu0 %v13130_v33  ;;  %v4825_v28 = vsel %vm12888_vm3, %v4820_v46, %v4824_v59  ;;  %v4858_v46 = vrot.slane %v4856_v49, 5  ;;  %v4885_v39 = vshrl.u32 %v13151_v58, 16  ;;  %v13175_v49 = vld [vmem:[%s12843_s28 + $0x9c] sm:$0xf] }
 0x34b   : > { %9875 = vmatprep.subr.bf16.mxu1 %v10977_v35  ;;  %v4843_v47 = vor.u32 %v4842_v45, %v4839_v32  ;;  %9845 = vmatprep.mubr.bf16.mxu1 %v13130_v33  ;;  %v4864_v32 = vshll.u32 %v13112_v30, 16  ;;  %v4870_v45 = vshll.u32 %v13121_v20, 16  ;;  %v13161_v8 = vcombine.low %v4825_v28, %v4835_v17  ;;  %14196 = vst [vmem:[#allocation43_spill] sm:$0xff] %v13175_v49 }
 0x34c   : > { %10066 = vmatpush3.bf16.msra.mxu0 %v10973_v55  ;;  %v4863_v27 = vrot.slane %v4861_v38, 4  ;;  %v4854_v55 = vrot.slane %v4853_v42, 4  ;;  %v4876_v28 = vrot.slane %v4874_v34, 4  ;;  %v4888_v17 = vshll.u32 %v13151_v58, 16 }
 0x34d   : > { %14194 = vst [vmem:[#allocation41_spill] sm:$0xff] %v13161_v8  ;;  %v4844_v59 = vrot.slane %v4843_v47, 4  ;;  %v4866_v21 = vrot.slane %v4864_v32, 5  ;;  %v4872_v33 = vrot.slane %v4870_v45, 5  ;;  %10067 = vmatprep.subr.bf16.mxu0 %v10976_v31  ;;  %10037 = vmatprep.mubr.bf16.mxu0 %v13161_v8  ;;  %v4894_v32 = vshll.u32 %v13154_v43, 16 }
 0x34e   : > { %9876 = vmatpush3.bf16.msra.mxu1 %v10977_v35  ;;  %v4880_v35 = vshll.u32 %v13139_v40, 16  ;;  %v13180_v45 = vld [vmem:[%s12843_s28 + $0xa0] sm:$0xf]  ;;  %v4904_v58 = vshll.u32 %v13165_v22, 16 }
 0x34f   : > { %9909 = vmatprep.subr.bf16.mxu1 %v13135_v62  ;;  %v4849_v47 = vsel %vm12888_vm3, %v4844_v59, %v4848_v4  ;;  %v4867_v38 = vor.u32 %v4866_v21, %v4863_v27  ;;  %14197 = vst [vmem:[#allocation44_spill] sm:$0xff] %v13180_v45  ;;  %v4887_v4 = vrot.slane %v4885_v39, 4  ;;  %v4898_v59 = vshrl.u32 %v13154_v43, 16  ;;  %v13199_v39 = vld [vmem:[%s12843_s28 + $0xa8] sm:$0xf] }
 0x350   : > { %v4882_v3 = vrot.slane %v4880_v35, 5  ;;  %10068 = vmatpush3.bf16.msra.mxu0 %v10976_v31  ;;  %v4877_v34 = vor.u32 %v4876_v28, %v4872_v33  ;;  %v4890_v21 = vrot.slane %v4888_v17, 5  ;;  %v4896_v52 = vrot.slane %v4894_v32, 5  ;;  %14200 = vst [vmem:[#allocation47_spill] sm:$0xff] %v13199_v39  ;;  %v13214_v43 = vld [vmem:[%s12843_s28 + $0xb0] sm:$0x1] }
 0x351   : > { %9846 = vmatmul.mubr.bf16.gmra.mrb[16].mxu1 %v13161_v8  ;;  %v4859_v8 = vsel %vm12888_vm3, %v4854_v55, %v4858_v46  ;;  %v4868_v27 = vrot.slane %v4867_v38, 4  ;;  %10101 = vmatprep.subr.bf16.mxu0 %v13159_v44  ;;  %v4900_v15 = vrot.slane %v4898_v59, 4  ;;  %v4909_v46 = vshrl.u32 %v13175_v49, 16  ;;  %v13195_v55 = vld [vmem:[%s12843_s28 + $0xa4] sm:$0x1]  ;;  %14203 = vst [vmem:[#allocation50_spill] sm:$0xff] %v13214_v43 }
 0x352   : > { %v13185_v42 = vcombine.low %v4849_v47, %v4859_v8  ;;  %v4878_v8 = vrot.slane %v4877_v34, 4  ;;  %v4891_v47 = vor.u32 %v4890_v21, %v4887_v4  ;;  %14199 = vst [vmem:[#allocation46_spill] sm:$0xff] %v13195_v55  ;;  %v4912_v35 = vshll.u32 %v13175_v49, 16  ;;  %v13203_v59 = vld [vmem:[%s12843_s28 + $0xac] sm:$0xf] }
 0x353   : > { %v4873_v31 = vsel %vm12888_vm3, %v4868_v27, %v4872_v33  ;;  %v4901_v38 = vor.u32 %v4900_v15, %v4896_v52  ;;  %v4906_v28 = vrot.slane %v4904_v58, 5  ;;  %v4911_v17 = vrot.slane %v4909_v46, 4  ;;  %14201 = vst [vmem:[#allocation48_spill] sm:$0xff] %v13203_v59 }
 0x354   : > { %14198 = vst [vmem:[#allocation45_spill] sm:$0xff] %v13185_v42  ;;  %10038 = vmatmul.mubr.bf16.gmra.mrb[16].mxu0 %v13185_v42  ;;  %9849 = vmatprep.mubr.bf16.mxu1 %v13185_v42  ;;  %v4918_v32 = vshll.u32 %v13180_v45, 16  ;;  %v4883_v33 = vsel %vm12888_vm3, %v4878_v8, %v4882_v3  ;;  %v4892_v27 = vrot.slane %v4891_v47, 4  ;;  %v4914_v4 = vrot.slane %v4912_v35, 5  ;;  %v13218_v8 = vld [vmem:[%s12843_s28 + $0xb4] sm:$0xf] }
 0x355   : > { %v4922_v34 = vshrl.u32 %v13180_v45, 16  ;;  %v13208_v21 = vcombine.low %v4873_v31, %v4883_v33  ;;  %v4902_v42 = vrot.slane %v4901_v38, 4  ;;  %v4928_v58 = vshll.u32 %v13195_v55, 16  ;;  %14204 = vst [vmem:[#allocation51_spill] sm:$0xff] %v13218_v8  ;;  %v13227_v38 = vld [vmem:[%s12843_s28 + $0xb8] sm:$0xf] }
 0x356   : > { %v4920_v15 = vrot.slane %v4918_v32, 5  ;;  %v4897_v46 = vsel %vm12888_vm3, %v4892_v27, %v4896_v52  ;;  %v4915_v49 = vor.u32 %v4914_v4, %v4911_v17  ;;  %v4933_v3 = vshrl.u32 %v13199_v39, 16 }
 0x357   : > { %14202 = vst [vmem:[#allocation49_spill] sm:$0xff] %v13208_v21  ;;  %v4924_v22 = vrot.slane %v4922_v34, 4  ;;  %10041 = vmatprep.mubr.bf16.mxu0 %v13208_v21  ;;  %v4907_v31 = vsel %vm12888_vm3, %v4902_v42, %v4906_v28  ;;  %v4930_v47 = vrot.slane %v4928_v58, 5  ;;  %v4936_v52 = vshll.u32 %v13199_v39, 16  ;;  %v13234_v58 = vld [vmem:[%s12843_s28 + $0xbc] sm:$0x1] }
 0x358   : > { %v4942_v35 = vshll.u32 %v13203_v59, 16  ;;  %v13229_v17 = vcombine.low %v4897_v46, %v4907_v31  ;;  %v4916_v32 = vrot.slane %v4915_v49, 4  ;;  %v4935_v27 = vrot.slane %v4933_v3, 4  ;;  %v13246_v31 = vld [vmem:[%s12843_s28 + $0xc4] sm:$0xf] }
 0x359   : > { %9850 = vmatmul.mubr.bf16.gmra.mrb[20].mxu1 %v13208_v21  ;;  %v4925_v33 = vor.u32 %v4924_v22, %v4920_v15  ;;  %v4938_v4 = vrot.slane %v4936_v52, 5  ;;  %v4946_v42 = vshrl.u32 %v13203_v59, 16  ;;  %v4952_v28 = vshll.u32 %v13214_v43, 16  ;;  %v13237_v21 = vld [vmem:[%s12843_s28 + $0xc0] sm:$0xf] }
 0x35a   : > { %14205 = vst [vmem:[#allocation52_spill] sm:$0xff] %v13229_v17  ;;  %v4944_v34 = vrot.slane %v4942_v35, 5  ;;  %9853 = vmatprep.mubr.bf16.mxu1 %v13229_v17  ;;  %v4921_v46 = vsel %vm12888_vm3, %v4916_v32, %v4920_v15  ;;  %v4957_v22 = vshrl.u32 %v13218_v8, 16  ;;  %v4960_v3 = vshll.u32 %v13218_v8, 16  ;;  %v13255_v8 = vld [vmem:[%s12843_s28 + $0xc8] sm:$0x1] }
 0x35b   : > { %v4926_v49 = vrot.slane %v4925_v33, 4  ;;  %v4939_v52 = vor.u32 %v4938_v4, %v4935_v27  ;;  %v4948_v35 = vrot.slane %v4946_v42, 4  ;;  %v4954_v43 = vrot.slane %v4952_v28, 5 }
 0x35c   : > { %10042 = vmatmul.mubr.bf16.gmra.mrb[20].mxu0 %v13229_v17  ;;  %v4966_v59 = vshll.u32 %v13227_v38, 16  ;;  %v4959_v17 = vrot.slane %v4957_v22, 4  ;;  %v4962_v55 = vrot.slane %v4960_v3, 5  ;;  %v4970_v15 = vshrl.u32 %v13227_v38, 16 }
 0x35d   : > { %v4931_v39 = vsel %vm12888_vm3, %v4926_v49, %v4930_v47  ;;  %v4940_v33 = vrot.slane %v4939_v52, 4  ;;  %v4949_v45 = vor.u32 %v4948_v35, %v4944_v34  ;;  %v4976_v4 = vshll.u32 %v13234_v58, 16 }
 0x35e   : > { %v13252_v32 = vcombine.low %v4921_v46, %v4931_v39  ;;  %v4968_v40 = vrot.slane %v4966_v59, 5  ;;  %v4963_v20 = vor.u32 %v4962_v55, %v4959_v17  ;;  %v4972_v27 = vrot.slane %v4970_v15, 4 }
 0x35f   : > { %v6293_v42 = vshrl.u32 %v13237_v21, 16  ;;  %v4945_v47 = vsel %vm12888_vm3, %v4940_v33, %v4944_v34  ;;  %v4950_v39 = vrot.slane %v4949_v45, 4  ;;  %v6296_v28 = vshll.u32 %v13237_v21, 16 }
 0x360   : > { %10045 = vmatprep.mubr.bf16.mxu0 %v13252_v32  ;;  %v6302_v59 = vshll.u32 %v13246_v31, 16  ;;  %v4964_v46 = vrot.slane %v4963_v20, 4  ;;  %v4973_v49 = vor.u32 %v4972_v27, %v4968_v40  ;;  %v4978_v55 = vrot.slane %v4976_v4, 5  ;;  %v7785_v20 = vld [vmem:[%s14055_s10 + $0x38] sm:$0xff] }
 0x361   : > { %9854 = vmatmul.mubr.bf16.gmra.mrb[24].mxu1 %v13252_v32  ;;  %v6295_v17 = vrot.slane %v6293_v42, 4  ;;  %v4955_v22 = vsel %vm12888_vm3, %v4950_v39, %v4954_v43  ;;  %v6298_v3 = vrot.slane %v6296_v28, 5  ;;  %v6306_v35 = vshrl.u32 %v13246_v31, 16 }
 0x362   : > { %v6304_v52 = vrot.slane %v6302_v59, 5  ;;  %v13268_v15 = vcombine.low %v4945_v47, %v4955_v22  ;;  %v4969_v45 = vsel %vm12888_vm3, %v4964_v46, %v4968_v40  ;;  %v4974_v34 = vrot.slane %v4973_v49, 4 }
 0x363   : > { %v6312_v33 = vshll.u32 %v13255_v8, 16  ;;  %v6299_v27 = vor.u32 %v6298_v3, %v6295_v17  ;;  %v6308_v43 = vrot.slane %v6306_v35, 4  ;;  %v8797_v4 = vrot.slane %v12860_v2, 9 }
 0x364   : > { %v5603_v42 = vrot.slane %v12863_v14, 5  ;;  %10046 = vmatmul.mubr.bf16.gmra.mrb[24].mxu0 %v13268_v15  ;;  %9857 = vmatprep.mubr.bf16.mxu1 %v13268_v15  ;;  %v4979_v40 = vsel %vm12888_vm3, %v4974_v34, %v4978_v55  ;;  %v5606_v39 = vrot.slane %v12866_v19, 5  ;;  %v13288_v28 = vcombine.low %v12860_v2, %v12863_v14 }
 0x365   : > { %v6314_v47 = vrot.slane %v6312_v33, 5  ;;  %v13290_v59 = vcombine.low %v4969_v45, %v4979_v40  ;;  %v6300_v46 = vrot.slane %v6299_v27, 4  ;;  %v6309_v49 = vor.u32 %v6308_v43, %v6304_v52 }
 0x366   : > { %v5604_v17 = vsel %vm13275_vm6, %v8797_v4, %v5603_v42  ;;  %v5605_v22 = vrot.slane %v5603_v42, 4  ;;  %v8798_v3 = vrot.slane %v12872_v11, 9  ;;  %v5610_v35 = vrot.slane %v12881_v26, 5 }
 0x367   : > { %v13298_v55 = vcombine.low %v12872_v11, %v12881_v26  ;;  %10049 = vmatprep.mubr.bf16.mxu0 %v13290_v59  ;;  %v6305_v2 = vsel %vm12888_vm3, %v6300_v46, %v6304_v52  ;;  %v6310_v14 = vrot.slane %v6309_v49, 4  ;;  %v8799_v19 = vrot.slane %v12905_v51, 9 }
 0x368   : > { %v5617_v45 = vrot.slane %v12912_v53, 5  ;;  %v14208_v34 = vcombine.low %v12846_v61, %v12849_v23  ;;  %v5607_v11 = vsel %vm13275_vm6, %v5605_v22, %v5606_v39  ;;  %v5611_v26 = vsel %vm13275_vm6, %v8798_v3, %v5610_v35 }
 0x369   : > { %9858 = vmatmul.mubr.bf16.gmra.mrb[28].mxu1 %v13290_v59  ;;  %v5612_v33 = vrot.slane %v5610_v35, 4  ;;  %v5620_v27 = vrot.slane %v12915_v54, 5  ;;  %v6315_v52 = vsel %vm12888_vm3, %v6310_v14, %v6314_v47  ;;  %v13316_v43 = vcombine.low %v5604_v17, %v5607_v11 }
 0x36a   : > { %9877 = vmatprep.mubr.bf16.mxu1 %v14208_v34  ;;  %v5618_v4 = vsel %vm13275_vm6, %v8799_v19, %v5617_v45  ;;  %v5619_v42 = vrot.slane %v5617_v45, 4  ;;  %v13320_v61 = vcombine.low %v6305_v2, %v6315_v52  ;;  %v14209_v23 = vrot.slane %v12894_v6, 5  ;;  %v10994_v6 = vld [vmem:[%s14052_s7 + $0x88] sm:$0xff]  }
 0x36b   : > { %v13328_v39 = vcombine.low %v12905_v51, %v12912_v53  ;;  %v8800_v54 = vrot.slane %v12919_v9, 9  ;;  %v5624_v49 = vrot.slane %v12937_v36, 5  ;;  %v5627_v17 = vrot.slane %v12942_v13, 5 }
 0x36c   : > { %v5614_v40 = vsel %vm13275_vm6, %v5612_v33, %v14209_v23  ;;  %v5621_v46 = vsel %vm13275_vm6, %v5619_v42, %v5620_v27  ;;  %10050 = vmatmul.mubr.bf16.gmra.mrb[28].mxu0 %v13320_v61  ;;  %v13345_v51 = vcombine.low %v12919_v9, %v12937_v36  ;;  %v8801_v53 = vrot.slane %v12950_v24, 9 }
 0x36d   : > { %v13331_v47 = vcombine.low %v5611_v26, %v5614_v40  ;;  %v13341_v22 = vcombine.low %v5618_v4, %v5621_v46  ;;  %v5631_v3 = vrot.slane %v12957_v12, 5  ;;  %10069 = vmatprep.mubr.bf16.mxu0 %v13316_v43  ;;  %v5625_v13 = vsel %vm13275_vm6, %v8800_v54, %v5624_v49  ;;  %v10983_v26 = vld [vmem:[%s14052_s7 + $0x188] sm:$0xff]   ;;  %v10997_v54 = vld [vmem:[%s14052_s7 + $0x90] sm:$0xff]  }
 0x36e   : > { %v5626_v35 = vrot.slane %v5624_v49, 4  ;;  %v5634_v2 = vrot.slane %v12974_v37, 5  ;;  %v13355_v14 = vcombine.low %v12950_v24, %v12957_v12  ;;  %v8802_v19 = vrot.slane %v12979_v1, 9 }
 0x36f   : > { %v5632_v9 = vsel %vm13275_vm6, %v8801_v53, %v5631_v3  ;;  %v5633_v36 = vrot.slane %v5631_v3, 4  ;;  %v5638_v45 = vrot.slane %v12985_v41, 5  ;;  %v5641_v11 = vrot.slane %v12994_v57, 5  ;;  %v10999_v3 = vld [vmem:[%s14052_s7 + $0x98] sm:$0xff]  }
 0x370   : > { %v5628_v34 = vsel %vm13275_vm6, %v5626_v35, %v5627_v17  ;;  %v13367_v37 = vcombine.low %v12979_v1, %v12985_v41  ;;  %v8803_v24 = vrot.slane %v13003_v29, 9  ;;  %v5645_v41 = vrot.slane %v13014_v16, 5 }
 0x371   : > { %9878 = vmatmul.mubr.bf16.vlgmr.msra.gmra.mrb[0].mxu1 %v13288_v28  ;;  %v13371_v12 = vcombine.low %v5625_v13, %v5628_v34  ;;  %v5635_v33 = vsel %vm13275_vm6, %v5633_v36, %v5634_v2  ;;  %v5639_v57 = vsel %vm13275_vm6, %v8802_v19, %v5638_v45  ;;  %v5640_v27 = vrot.slane %v5638_v45, 4 }
 0x372   : > { %9881 = vmatprep.mubr.bf16.mxu1 %v13298_v55  ;;  %9910 = vmatpush3.bf16.msra.mxu1 %v13135_v62  ;;  %v13381_v1 = vcombine.low %v5632_v9, %v5635_v33  ;;  %v5648_v52 = vrot.slane %v13019_v7, 5  ;;  %v13387_v4 = vcombine.low %v13003_v29, %v13014_v16  ;;  %v8804_v23 = vrot.slane %v13022_v56, 9  ;;  %v14211_v33 = vld [vmem:[#allocation38_spill] sm:$0xff] }
 0x373   : > { %9911 = vmatprep.subr.bf16.mxu1 %v10994_v6  ;;  %v5642_v42 = vsel %vm13275_vm6, %v5640_v27, %v5641_v11  ;;  %v5652_v40 = vrot.slane %v13041_v25, 5  ;;  %v5655_v62 = vrot.slane %v13046_v60, 5  ;;  %v5646_v29 = vsel %vm13275_vm6, %v8803_v24, %v5645_v41  ;;  %v14210_v11 = vld [vmem:[#allocation36_spill] sm:$0xff] }
 0x374   : > { %v13397_v46 = vcombine.low %v5639_v57, %v5642_v42  ;;  %v5647_v16 = vrot.slane %v5645_v41, 4  ;;  %v13403_v7 = vcombine.low %v13022_v56, %v13041_v25  ;;  %10070 = vmatmul.mubr.bf16.vlgmr.msra.gmra.mrb[0].mxu0 %v13331_v47  ;;  %v8805_v17 = vrot.slane %v13057_v48, 9  ;;  %v14212_v42 = vld [vmem:[#allocation39_spill] sm:$0xff] }
 0x375   : > { %v5653_v49 = vsel %vm13275_vm6, %v8804_v23, %v5652_v40  ;;  %v5654_v60 = vrot.slane %v5652_v40, 4  ;;  %v5659_v53 = vrot.slane %v13066_v0, 5  ;;  %10102 = vmatpush3.bf16.msra.mxu0 %v13159_v44  ;;  %10073 = vmatprep.mubr.bf16.mxu0 %v13341_v22  ;;  %v5662_v25 = vrot.slane %v13077_v63, 5  ;;  %v14213_v40 = vld [vmem:[#allocation40_spill] sm:$0xff] }
 0x376   : > { %9912 = vmatpush3.bf16.msra.mxu1 %v10994_v6  ;;  %v5649_v56 = vsel %vm13275_vm6, %v5647_v16, %v5648_v52  ;;  %v13420_v13 = vcombine.low %v13057_v48, %v13066_v0  ;;  %v8806_v35 = vrot.slane %v13088_v5, 9  ;;  %10103 = vmatprep.subr.bf16.mxu0 %v10983_v26  ;;  %v10986_v6 = vld [vmem:[%s14052_s7 + $0x190] sm:$0xff]   ;;  %v5666_v0 = vrot.slane %v13105_v10, 5 }
 0x377   : > { %v13426_v2 = vcombine.low %v5646_v29, %v5649_v56  ;;  %v5656_v44 = vsel %vm13275_vm6, %v5654_v60, %v5655_v62  ;;  %v5660_v9 = vsel %vm13275_vm6, %v8805_v17, %v5659_v53  ;;  %v5661_v63 = vrot.slane %v5659_v53, 4  ;;  %9913 = vmatprep.subr.bf16.mxu1 %v10997_v54  ;;  %v14214_v16 = vld [vmem:[#allocation42_spill] sm:$0xff]  ;;  %v14215_v60 = vld [vmem:[#allocation43_spill] sm:$0xff] }
 0x378   : > { %v13433_v48 = vcombine.low %v5653_v49, %v5656_v44  ;;  %v5669_v36 = vrot.slane %v13109_v50, 5  ;;  %v13439_v19 = vcombine.low %v13088_v5, %v13105_v10  ;;  %v8807_v34 = vrot.slane %v13112_v30, 9  ;;  %v10989_v50 = vld [vmem:[%s14052_s7 + $0x198] sm:$0xff]   ;;  %v11004_v44 = vld [vmem:[%s14052_s7 + $0xa8] sm:$0xff]  }
 0x379   : > { %9882 = vmatmul.mubr.bf16.gmra.mrb[4].mxu1 %v13328_v39  ;;  %v5663_v45 = vsel %vm13275_vm6, %v5661_v63, %v5662_v25  ;;  %v5673_v24 = vrot.slane %v14210_v11, 5  ;;  %v5676_v57 = vrot.slane %v14211_v33, 5  ;;  %10104 = vmatpush3.bf16.msra.mxu0 %v10983_v26  ;;  %v5667_v5 = vsel %vm13275_vm6, %v8806_v35, %v5666_v0  ;;  %v14216_v63 = vld [vmem:[#allocation44_spill] sm:$0xff] }
 0x37a   : > { %9885 = vmatprep.mubr.bf16.mxu1 %v13345_v51  ;;  %9914 = vmatpush3.bf16.msra.mxu1 %v10997_v54  ;;  %v13450_v27 = vcombine.low %v5660_v9, %v5663_v45  ;;  %v5668_v10 = vrot.slane %v5666_v0, 4  ;;  %v13456_v41 = vcombine.low %v13112_v30, %v14210_v11  ;;  %v8808_v23 = vrot.slane %v14212_v42, 9  ;;  %v11002_v54 = vld [vmem:[%s14052_s7 + $0xa0] sm:$0xff]  }
 0x37b   : > { %9915 = vmatprep.subr.bf16.mxu1 %v10999_v3  ;;  %10105 = vmatprep.subr.bf16.mxu0 %v10986_v6  ;;  %v5674_v52 = vsel %vm13275_vm6, %v8807_v34, %v5673_v24  ;;  %v5675_v26 = vrot.slane %v5673_v24, 4  ;;  %v5680_v62 = vrot.slane %v14213_v40, 5  ;;  %v5683_v30 = vrot.slane %v14214_v16, 5  ;;  %v14219_v33 = vld [vmem:[#allocation48_spill] sm:$0xff] }
 0x37c   : > { %v5670_v29 = vsel %vm13275_vm6, %v5668_v10, %v5669_v36  ;;  %v13470_v49 = vcombine.low %v14212_v42, %v14213_v40  ;;  %v8809_v17 = vrot.slane %v14215_v60, 9  ;;  %10074 = vmatmul.mubr.bf16.gmra.mrb[4].mxu0 %v13371_v12  ;;  %v5687_v0 = vrot.slane %v14216_v63, 5  ;;  %v14217_v36 = vld [vmem:[#allocation46_spill] sm:$0xff] }
 0x37d   : > { %v13474_v53 = vcombine.low %v5667_v5, %v5670_v29  ;;  %v5677_v56 = vsel %vm13275_vm6, %v5675_v26, %v5676_v57  ;;  %v5681_v25 = vsel %vm13275_vm6, %v8808_v23, %v5680_v62  ;;  %v5682_v35 = vrot.slane %v5680_v62, 4  ;;  %10077 = vmatprep.mubr.bf16.mxu0 %v13381_v1  ;;  %10106 = vmatpush3.bf16.msra.mxu0 %v10986_v6  ;;  %v14218_v6 = vld [vmem:[#allocation47_spill] sm:$0xff]  ;;  %v14220_v5 = vld [vmem:[#allocation50_spill] sm:$0xff] }
 0x37e   : > { %9916 = vmatpush3.bf16.msra.mxu1 %v10999_v3  ;;  %v13484_v9 = vcombine.low %v5674_v52, %v5677_v56  ;;  %v5690_v45 = vrot.slane %v14217_v36, 5  ;;  %v13490_v34 = vcombine.low %v14215_v60, %v14216_v63  ;;  %10107 = vmatprep.subr.bf16.mxu0 %v10989_v50  ;;  %v10993_v3 = vld [vmem:[%s14052_s7 + $0x1a0] sm:$0xff]   ;;  %v8810_v24 = vrot.slane %v14218_v6, 9  ;;  %v14221_v29 = vld [vmem:[#allocation51_spill] sm:$0xff]  ;;  %v10998_v60 = vld [vmem:[%s14052_s7 + $0x1a8] sm:$0xff]  }
 0x37f   : > { %v5684_v11 = vsel %vm13275_vm6, %v5682_v35, %v5683_v30  ;;  %9917 = vmatprep.subr.bf16.mxu1 %v11002_v54  ;;  %v5694_v57 = vrot.slane %v14219_v33, 5  ;;  %v5697_v10 = vrot.slane %v14220_v5, 5  ;;  %v5688_v26 = vsel %vm13275_vm6, %v8809_v17, %v5687_v0  ;;  %v11014_v5 = vld [vmem:[%s14052_s7 + $0xc0] sm:$0xff]  }
 0x380   : > { %v13501_v52 = vcombine.low %v5681_v25, %v5684_v11  ;;  %v5689_v42 = vrot.slane %v5687_v0, 4  ;;  %v13507_v23 = vcombine.low %v14218_v6, %v14219_v33  ;;  %v8811_v16 = vrot.slane %v14221_v29, 9 }
 0x381   : > { %9886 = vmatmul.mubr.bf16.gmra.mrb[8].mxu1 %v13355_v14  ;;  %v5695_v40 = vsel %vm13275_vm6, %v8810_v24, %v5694_v57  ;;  %v5696_v62 = vrot.slane %v5694_v57, 4  ;;  %v5701_v30 = vrot.slane %v13227_v38, 5  ;;  %10108 = vmatpush3.bf16.msra.mxu0 %v10989_v50  ;;  %v5704_v56 = vrot.slane %v13234_v58, 5  ;;  %v11007_v58 = vld [vmem:[%s14052_s7 + $0xb0] sm:$0xff]  }
 0x382   : > { %9889 = vmatprep.mubr.bf16.mxu1 %v13367_v37  ;;  %9918 = vmatpush3.bf16.msra.mxu1 %v11002_v54  ;;  %v5691_v17 = vsel %vm13275_vm6, %v5689_v42, %v5690_v45  ;;  %v13522_v25 = vcombine.low %v14221_v29, %v13227_v38  ;;  %v8902_v54 = vrot.slane %v13237_v21, 9  ;;  %v6581_v38 = vrot.slane %v13246_v31, 5  ;;  %v11038_v29 = vld [vmem:[%s12843_s28] sm:$0xf] }
 0x383   : > { %9919 = vmatprep.subr.bf16.mxu1 %v11004_v44  ;;  %10109 = vmatprep.subr.bf16.mxu0 %v10993_v3  ;;  %v13525_v35 = vcombine.low %v5688_v26, %v5691_v17  ;;  %v5698_v50 = vsel %vm13275_vm6, %v5696_v62, %v5697_v10  ;;  %v5702_v63 = vsel %vm13275_vm6, %v8811_v16, %v5701_v30  ;;  %v5703_v0 = vrot.slane %v5701_v30, 4  ;;  %v11010_v10 = vld [vmem:[%s14052_s7 + $0x1c0] sm:$0xff]  }
 0x384   : > { %v13534_v36 = vcombine.low %v5695_v40, %v5698_v50  ;;  %v6584_v45 = vrot.slane %v13255_v8, 5  ;;  %10078 = vmatmul.mubr.bf16.gmra.mrb[8].mxu0 %v13397_v46  ;;  %v13543_v6 = vcombine.low %v13237_v21, %v13246_v31  ;;  %v6582_v33 = vsel %vm13275_vm6, %v8902_v54, %v6581_v38  ;;  %v11009_v8 = vld [vmem:[%s14052_s7 + $0xb8] sm:$0xff]   ;;  %v11036_v26 = vld [vmem:[%s12843_s28 + $0x4] sm:$0xf]  ;;  %v11037_v40 = vld [vmem:[%s12843_s28 + $0x8] sm:$0x1] }
 0x385   : > { %v5705_v11 = vsel %vm13275_vm6, %v5703_v0, %v5704_v56  ;;  %10081 = vmatprep.mubr.bf16.mxu0 %v13426_v2  ;;  %10110 = vmatpush3.bf16.msra.mxu0 %v10993_v3  ;;  %v6583_v57 = vrot.slane %v6581_v38, 4  ;;  %v11008_v3 = vld [vmem:[%s14052_s7 + $0x1b8] sm:$0xff]   ;;  %v5596_v42 = vrot.slane %v11036_v26, 5  ;;  %v5599_v62 = vrot.slane %v11037_v40, 5  ;;  %v11016_v54 = vld [vmem:[%s14052_s7 + $0xc8] sm:$0xff]   ;;  %v11012_v0 = vld [vmem:[%s14052_s7 + $0x1d0] sm:$0xff]  }
 0x386   : > { %9920 = vmatpush3.bf16.msra.mxu1 %v11004_v44  ;;  %v13546_v24 = vcombine.low %v5702_v63, %v5705_v11  ;;  %10111 = vmatprep.subr.bf16.mxu0 %v10998_v60  ;;  %v11003_v44 = vld [vmem:[%s14052_s7 + $0x1b0] sm:$0xff]   ;;  %v8796_v16 = vrot.slane %v11038_v29, 9  ;;  %v11011_v50 = vld [vmem:[%s14052_s7 + $0x1c8] sm:$0xff]   ;;  %v11020_v38 = vld [vmem:[%s14052_s7 + $0xe0] sm:$0xff]  }
 0x387   : > { %9921 = vmatprep.subr.bf16.mxu1 %v11007_v58  ;;  %v6585_v21 = vsel %vm13275_vm6, %v6583_v57, %v6584_v45  ;;  %v5598_v30 = vrot.slane %v5596_v42, 4  ;;  %v11017_v63 = vld [vmem:[%s14052_s7 + $0xd0] sm:$0xff]   ;;  %v11022_v45 = vld [vmem:[%s14052_s7 + $0xe8] sm:$0xff]   ;;  %v11015_v11 = vld [vmem:[%s14052_s7 + $0x1e0] sm:$0xff]  }
 0x388   : > { %v13560_v31 = vcombine.low %v6582_v33, %v6585_v21  ;;  %v11018_v33 = vld [vmem:[%s14052_s7 + $0x1e8] sm:$0xff]   ;;  %v11024_v57 = vld [vmem:[%s14052_s7 + $0xf0] sm:$0xff]   ;;  %v11026_v21 = vld [vmem:[%s14052_s7 + $0x1f8] sm:$0xff]  }
 0x389   : > { %9890 = vmatmul.mubr.bf16.gmra.mrb[12].mxu1 %v13387_v4  ;;  %10112 = vmatpush3.bf16.msra.mxu0 %v10998_v60  ;;  %v5597_v60 = vsel %vm13275_vm6, %v8796_v16, %v5596_v42  ;;  %v5600_v17 = vsel %vm13275_vm6, %v5598_v30, %v5599_v62  ;;  %v14222_v42 = vld [vmem:[#allocation30_spill] sm:$0xff]  ;;  %v11029_v40 = vld [vmem:[%s14052_s7 + $0x208] sm:$0xff]   ;;  %v14223_v62 = vld [vmem:[#allocation31_spill] sm:$0xff] }
 0x38a   : > { %9893 = vmatprep.mubr.bf16.mxu1 %v13403_v7  ;;  %9922 = vmatpush3.bf16.msra.mxu1 %v11007_v58  ;;  %v8828_v56 = vcombine.low %v5597_v60, %v5600_v17  ;;  %v11013_v58 = vld [vmem:[%s14052_s7 + $0x1d8] sm:$0xff]   ;;  %v14224_v29 = vld [vmem:[#allocation32_spill] sm:$0xff]  ;;  %v14226_v16 = vld [vmem:[#allocation34_spill] sm:$0xff] }
 0x38b   : > { %9923 = vmatprep.subr.bf16.mxu1 %v11009_v8  ;;  %10113 = vmatprep.subr.bf16.mxu0 %v11003_v44  ;;  %v11032_v30 = vld [vmem:[%s14052_s7 + $0x220] sm:$0xff]   ;;  %v14228_v60 = vld [vmem:[#allocation37_spill] sm:$0xff]  ;;  %v11034_v17 = vld [vmem:[%s14052_s7 + $0x230] sm:$0xff]  }
 0x38c   : > { %10082 = vmatmul.mubr.bf16.gmra.mrb[12].mxu0 %v13433_v48 }
 0x38d   : > { %10085 = vmatprep.mubr.bf16.mxu0 %v13450_v27  ;;  %10114 = vmatpush3.bf16.msra.mxu0 %v11003_v44  ;;  %v11021_v44 = vld [vmem:[%s14052_s7 + $0x1f0] sm:$0xff]  }
 0x38e   : > { %9924 = vmatpush3.bf16.msra.mxu1 %v11009_v8  ;;  %10115 = vmatprep.subr.bf16.mxu0 %v11008_v3  ;;  %v11027_v8 = vld [vmem:[%s14052_s7 + $0xf8] sm:$0xff]  }
 0x38f   : > { %9957 = vmatprep.subr.bf16.mxu1 %v11014_v5 }
 0x391   : > { %9894 = vmatmul.mubr.bf16.gmra.mrb[16].mxu1 %v13420_v13  ;;  %10116 = vmatpush3.bf16.msra.mxu0 %v11008_v3  ;;  %v11028_v3 = vld [vmem:[%s14052_s7 + $0x200] sm:$0xff]  }
 0x392   : > { %9897 = vmatprep.mubr.bf16.mxu1 %v13439_v19  ;;  %10149 = vmatprep.subr.bf16.mxu0 %v11010_v10 }
 0x394   : > { %10086 = vmatmul.mubr.bf16.gmra.mrb[16].mxu0 %v13474_v53 }
 0x395   : > { %10089 = vmatprep.mubr.bf16.mxu0 %v13484_v9 }
 0x399   : > { %9898 = vmatmul.mubr.bf16.gmra.mrb[20].mxu1 %v13456_v41 }
 0x39a   : > { %9901 = vmatprep.mubr.bf16.mxu1 %v13470_v49 }
 0x39c   : > { %10090 = vmatmul.mubr.bf16.gmra.mrb[20].mxu0 %v13501_v52 }
 0x39d   : > { %10093 = vmatprep.mubr.bf16.mxu0 %v13525_v35 }
 0x3a1   : > { %9902 = vmatmul.mubr.bf16.gmra.mrb[24].mxu1 %v13490_v34 }
 0x3a2   : > { %9905 = vmatprep.mubr.bf16.mxu1 %v13507_v23 }
 0x3a4   : > { %10094 = vmatmul.mubr.bf16.gmra.mrb[24].mxu0 %v13534_v36 }
 0x3a5   : > { %10097 = vmatprep.mubr.bf16.mxu0 %v13546_v24 }
 0x3a9   : > { %9906 = vmatmul.mubr.bf16.gmra.mrb[28].mxu1 %v13522_v25 }
 0x3aa   : > { %9925 = vmatprep.mubr.bf16.mxu1 %v8828_v56  ;;  %v14230_v56 = vld [vmem:[#allocation45_spill] sm:$0xff] }
 0x3ac   : > { %10098 = vmatmul.mubr.bf16.gmra.mrb[28].mxu0 %v13560_v31 }
 0x3ad   : > { %10117 = vmatprep.mubr.bf16.mxu0 %v13298_v55 }
 0x3b1   : > { %9926 = vmatmul.mubr.bf16.vlgmr.msra.gmra.mrb[0].mxu1 %v13316_v43  ;;  %v11019_v43 = vld [vmem:[%s14052_s7 + $0xd8] sm:$0xff]  }
 0x3b2   : > { %9929 = vmatprep.mubr.bf16.mxu1 %v13331_v47  ;;  %9958 = vmatpush3.bf16.msra.mxu1 %v11014_v5  ;;  %v13669_v5 = vld [vmem:[%s12843_s28 + $0xcc] sm:$0xf] }
 0x3b3   : > { %9959 = vmatprep.subr.bf16.mxu1 %v11016_v54 }
 0x3b4   : > { %10118 = vmatmul.mubr.bf16.vlgmr.msra.gmra.mrb[0].mxu0 %v13328_v39 }
 0x3b5   : > { %10150 = vmatpush3.bf16.msra.mxu0 %v11010_v10  ;;  %10121 = vmatprep.mubr.bf16.mxu0 %v13345_v51  ;;  %v13672_v10 = vld [vmem:[%s12843_s28 + $0xd0] sm:$0xf] }
 0x3b6   : > { %9960 = vmatpush3.bf16.msra.mxu1 %v11016_v54  ;;  %10151 = vmatprep.subr.bf16.mxu0 %v11011_v50  ;;  %v8944_v26 = vcombine.low %v13669_v5, %v13672_v10  ;;  %v7116_v54 = vshll.u32 %v13669_v5, 16 }
 0x3b7   : > { %9961 = vmatprep.subr.bf16.mxu1 %v11017_v63 }
 0x3b9   : > { %9930 = vmatmul.mubr.bf16.gmra.mrb[4].mxu1 %v13341_v22  ;;  %10152 = vmatpush3.bf16.msra.mxu0 %v11011_v50  ;;  %v7126_v50 = vshrl.u32 %v13672_v10, 16 }
 0x3ba   : > { %9933 = vmatprep.mubr.bf16.mxu1 %v13371_v12  ;;  %9962 = vmatpush3.bf16.msra.mxu1 %v11017_v63  ;;  %v14232_v63 = vld [vmem:[#allocation52_spill] sm:$0xff] }
 0x3bb   : > { %9963 = vmatprep.subr.bf16.mxu1 %v11019_v43  ;;  %10153 = vmatprep.subr.bf16.mxu0 %v11012_v0 }
 0x3bc   : > { %10122 = vmatmul.mubr.bf16.gmra.mrb[4].mxu0 %v13355_v14 }
 0x3bd   : > { %10125 = vmatprep.mubr.bf16.mxu0 %v13367_v37  ;;  %10154 = vmatpush3.bf16.msra.mxu0 %v11012_v0  ;;  %v7118_v0 = vrot.slane %v7116_v54, 5 }
 0x3be   : > { %9964 = vmatpush3.bf16.msra.mxu1 %v11019_v43  ;;  %10155 = vmatprep.subr.bf16.mxu0 %v11013_v58  ;;  %v7122_v43 = vshll.u32 %v13672_v10, 16 }
 0x3bf   : > { %9965 = vmatprep.subr.bf16.mxu1 %v11020_v38 }
 0x3c1   : > { %9934 = vmatmul.mubr.bf16.gmra.mrb[8].mxu1 %v13381_v1  ;;  %10156 = vmatpush3.bf16.msra.mxu0 %v11013_v58  ;;  %v7128_v58 = vrot.slane %v7126_v50, 4 }
 0x3c2   : > { %9937 = vmatprep.mubr.bf16.mxu1 %v13397_v46  ;;  %9966 = vmatpush3.bf16.msra.mxu1 %v11020_v38  ;;  %v4576_v38 = vld [vmem:[%s12843_s28 + $0xd4] sm:$0x1] }
 0x3c3   : > { %9967 = vmatprep.subr.bf16.mxu1 %v11022_v45  ;;  %10157 = vmatprep.subr.bf16.mxu0 %v11015_v11 }
 0x3c4   : > { %10126 = vmatmul.mubr.bf16.gmra.mrb[8].mxu0 %v13387_v4 }
 0x3c5   : > { %10129 = vmatprep.mubr.bf16.mxu0 %v13403_v7  ;;  %10158 = vmatpush3.bf16.msra.mxu0 %v11015_v11 }
 0x3c6   : > { %9968 = vmatpush3.bf16.msra.mxu1 %v11022_v45  ;;  %10159 = vmatprep.subr.bf16.mxu0 %v11018_v33 }
 0x3c7   : > { %9969 = vmatprep.subr.bf16.mxu1 %v11024_v57 }
 0x3c9   : > { %9938 = vmatmul.mubr.bf16.gmra.mrb[12].mxu1 %v13426_v2  ;;  %10160 = vmatpush3.bf16.msra.mxu0 %v11018_v33  ;;  %v7132_v33 = vshll.u32 %v4576_v38, 16 }
 0x3ca   : > { %9941 = vmatprep.mubr.bf16.mxu1 %v13433_v48  ;;  %9970 = vmatpush3.bf16.msra.mxu1 %v11024_v57 }
 0x3cb   : > { %9971 = vmatprep.subr.bf16.mxu1 %v11027_v8  ;;  %10161 = vmatprep.subr.bf16.mxu0 %v11021_v44 }
 0x3cc   : > { %10130 = vmatmul.mubr.bf16.gmra.mrb[12].mxu0 %v13420_v13 }
 0x3cd   : > { %10133 = vmatprep.mubr.bf16.mxu0 %v13439_v19  ;;  %10162 = vmatpush3.bf16.msra.mxu0 %v11021_v44 }
 0x3ce   : > { %9972 = vmatpush3.bf16.msra.mxu1 %v11027_v8  ;;  %10163 = vmatprep.subr.bf16.mxu0 %v11026_v21  ;;  %v7134_v8 = vrot.slane %v7132_v33, 5 }
 0x3d1   : > { %9942 = vmatmul.mubr.bf16.gmra.mrb[16].mxu1 %v13450_v27  ;;  %10164 = vmatpush3.bf16.msra.mxu0 %v11026_v21 }
 0x3d2   : > { %9945 = vmatprep.mubr.bf16.mxu1 %v13474_v53  ;;  %10197 = vmatprep.subr.bf16.mxu0 %v11028_v3 }
 0x3d4   : > { %10134 = vmatmul.mubr.bf16.gmra.mrb[16].mxu0 %v13456_v41 }
 0x3d5   : > { %10137 = vmatprep.mubr.bf16.mxu0 %v13470_v49 }
 0x3d9   : > { %9946 = vmatmul.mubr.bf16.gmra.mrb[20].mxu1 %v13484_v9 }
 0x3da   : > { %9949 = vmatprep.mubr.bf16.mxu1 %v13501_v52 }
 0x3dc   : > { %10138 = vmatmul.mubr.bf16.gmra.mrb[20].mxu0 %v13490_v34 }
 0x3dd   : > { %10141 = vmatprep.mubr.bf16.mxu0 %v13507_v23 }
 0x3e1   : > { %9950 = vmatmul.mubr.bf16.gmra.mrb[24].mxu1 %v13525_v35 }
 0x3e2   : > { %9953 = vmatprep.mubr.bf16.mxu1 %v13534_v36 }
 0x3e4   : > { %10142 = vmatmul.mubr.bf16.gmra.mrb[24].mxu0 %v13522_v25 }
 0x3e5   : > { %10145 = vmatprep.mubr.bf16.mxu0 %v13543_v6 }
 0x3e9   : > { %9954 = vmatmul.mubr.bf16.gmra.mrb[28].mxu1 %v13546_v24 }
 0x3ea   : > { %9973 = vmatprep.mubr.bf16.mxu1 %v13288_v28  ;;  %v11030_v28 = vld [vmem:[%s14052_s7 + $0x210] sm:$0xff]  }
 0x3ec   : > { %10146 = vmatmul.mubr.bf16.gmra.mrb[28].mxu0 %v8944_v26 }
 0x3ed   : > { %10165 = vmatprep.mubr.bf16.mxu0 %v14222_v42 }
 0x3f1   : > { %9974 = vmatmul.mubr.bf16.vlgmr.msra.gmra.mrb[0].mxu1 %v13298_v55  ;;  %v11031_v55 = vld [vmem:[%s14052_s7 + $0x218] sm:$0xff]  }
 0x3f2   : > { %9977 = vmatprep.mubr.bf16.mxu1 %v13328_v39  ;;  %v14225_v39 = vld [vmem:[#allocation33_spill] sm:$0xff] }
 0x3f4   : > { %10166 = vmatmul.mubr.bf16.vlgmr.msra.gmra.mrb[0].mxu0 %v14223_v62 }
 0x3f5   : > { %10198 = vmatpush3.bf16.msra.mxu0 %v11028_v3  ;;  %10169 = vmatprep.mubr.bf16.mxu0 %v14224_v29 }
 0x3f6   : > { %10199 = vmatprep.subr.bf16.mxu0 %v11029_v40 }
 0x3f9   : > { %9978 = vmatmul.mubr.bf16.gmra.mrb[4].mxu1 %v13345_v51  ;;  %10200 = vmatpush3.bf16.msra.mxu0 %v11029_v40  ;;  %v11033_v51 = vld [vmem:[%s14052_s7 + $0x228] sm:$0xff]  }
 0x3fa   : > { %9981 = vmatprep.mubr.bf16.mxu1 %v13355_v14  ;;  %10201 = vmatprep.subr.bf16.mxu0 %v11030_v28  ;;  %v14227_v14 = vld [vmem:[#allocation35_spill] sm:$0xff] }
 0x3fc   : > { %10170 = vmatmul.mubr.bf16.gmra.mrb[4].mxu0 %v14225_v39 }
 0x3fd   : > { %10173 = vmatprep.mubr.bf16.mxu0 %v14226_v16  ;;  %10202 = vmatpush3.bf16.msra.mxu0 %v11030_v28 }
 0x3fe   : > { %10203 = vmatprep.subr.bf16.mxu0 %v11031_v55 }
 0x401   : > { %9982 = vmatmul.mubr.bf16.gmra.mrb[8].mxu1 %v13367_v37  ;;  %10204 = vmatpush3.bf16.msra.mxu0 %v11031_v55  ;;  %v11035_v37 = vld [vmem:[%s14052_s7 + $0x238] sm:$0xff]  }
 0x402   : > { %9985 = vmatprep.mubr.bf16.mxu1 %v13387_v4  ;;  %10205 = vmatprep.subr.bf16.mxu0 %v11032_v30  ;;  %v14229_v4 = vld [vmem:[#allocation41_spill] sm:$0xff] }
 0x404   : > { %10174 = vmatmul.mubr.bf16.gmra.mrb[8].mxu0 %v14227_v14 }
 0x405   : > { %10177 = vmatprep.mubr.bf16.mxu0 %v14228_v60  ;;  %10206 = vmatpush3.bf16.msra.mxu0 %v11032_v30 }
 0x406   : > { %10207 = vmatprep.subr.bf16.mxu0 %v11033_v51 }
 0x409   : > { %9986 = vmatmul.mubr.bf16.gmra.mrb[12].mxu1 %v13403_v7  ;;  %10208 = vmatpush3.bf16.msra.mxu0 %v11033_v51  ;;  %v14231_v7 = vld [vmem:[#allocation49_spill] sm:$0xff] }
 0x40a   : > { %9989 = vmatprep.mubr.bf16.mxu1 %v13420_v13  ;;  %10209 = vmatprep.subr.bf16.mxu0 %v11034_v17  ;;  %v7113_v13 = vshrl.u32 %v13669_v5, 16 }
 0x40c   : > { %10178 = vmatmul.mubr.bf16.gmra.mrb[12].mxu0 %v14229_v4 }
 0x40d   : > { %10181 = vmatprep.mubr.bf16.mxu0 %v14230_v56  ;;  %10210 = vmatpush3.bf16.msra.mxu0 %v11034_v17 }
 0x40e   : > { %10211 = vmatprep.subr.bf16.mxu0 %v11035_v37 }
 0x411   : > { %9990 = vmatmul.mubr.bf16.gmra.mrb[16].mxu1 %v13439_v19  ;;  %10212 = vmatpush3.bf16.msra.mxu0 %v11035_v37  ;;  %v7115_v19 = vrot.slane %v7113_v13, 4 }
 0x412   : > { %9993 = vmatprep.mubr.bf16.mxu1 %v13456_v41  ;;  %v7124_v41 = vrot.slane %v7122_v43, 5 }
 0x413   : > { %v7119_v45 = vor.u32 %v7118_v0, %v7115_v19 }
 0x414   : > { %10182 = vmatmul.mubr.bf16.gmra.mrb[16].mxu0 %v14231_v7  ;;  %v7129_v11 = vor.u32 %v7128_v58, %v7124_v41 }
 0x415   : > { %10185 = vmatprep.mubr.bf16.mxu0 %v14232_v63  ;;  %v7120_v57 = vrot.slane %v7119_v45, 4 }
 0x419   : > { %9994 = vmatmul.mubr.bf16.gmra.mrb[20].mxu1 %v13470_v49  ;;  %v7130_v49 = vrot.slane %v7129_v11, 4 }
 0x41a   : > { %9997 = vmatprep.mubr.bf16.mxu1 %v13490_v34  ;;  %v7125_v34 = vsel %vm12888_vm3, %v7120_v57, %v7124_v41  ;;  %v13834_v41 = vld [vmem:[%s14053_s8] ss:$0 sm:$0xff] }
 0x41b   : > { %v13840_v57 = vld [vmem:[%s14233_s17] ss:$0 sm:$0xff] }
 0x41c   : > { %10186 = vmatmul.mubr.bf16.gmra.mrb[20].mxu0 %v13252_v32  ;;  %v7135_v32 = vsel %vm12888_vm3, %v7130_v49, %v7134_v8 }
 0x41d   : > { %10189 = vmatprep.mubr.bf16.mxu0 %v13268_v15  ;;  %v8969_v15 = vcombine.low %v7125_v34, %v7135_v32 }
 0x421   : > { %9998 = vmatmul.mubr.bf16.gmra.mrb[24].mxu1 %v13507_v23  ;;  %v7783_v23 = vld [vmem:[%s14055_s10 + $0x28] sm:$0xff] }
 0x422   : > { %10001 = vmatprep.mubr.bf16.mxu1 %v13522_v25 }
 0x424   : > { %10190 = vmatmul.mubr.bf16.gmra.mrb[24].mxu0 %v13290_v59  ;;  %v7779_v59 = vld [vmem:[%s14055_s10 + $0x8] sm:$0xff] }
 0x425   : > { %10193 = vmatprep.mubr.bf16.mxu0 %v13320_v61  ;;  %v10309_v61 = vpack.c.bf16 %v7779_v59, %v7778_v18 }
 0x427   : > { %10310 = vmatprep.subr.bf16.mxu1 %v10309_v61 }
 0x428   : > { %10312 = vmatpush3.bf16.msra.mxu1 %v10309_v61 }
 0x429   : > { %10002 = vmatmul.mubr.bf16.gmra.mrb[28].mxu1 %v13543_v6 }
 0x42c   : > { %10194 = vmatmul.mubr.bf16.gmra.mrb[28].mxu0 %v8969_v15 }
 0x42d   : > { %10213 = vmatprep.mubr.bf16.mxu0 %v13331_v47  ;;  %v7401_v47 = vrot.slane %v13672_v10, 5 }
 0x434   : > { %10214 = vmatmul.mubr.bf16.vlgmr.msra.gmra.mrb[0].mxu0 %v13341_v22  ;;  %v7780_v22 = vld [vmem:[%s14055_s10 + $0x10] sm:$0xff] }
 0x435   : > { %10217 = vmatprep.mubr.bf16.mxu0 %v13371_v12  ;;  %v7781_v12 = vld [vmem:[%s14055_s10 + $0x18] sm:$0xff] }
 0x43c   : > { %10218 = vmatmul.mubr.bf16.gmra.mrb[4].mxu0 %v13381_v1  ;;  %v10313_v1 = vpack.c.bf16 %v7781_v12, %v7780_v22 }
 0x43d   : > { %10221 = vmatprep.mubr.bf16.mxu0 %v13397_v46  ;;  %v8978_v46 = vrot.slane %v13669_v5, 9 }
 0x43e   : > { %10314 = vmatprep.subr.bf16.mxu1 %v10313_v1 }
 0x43f   : > { %10316 = vmatpush3.bf16.msra.mxu1 %v10313_v1 }
 0x444   : > { %10222 = vmatmul.mubr.bf16.gmra.mrb[8].mxu0 %v13426_v2  ;;  %v7403_v2 = vrot.slane %v7401_v47, 4 }
 0x445   : > { %10225 = vmatprep.mubr.bf16.mxu0 %v13433_v48  ;;  %v7404_v48 = vrot.slane %v4576_v38, 5 }
 0x44c   : > { %10226 = vmatmul.mubr.bf16.gmra.mrb[12].mxu0 %v13450_v27  ;;  %v7402_v27 = vsel %vm13275_vm6, %v8978_v46, %v7401_v47 }
 0x44d   : > { %10229 = vmatprep.mubr.bf16.mxu0 %v13474_v53  ;;  %v7405_v53 = vsel %vm13275_vm6, %v7403_v2, %v7404_v48 }
 0x454   : > { %10230 = vmatmul.mubr.bf16.gmra.mrb[16].mxu0 %v13484_v9  ;;  %v8995_v9 = vcombine.low %v7402_v27, %v7405_v53 }
 0x455   : > { %10233 = vmatprep.mubr.bf16.mxu0 %v13501_v52  ;;  %v7782_v52 = vld [vmem:[%s14055_s10 + $0x20] sm:$0xff] }
 0x456   : > { %v10317_v25 = vpack.c.bf16 %v7783_v23, %v7782_v52 }
 0x458   : > { %10318 = vmatprep.subr.bf16.mxu1 %v10317_v25 }
 0x459   : > { %10320 = vmatpush3.bf16.msra.mxu1 %v10317_v25 }
 0x45c   : > { %10234 = vmatmul.mubr.bf16.gmra.mrb[20].mxu0 %v13525_v35  ;;  %v7784_v35 = vld [vmem:[%s14055_s10 + $0x30] sm:$0xff] }
 0x45d   : > { %10237 = vmatprep.mubr.bf16.mxu0 %v13534_v36  ;;  %v10321_v36 = vpack.c.bf16 %v7785_v20, %v7784_v35 }
 0x45f   : > { %10322 = vmatprep.subr.bf16.mxu1 %v10321_v36 }
 0x460   : > { %10324 = vmatpush3.bf16.msra.mxu1 %v10321_v36 }
 0x464   : > { %10238 = vmatmul.mubr.bf16.gmra.mrb[24].mxu0 %v13546_v24 }
 0x465   : > { %10241 = vmatprep.mubr.bf16.mxu0 %v13560_v31 }
 0x46c   : > { %10242 = vmatmul.mubr.bf16.gmra.mrb[28].mxu0 %v8995_v9 }
 0x4c4   : > { %v9975_v6 = vpop.f32.mrb[0].mxu1 }
 0x4c5   : > { %v6133_v24 = vpop.f32.mrb[1].mxu1 }
 0x4c6   : > { %v9976_v31 = vpop.f32.mrb[2].mxu1 }
 0x4c7   : > { %v6136_v44 = vpop.f32.mrb[3].mxu1 }
 0x4cc   : > { %v9979_v21 = vpop.f32.mrb[4].mxu1 }
 0x4cd   : > { %v6149_v3 = vpop.f32.mrb[5].mxu1 }
 0x4ce   : > { %v9980_v5 = vpop.f32.mrb[6].mxu1 }
 0x4cf   : > { %v6152_v10 = vpop.f32.mrb[7].mxu1 }
 0x4d4   : > { %v13783_v26 = vpop.f32.mrb[8].mxu1 }
 0x4d5   : > { %v13785_v42 = vpop.f32.mrb[9].mxu1 }
 0x4d6   : > { %v13787_v40 = vpop.f32.mrb[10].mxu1 }
 0x4d7   : > { %v13789_v62 = vpop.f32.mrb[11].mxu1 }
 0x4dc   : > { %v13791_v29 = vpop.f32.mrb[12].mxu1 }
 0x4dd   : > { %v13793_v28 = vpop.f32.mrb[13].mxu1 }
 0x4de   : > { %v13795_v55 = vpop.f32.mrb[14].mxu1 }
 0x4df   : > { %v13797_v39 = vpop.f32.mrb[15].mxu1 }
 0x4e4   : > { %v13799_v16 = vpop.f32.mrb[16].mxu1 }
 0x4e5   : > { %v13801_v30 = vpop.f32.mrb[17].mxu1 }
 0x4e6   : > { %v13803_v51 = vpop.f32.mrb[18].mxu1 }
 0x4e7   : > { %v13805_v14 = vpop.f32.mrb[19].mxu1 }
 0x4ec   : > { %v13807_v60 = vpop.f32.mrb[20].mxu1 }
 0x4ed   : > { %v13809_v17 = vpop.f32.mrb[21].mxu1 }
 0x4ee   : > { %v13811_v37 = vpop.f32.mrb[22].mxu1 }
 0x4ef   : > { %v13813_v4 = vpop.f32.mrb[23].mxu1 }
 0x4f4   : > { %v13815_v56 = vpop.f32.mrb[24].mxu1 }
 0x4f5   : > { %v13817_v7 = vpop.f32.mrb[25].mxu1 }
 0x4f6   : > { %v13819_v13 = vpop.f32.mrb[26].mxu1 }
 0x4f7   : > { %v13821_v54 = vpop.f32.mrb[27].mxu1 }
 0x4fc   : > { %v13823_v50 = vpop.f32.mrb[28].mxu1 }
 0x4fd   : > { %v13825_v63 = vpop.f32.mrb[29].mxu1 }
 0x4fe   : > { %v13827_v43 = vpop.f32.mrb[30].mxu1 }
 0x4ff   : > { %v13829_v19 = vpop.f32.mrb[31].mxu1 }
 0x507   : > { %v10215_v0 = vpop.f32.mrb[0].mxu0 }
 0x508   : > { %v10587_v58 = vadd.f32 %v10215_v0, %v9975_v6  ;;  %v7509_v38 = vpop.f32.mrb[1].mxu0 }
 0x509   : > { %v10588_v45 = vadd.f32 %v7509_v38, %v6133_v24  ;;  %v10216_v11 = vpop.f32.mrb[2].mxu0 }
 0x50a   : > { %v7677_v33 = vmul.f32 %v10587_v58, %v13834_v41  ;;  %v10589_v49 = vadd.f32 %v10216_v11, %v9976_v31  ;;  %v7512_v8 = vpop.f32.mrb[3].mxu0 }
 0x50b   : > { %v7675_v34 = vmul.f32 %v10588_v45, %v13834_v41  ;;  %v10590_v32 = vadd.f32 %v7512_v8, %v6136_v44 }
 0x50c   : > { %v7678_v18 = vmul.f32 %v10589_v49, %v13834_v41  ;;  %v7716_v61 = vadd.f32 %v13840_v57, %v7677_v33 }
 0x50d   : > { %v7714_v15 = vadd.f32 %v13840_v57, %v7675_v34  ;;  %v7676_v59 = vmul.f32 %v10590_v32, %v13834_v41 }
 0x50e   : > { %v7717_v2 = vadd.f32 %v13840_v57, %v7678_v18  ;;  %v7748_v9 = vmax.f32 %v7716_v61, 0.0 }
 0x50f   : > { %v7746_v47 = vmax.f32 %v7714_v15, 0.0  ;;  %v7715_v22 = vadd.f32 %v13840_v57, %v7676_v59  ;;  %v10219_v12 = vpop.f32.mrb[4].mxu0 }
 0x510   : > { %v10591_v1 = vadd.f32 %v10219_v12, %v9979_v21  ;;  %v7525_v46 = vpop.f32.mrb[5].mxu0  ;;  %v7749_v36 = vmax.f32 %v7717_v2, 0.0 }
 0x511   : > { %v7747_v48 = vmax.f32 %v7715_v22, 0.0  ;;  %v10592_v27 = vadd.f32 %v7525_v46, %v6149_v3  ;;  %v10220_v53 = vpop.f32.mrb[6].mxu0  ;;  %10261 = vmatprep.mubr.msk.f32.mxu1 %vm7793_vm7, %v7746_v47 }
 0x512   : > { %v7681_v52 = vmul.f32 %v10591_v1, %v13834_v41  ;;  %v10593_v23 = vadd.f32 %v10220_v53, %v9980_v5  ;;  %v7528_v25 = vpop.f32.mrb[7].mxu0 }
 0x513   : > { %v7679_v35 = vmul.f32 %v10592_v27, %v13834_v41  ;;  %v10594_v20 = vadd.f32 %v7528_v25, %v6152_v10  ;;  %10262 = vmatmul.mubr.msk.f32.vlgmr.msra.gmra.mrb[32].mxu1 %vm7793_vm7, %v7747_v48 }
 0x514   : > { %10264 = vmatprep.mubr.msk.f32.mxu1 %vm7793_vm7, %v7748_v9  ;;  %v7682_v24 = vmul.f32 %v10593_v23, %v13834_v41  ;;  %v7720_v44 = vadd.f32 %v13840_v57, %v7681_v52 }
 0x515   : > { %v7718_v6 = vadd.f32 %v13840_v57, %v7679_v35  ;;  %v7680_v31 = vmul.f32 %v10594_v20, %v13834_v41 }
 0x516   : > { %v7721_v58 = vadd.f32 %v13840_v57, %v7682_v24  ;;  %v7752_v33 = vmax.f32 %v7720_v44, 0.0 }
 0x517   : > { %v7750_v21 = vmax.f32 %v7718_v6, 0.0  ;;  %v7719_v3 = vadd.f32 %v13840_v57, %v7680_v31  ;;  %v10223_v5 = vpop.f32.mrb[8].mxu0  ;;  %10265 = vmatmul.mubr.msk.f32.gmra.mrb[34].mxu1 %vm7793_vm7, %v7749_v36 }
 0x518   : > { %v10595_v10 = vadd.f32 %v10223_v5, %v13783_v26  ;;  %v7541_v0 = vpop.f32.mrb[9].mxu0  ;;  %v7753_v26 = vmax.f32 %v7721_v58, 0.0 }
 0x519   : > { %v7751_v38 = vmax.f32 %v7719_v3, 0.0  ;;  %v10596_v45 = vadd.f32 %v7541_v0, %v13785_v42  ;;  %v10224_v11 = vpop.f32.mrb[10].mxu0  ;;  %10267 = vmatprep.mubr.msk.f32.mxu1 %vm7793_vm7, %v7750_v21 }
 0x51a   : > { %v7685_v49 = vmul.f32 %v10595_v10, %v13834_v41  ;;  %v10597_v8 = vadd.f32 %v10224_v11, %v13787_v40  ;;  %v7544_v34 = vpop.f32.mrb[11].mxu0 }
 0x51b   : > { %v7683_v32 = vmul.f32 %v10596_v45, %v13834_v41  ;;  %v10598_v15 = vadd.f32 %v7544_v34, %v13789_v62  ;;  %10268 = vmatmul.mubr.msk.f32.gmra.mrb[36].mxu1 %vm7793_vm7, %v7751_v38 }
 0x51c   : > { %10270 = vmatprep.mubr.msk.f32.mxu1 %vm7793_vm7, %v7752_v33  ;;  %v7686_v18 = vmul.f32 %v10597_v8, %v13834_v41  ;;  %v7724_v61 = vadd.f32 %v13840_v57, %v7685_v49 }
 0x51d   : > { %v7722_v42 = vadd.f32 %v13840_v57, %v7683_v32  ;;  %v7684_v59 = vmul.f32 %v10598_v15, %v13834_v41 }
 0x51e   : > { %v7725_v1 = vadd.f32 %v13840_v57, %v7686_v18  ;;  %v7756_v27 = vmax.f32 %v7724_v61, 0.0 }
 0x51f   : > { %v7754_v47 = vmax.f32 %v7722_v42, 0.0  ;;  %v7723_v40 = vadd.f32 %v13840_v57, %v7684_v59  ;;  %v10227_v22 = vpop.f32.mrb[12].mxu0  ;;  %10271 = vmatmul.mubr.msk.f32.gmra.mrb[38].mxu1 %vm7793_vm7, %v7753_v26 }
 0x520   : > { %v10599_v62 = vadd.f32 %v10227_v22, %v13791_v29  ;;  %v7557_v12 = vpop.f32.mrb[13].mxu0  ;;  %v7757_v29 = vmax.f32 %v7725_v1, 0.0 }
 0x521   : > { %v7755_v46 = vmax.f32 %v7723_v40, 0.0  ;;  %v10600_v2 = vadd.f32 %v7557_v12, %v13793_v28  ;;  %v10228_v48 = vpop.f32.mrb[14].mxu0  ;;  %10273 = vmatprep.mubr.msk.f32.mxu1 %vm7793_vm7, %v7754_v47 }
 0x522   : > { %v7689_v53 = vmul.f32 %v10599_v62, %v13834_v41  ;;  %v10601_v9 = vadd.f32 %v10228_v48, %v13795_v55  ;;  %v7560_v52 = vpop.f32.mrb[15].mxu0 }
 0x523   : > { %v7687_v23 = vmul.f32 %v10600_v2, %v13834_v41  ;;  %v10602_v25 = vadd.f32 %v7560_v52, %v13797_v39  ;;  %10274 = vmatmul.mubr.msk.f32.gmra.mrb[40].mxu1 %vm7793_vm7, %v7755_v46 }
 0x524   : > { %10276 = vmatprep.mubr.msk.f32.mxu1 %vm7793_vm7, %v7756_v27  ;;  %v7690_v35 = vmul.f32 %v10601_v9, %v13834_v41  ;;  %v7728_v36 = vadd.f32 %v13840_v57, %v7689_v53 }
 0x525   : > { %v7726_v28 = vadd.f32 %v13840_v57, %v7687_v23  ;;  %v7688_v20 = vmul.f32 %v10602_v25, %v13834_v41 }
 0x526   : > { %v7729_v44 = vadd.f32 %v13840_v57, %v7690_v35  ;;  %v7760_v10 = vmax.f32 %v7728_v36, 0.0 }
 0x527   : > { %v7758_v6 = vmax.f32 %v7726_v28, 0.0  ;;  %v7727_v55 = vadd.f32 %v13840_v57, %v7688_v20  ;;  %v10231_v24 = vpop.f32.mrb[16].mxu0  ;;  %10277 = vmatmul.mubr.msk.f32.gmra.mrb[42].mxu1 %vm7793_vm7, %v7757_v29 }
 0x528   : > { %v10603_v39 = vadd.f32 %v10231_v24, %v13799_v16  ;;  %v7573_v31 = vpop.f32.mrb[17].mxu0  ;;  %v7761_v16 = vmax.f32 %v7729_v44, 0.0 }
 0x529   : > { %v7759_v21 = vmax.f32 %v7727_v55, 0.0  ;;  %v10604_v3 = vadd.f32 %v7573_v31, %v13801_v30  ;;  %v10232_v5 = vpop.f32.mrb[18].mxu0  ;;  %10279 = vmatprep.mubr.msk.f32.mxu1 %vm7793_vm7, %v7758_v6 }
 0x52a   : > { %v7693_v0 = vmul.f32 %v10603_v39, %v13834_v41  ;;  %v10605_v58 = vadd.f32 %v10232_v5, %v13803_v51  ;;  %v7576_v38 = vpop.f32.mrb[19].mxu0 }
 0x52b   : > { %v7691_v45 = vmul.f32 %v10604_v3, %v13834_v41  ;;  %v10606_v11 = vadd.f32 %v7576_v38, %v13805_v14  ;;  %10280 = vmatmul.mubr.msk.f32.gmra.mrb[44].mxu1 %vm7793_vm7, %v7759_v21 }
 0x52c   : > { %10282 = vmatprep.mubr.msk.f32.mxu1 %vm7793_vm7, %v7760_v10  ;;  %v7694_v33 = vmul.f32 %v10605_v58, %v13834_v41  ;;  %v7732_v8 = vadd.f32 %v13840_v57, %v7693_v0 }
 0x52d   : > { %v7730_v30 = vadd.f32 %v13840_v57, %v7691_v45  ;;  %v7692_v49 = vmul.f32 %v10606_v11, %v13834_v41 }
 0x52e   : > { %v7733_v26 = vadd.f32 %v13840_v57, %v7694_v33  ;;  %v7764_v61 = vmax.f32 %v7732_v8, 0.0 }
 0x52f   : > { %v7762_v34 = vmax.f32 %v7730_v30, 0.0  ;;  %v7731_v51 = vadd.f32 %v13840_v57, %v7692_v49  ;;  %v10235_v32 = vpop.f32.mrb[20].mxu0  ;;  %10283 = vmatmul.mubr.msk.f32.gmra.mrb[46].mxu1 %vm7793_vm7, %v7761_v16 }
 0x530   : > { %v10607_v14 = vadd.f32 %v10235_v32, %v13807_v60  ;;  %v7589_v15 = vpop.f32.mrb[21].mxu0  ;;  %v7765_v60 = vmax.f32 %v7733_v26, 0.0 }
 0x531   : > { %v7763_v42 = vmax.f32 %v7731_v51, 0.0  ;;  %v10608_v18 = vadd.f32 %v7589_v15, %v13809_v17  ;;  %v10236_v59 = vpop.f32.mrb[22].mxu0  ;;  %10285 = vmatprep.mubr.msk.f32.mxu1 %vm7793_vm7, %v7762_v34 }
 0x532   : > { %v7697_v47 = vmul.f32 %v10607_v14, %v13834_v41  ;;  %v10609_v40 = vadd.f32 %v10236_v59, %v13811_v37  ;;  %v7592_v22 = vpop.f32.mrb[23].mxu0  ;;  %v13964_v14 = vld [vmem:[%s14234_s20] ss:$0 sm:$0xff] }
 0x533   : > { %v7695_v62 = vmul.f32 %v10608_v18, %v13834_v41  ;;  %v10610_v12 = vadd.f32 %v7592_v22, %v13813_v4  ;;  %10286 = vmatmul.mubr.msk.f32.gmra.mrb[48].mxu1 %vm7793_vm7, %v7763_v42 }
 0x534   : > { %10288 = vmatprep.mubr.msk.f32.mxu1 %vm7793_vm7, %v7764_v61  ;;  %v7698_v1 = vmul.f32 %v10609_v40, %v13834_v41  ;;  %v7736_v2 = vadd.f32 %v13840_v57, %v7697_v47 }
 0x535   : > { %v7734_v17 = vadd.f32 %v13840_v57, %v7695_v62  ;;  %v7696_v46 = vmul.f32 %v10610_v12, %v13834_v41 }
 0x536   : > { %v7737_v9 = vadd.f32 %v13840_v57, %v7698_v1  ;;  %v7768_v29 = vmax.f32 %v7736_v2, 0.0 }
 0x537   : > { %v7766_v48 = vmax.f32 %v7734_v17, 0.0  ;;  %v7735_v37 = vadd.f32 %v13840_v57, %v7696_v46  ;;  %v10239_v27 = vpop.f32.mrb[24].mxu0  ;;  %10289 = vmatmul.mubr.msk.f32.gmra.mrb[50].mxu1 %vm7793_vm7, %v7765_v60 }
 0x538   : > { %v10611_v4 = vadd.f32 %v10239_v27, %v13815_v56  ;;  %v7605_v53 = vpop.f32.mrb[25].mxu0  ;;  %v7769_v56 = vmax.f32 %v7737_v9, 0.0 }
 0x539   : > { %v7767_v52 = vmax.f32 %v7735_v37, 0.0  ;;  %v10612_v23 = vadd.f32 %v7605_v53, %v13817_v7  ;;  %v10240_v25 = vpop.f32.mrb[26].mxu0  ;;  %10291 = vmatprep.mubr.msk.f32.mxu1 %vm7793_vm7, %v7766_v48 }
 0x53a   : > { %v7701_v28 = vmul.f32 %v10611_v4, %v13834_v41  ;;  %v10613_v35 = vadd.f32 %v10240_v25, %v13819_v13  ;;  %v7608_v20 = vpop.f32.mrb[27].mxu0 }
 0x53b   : > { %v7699_v36 = vmul.f32 %v10612_v23, %v13834_v41  ;;  %v10614_v6 = vadd.f32 %v7608_v20, %v13821_v54  ;;  %10292 = vmatmul.mubr.msk.f32.gmra.mrb[52].mxu1 %vm7793_vm7, %v7767_v52 }
 0x53c   : > { %10294 = vmatprep.mubr.msk.f32.mxu1 %vm7793_vm7, %v7768_v29  ;;  %v7702_v55 = vmul.f32 %v10613_v35, %v13834_v41  ;;  %v7740_v39 = vadd.f32 %v13840_v57, %v7701_v28 }
 0x53d   : > { %v7738_v7 = vadd.f32 %v13840_v57, %v7699_v36  ;;  %v7700_v24 = vmul.f32 %v10614_v6, %v13834_v41 }
 0x53e   : > { %v7741_v3 = vadd.f32 %v13840_v57, %v7702_v55  ;;  %v7772_v58 = vmax.f32 %v7740_v39, 0.0 }
 0x53f   : > { %v7770_v31 = vmax.f32 %v7738_v7, 0.0  ;;  %v7739_v13 = vadd.f32 %v13840_v57, %v7700_v24  ;;  %v10243_v44 = vpop.f32.mrb[28].mxu0  ;;  %10295 = vmatmul.mubr.msk.f32.gmra.mrb[54].mxu1 %vm7793_vm7, %v7769_v56 }
 0x540   : > { %v10615_v54 = vadd.f32 %v10243_v44, %v13823_v50  ;;  %v7621_v21 = vpop.f32.mrb[29].mxu0  ;;  %v7773_v50 = vmax.f32 %v7741_v3, 0.0 }
 0x541   : > { %v7771_v5 = vmax.f32 %v7739_v13, 0.0  ;;  %v10616_v10 = vadd.f32 %v7621_v21, %v13825_v63  ;;  %v10244_v0 = vpop.f32.mrb[30].mxu0  ;;  %10297 = vmatprep.mubr.msk.f32.mxu1 %vm7793_vm7, %v7770_v31 }
 0x542   : > { %v7705_v38 = vmul.f32 %v10615_v54, %v13834_v41  ;;  %v10617_v45 = vadd.f32 %v10244_v0, %v13827_v43  ;;  %v7624_v11 = vpop.f32.mrb[31].mxu0 }
 0x543   : > { %v7703_v16 = vmul.f32 %v10616_v10, %v13834_v41  ;;  %v10618_v30 = vadd.f32 %v7624_v11, %v13829_v19  ;;  %10298 = vmatmul.mubr.msk.f32.gmra.mrb[56].mxu1 %vm7793_vm7, %v7771_v5 }
 0x544   : > { %10300 = vmatprep.mubr.msk.f32.mxu1 %vm7793_vm7, %v7772_v58  ;;  %v7706_v33 = vmul.f32 %v10617_v45, %v13834_v41  ;;  %v7744_v8 = vadd.f32 %v13840_v57, %v7705_v38 }
 0x545   : > { %v7742_v63 = vadd.f32 %v13840_v57, %v7703_v16  ;;  %v7704_v49 = vmul.f32 %v10618_v30, %v13834_v41 }
 0x546   : > { %v7745_v19 = vadd.f32 %v13840_v57, %v7706_v33  ;;  %v7776_v32 = vmax.f32 %v7744_v8, 0.0 }
 0x547   : > { %v7774_v34 = vmax.f32 %v7742_v63, 0.0  ;;  %v7743_v43 = vadd.f32 %v13840_v57, %v7704_v49  ;;  %10301 = vmatmul.mubr.msk.f32.gmra.mrb[58].mxu1 %vm7793_vm7, %v7773_v50 }
 0x548   : > { %v7777_v41 = vmax.f32 %v7745_v19, 0.0 }
 0x549   : > { %v7775_v51 = vmax.f32 %v7743_v43, 0.0  ;;  %10303 = vmatprep.mubr.msk.f32.mxu1 %vm7793_vm7, %v7774_v34 }
 0x54b   : > { %10304 = vmatmul.mubr.msk.f32.gmra.mrb[60].mxu1 %vm7793_vm7, %v7775_v51 }
 0x54c   : > { %10306 = vmatprep.mubr.msk.f32.mxu1 %vm7793_vm7, %v7776_v32 }
 0x54f   : > { %10307 = vmatmul.mubr.msk.f32.gmra.mrb[62].mxu1 %vm7793_vm7, %v7777_v41 }
 0x5e6   : > { %v10263_v15 = vpop.f32.mrb[32].mxu1 }
 0x5e7   : > { %v7962_v57 = vadd.f32 %v10263_v15, %v13964_v14  ;;  %v7956_v26 = vpop.f32.mrb[33].mxu1 }
 0x5e8   : > { %v7957_v42 = vadd.f32 %v13964_v14, %v7956_v26 }
 0x5e9   : > { %8116 = vst [vmem:[%s11207_s16 + $0x8] sm:$0xff] %v7962_v57 }
 0x5ea   : > { %8115 = vst [vmem:[%s11207_s16] sm:$0xff] %v7957_v42  ;;  %v10266_v18 = vpop.f32.mrb[34].mxu1 }
 0x5eb   : > { %v7972_v59 = vadd.f32 %v10266_v18, %v13964_v14  ;;  %v7966_v61 = vpop.f32.mrb[35].mxu1 }
 0x5ec   : > { %v7967_v47 = vadd.f32 %v13964_v14, %v7966_v61 }
 0x5ed   : > { %8118 = vst [vmem:[%s11207_s16 + $0x18] sm:$0xff] %v7972_v59 }
 0x5ee   : > { %8117 = vst [vmem:[%s11207_s16 + $0x10] sm:$0xff] %v7967_v47  ;;  %v10269_v40 = vpop.f32.mrb[36].mxu1 }
 0x5ef   : > { %v7982_v22 = vadd.f32 %v10269_v40, %v13964_v14  ;;  %v7976_v62 = vpop.f32.mrb[37].mxu1 }
 0x5f0   : > { %v7977_v12 = vadd.f32 %v13964_v14, %v7976_v62 }
 0x5f1   : > { %8120 = vst [vmem:[%s11207_s16 + $0x28] sm:$0xff] %v7982_v22 }
 0x5f2   : > { %8119 = vst [vmem:[%s11207_s16 + $0x20] sm:$0xff] %v7977_v12  ;;  %v10272_v60 = vpop.f32.mrb[38].mxu1 }
 0x5f3   : > { %v7992_v17 = vadd.f32 %v10272_v60, %v13964_v14  ;;  %v7986_v1 = vpop.f32.mrb[39].mxu1 }
 0x5f4   : > { %v7987_v46 = vadd.f32 %v13964_v14, %v7986_v1 }
 0x5f5   : > { %8122 = vst [vmem:[%s11207_s16 + $0x38] sm:$0xff] %v7992_v17 }
 0x5f6   : > { %8121 = vst [vmem:[%s11207_s16 + $0x30] sm:$0xff] %v7987_v46  ;;  %v10275_v2 = vpop.f32.mrb[40].mxu1 }
 0x5f7   : > { %v8002_v48 = vadd.f32 %v10275_v2, %v13964_v14  ;;  %v7996_v37 = vpop.f32.mrb[41].mxu1 }
 0x5f8   : > { %v7997_v27 = vadd.f32 %v13964_v14, %v7996_v37 }
 0x5f9   : > { %8124 = vst [vmem:[%s11207_s16 + $0x48] sm:$0xff] %v8002_v48 }
 0x5fa   : > { %8123 = vst [vmem:[%s11207_s16 + $0x40] sm:$0xff] %v7997_v27  ;;  %v10278_v4 = vpop.f32.mrb[42].mxu1 }
 0x5fb   : > { %v8012_v53 = vadd.f32 %v10278_v4, %v13964_v14  ;;  %v8006_v9 = vpop.f32.mrb[43].mxu1 }
 0x5fc   : > { %v8007_v52 = vadd.f32 %v13964_v14, %v8006_v9 }
 0x5fd   : > { %8126 = vst [vmem:[%s11207_s16 + $0x58] sm:$0xff] %v8012_v53 }
 0x5fe   : > { %8125 = vst [vmem:[%s11207_s16 + $0x50] sm:$0xff] %v8007_v52  ;;  %v10281_v23 = vpop.f32.mrb[44].mxu1 }
 0x5ff   : > { %v8022_v25 = vadd.f32 %v10281_v23, %v13964_v14  ;;  %v8016_v29 = vpop.f32.mrb[45].mxu1 }
 0x600   : > { %v8017_v28 = vadd.f32 %v13964_v14, %v8016_v29 }
 0x601   : > { %8128 = vst [vmem:[%s11207_s16 + $0x68] sm:$0xff] %v8022_v25 }
 0x602   : > { %8127 = vst [vmem:[%s11207_s16 + $0x60] sm:$0xff] %v8017_v28  ;;  %v10284_v35 = vpop.f32.mrb[46].mxu1 }
 0x603   : > { %v8032_v20 = vadd.f32 %v10284_v35, %v13964_v14  ;;  %v8026_v36 = vpop.f32.mrb[47].mxu1 }
 0x604   : > { %v8027_v6 = vadd.f32 %v13964_v14, %v8026_v36 }
 0x605   : > { %8130 = vst [vmem:[%s11207_s16 + $0x78] sm:$0xff] %v8032_v20 }
 0x606   : > { %8129 = vst [vmem:[%s11207_s16 + $0x70] sm:$0xff] %v8027_v6  ;;  %v10287_v56 = vpop.f32.mrb[48].mxu1 }
 0x607   : > { %v8042_v7 = vadd.f32 %v10287_v56, %v13964_v14  ;;  %v8036_v55 = vpop.f32.mrb[49].mxu1 }
 0x608   : > { %v8037_v24 = vadd.f32 %v13964_v14, %v8036_v55 }
 0x609   : > { %8132 = vst [vmem:[%s11207_s16 + $0x88] sm:$0xff] %v8042_v7 }
 0x60a   : > { %8131 = vst [vmem:[%s11207_s16 + $0x80] sm:$0xff] %v8037_v24  ;;  %v10290_v39 = vpop.f32.mrb[50].mxu1 }
 0x60b   : > { %v8052_v31 = vadd.f32 %v10290_v39, %v13964_v14  ;;  %v8046_v13 = vpop.f32.mrb[51].mxu1 }
 0x60c   : > { %v8047_v44 = vadd.f32 %v13964_v14, %v8046_v13 }
 0x60d   : > { %8134 = vst [vmem:[%s11207_s16 + $0x98] sm:$0xff] %v8052_v31 }
 0x60e   : > { %8133 = vst [vmem:[%s11207_s16 + $0x90] sm:$0xff] %v8047_v44  ;;  %v10293_v54 = vpop.f32.mrb[52].mxu1 }
 0x60f   : > { %v8062_v21 = vadd.f32 %v10293_v54, %v13964_v14  ;;  %v8056_v3 = vpop.f32.mrb[53].mxu1 }
 0x610   : > { %v8057_v5 = vadd.f32 %v13964_v14, %v8056_v3 }
 0x611   : > { %8136 = vst [vmem:[%s11207_s16 + $0xa8] sm:$0xff] %v8062_v21 }
 0x612   : > { %8135 = vst [vmem:[%s11207_s16 + $0xa0] sm:$0xff] %v8057_v5  ;;  %v10296_v10 = vpop.f32.mrb[54].mxu1 }
 0x613   : > { %v8072_v0 = vadd.f32 %v10296_v10, %v13964_v14  ;;  %v8066_v58 = vpop.f32.mrb[55].mxu1 }
 0x614   : > { %v8067_v38 = vadd.f32 %v13964_v14, %v8066_v58 }
 0x615   : > { %8138 = vst [vmem:[%s11207_s16 + $0xb8] sm:$0xff] %v8072_v0 }
 0x616   : > { %8137 = vst [vmem:[%s11207_s16 + $0xb0] sm:$0xff] %v8067_v38  ;;  %v10299_v45 = vpop.f32.mrb[56].mxu1 }
 0x617   : > { %v8082_v11 = vadd.f32 %v10299_v45, %v13964_v14  ;;  %v8076_v16 = vpop.f32.mrb[57].mxu1 }
 0x618   : > { %v8077_v30 = vadd.f32 %v13964_v14, %v8076_v16 }
 0x619   : > { %8140 = vst [vmem:[%s11207_s16 + $0xc8] sm:$0xff] %v8082_v11 }
 0x61a   : > { %8139 = vst [vmem:[%s11207_s16 + $0xc0] sm:$0xff] %v8077_v30  ;;  %v10302_v50 = vpop.f32.mrb[58].mxu1 }
 0x61b   : > { %v8092_v63 = vadd.f32 %v10302_v50, %v13964_v14  ;;  %v8086_v33 = vpop.f32.mrb[59].mxu1 }
 0x61c   : > { %v8087_v49 = vadd.f32 %v13964_v14, %v8086_v33 }
 0x61d   : > { %8142 = vst [vmem:[%s11207_s16 + $0xd8] sm:$0xff] %v8092_v63 }
 0x61e   : > { %8141 = vst [vmem:[%s11207_s16 + $0xd0] sm:$0xff] %v8087_v49  ;;  %v10305_v8 = vpop.f32.mrb[60].mxu1 }
 0x61f   : > { %v8102_v34 = vadd.f32 %v10305_v8, %v13964_v14  ;;  %v8096_v43 = vpop.f32.mrb[61].mxu1 }
 0x620   : > { %v8097_v19 = vadd.f32 %v13964_v14, %v8096_v43 }
 0x621   : > { %8144 = vst [vmem:[%s11207_s16 + $0xe8] sm:$0xff] %v8102_v34 }
 0x622   : > { %8143 = vst [vmem:[%s11207_s16 + $0xe0] sm:$0xff] %v8097_v19  ;;  %v10308_v51 = vpop.f32.mrb[62].mxu1 }
 0x623   : > { %v8112_v32 = vadd.f32 %v10308_v51, %v13964_v14  ;;  %v8106_v41 = vpop.f32.mrb[63].mxu1 }
 0x624   : > { %v8107_v15 = vadd.f32 %v13964_v14, %v8106_v41 }
 0x625   : > { %8146 = vst [vmem:[%s11207_s16 + $0xf8] sm:$0xff] %v8112_v32 }
 0x626   : > { %8145 = vst [vmem:[%s11207_s16 + $0xf0] sm:$0xff] %v8107_v15 }
 0x627 PF: > { %s14235_s13 = sld [smem:[#allocation6_spill]]  ;;  %s14236_s21 = sld [smem:[#allocation4_spill]] }
 0x628   : > { %s14237_s22 = sld [smem:[#allocation5_spill]]  ;;  %s14238_s23 = sld [smem:[#allocation7_spill]] }
 0x629   : > { %s14239_s24 = sld [smem:[#allocation8_spill]] }
 0x62d   : > { %s22_s25 = sadd.s32 1, %s14235_s13  }
 0x62e   : > { %p19_p11 = scmp.ge.s32.totalorder %s22_s25, 6  }
 0x630   :  { %21 = sbr.rel (!%p19_p11) target bundleno = 4 (0x4), region = 141 }

</bundles_post_ra>
